<compile_context>
chip_gen: v5e
topology: v5e:2x2
jax: 0.10.0
libtpu: 0.0.40
codegen_flags: <defaults>
</compile_context>

<pallas_src>
import jax
import jax.numpy as jnp
from jax.experimental import pallas as pl
from jax.experimental.pallas import tpu as pltpu


# Geometry fixed by the PyTorch module: the hardcoded reshape(1, 8, 64, 64)
# forces conv_1's padded output to be exactly 64x64, i.e. a 62x62 input.
C_IN, C_MID, C_OUT = 3, 8, 8
H_IN = W_IN = 62            # raw input
H_MID = W_MID = 64          # after conv_1 (padding=1)
H_OUT = W_OUT = 66          # after conv_2 (padding=1)


def _fused_model_kernel(x_ref, w1_ref, b1_ref, w2_ref, b2_ref, o_ref, v3_ref):
    """Whole forward pass in one kernel invocation.

    x_ref : (1, 3, 62, 62) VMEM   raw input (no host-side padding)
    w1_ref: (8, 3)  SMEM          conv_1 1x1 weights
    b1_ref: (8,)    SMEM          conv_1 bias
    w2_ref: (8, 8)  SMEM          conv_2 1x1 weights
    b2_ref: (8,)    SMEM          conv_2 bias
    o_ref : (1, 8, 66, 66) VMEM   final |conv_2(...)| output, rings included
    v3_ref: (8, 64, 64) VMEM      scratch: clamp(3 + conv_1(x), 0, 5)/6 + halo
    """
    # ---- Stage 1: v3 = clamp(3 + conv_1(x), 0, 5) / 6 on the full 64x64 ----
    # conv_1 is 1x1 with zero padding=1, so its halo ring is the per-channel
    # constant clamp(3 + b1, 0, 5)/6; splat that over the whole slab first,
    # then overwrite the 62x62 interior with the real channel mix (VPU only).
    xs = [x_ref[0, c, :, :] for c in range(C_IN)]          # three (62,62) slabs
    for m in range(C_MID):
        ring = jnp.full((H_MID, W_MID), b1_ref[m], dtype=jnp.float32) + 3.0
        v3_ref[m, :, :] = jnp.clip(ring, 0.0, 5.0) * (1.0 / 6.0)

        acc = xs[0] * w1_ref[m, 0]
        for c in range(1, C_IN):
            acc = acc + xs[c] * w1_ref[m, c]
        acc = acc + b1_ref[m] + 3.0
        v3_ref[m, 1:1 + H_IN, 1:1 + W_IN] = (
            jnp.clip(acc, 0.0, 5.0) * (1.0 / 6.0))

    # ---- Stage 2: v6 = |conv_2(v3)| written straight into the final slab ---
    v3 = [v3_ref[m, :, :] for m in range(C_MID)]           # eight (64,64) slabs
    for o in range(C_OUT):
        # conv_2's own zero-pad halo contributes only the bias -> |b2| ring.
        o_ref[0, o, :, :] = jnp.abs(
            jnp.full((H_OUT, W_OUT), b2_ref[o], dtype=jnp.float32))
        u = v3[0] * w2_ref[o, 0]
        for m in range(1, C_MID):
            u = u + v3[m] * w2_ref[o, m]
        o_ref[0, o, 1:1 + H_MID, 1:1 + W_MID] = jnp.abs(u + b2_ref[o])


def model_forward(x_nchw, w1, b1, w2, b2):
    """x_nchw: (1, 3, 62, 62) f32 (so the module's reshape(1,8,64,64) is valid).
    w1: (8,3), b1: (8,), w2: (8,8), b2: (8,). Returns (1, 8, 66, 66) f32."""
    assert x_nchw.shape == (1, C_IN, H_IN, W_IN), x_nchw.shape

    flops = (2 * H_IN * W_IN * C_MID * C_IN
             + 2 * H_MID * W_MID * C_OUT * C_MID)
    bytes_accessed = 4 * (x_nchw.size + C_OUT * H_OUT * W_OUT
                          + w1.size + b1.size + w2.size + b2.size)

    return pl.pallas_call(
        _fused_model_kernel,
        out_shape=jax.ShapeDtypeStruct((1, C_OUT, H_OUT, W_OUT), jnp.float32),
        in_specs=[
            pl.BlockSpec(memory_space=pltpu.MemorySpace.VMEM),   # x (whole array)
            pl.BlockSpec(memory_space=pltpu.MemorySpace.SMEM),   # w1
            pl.BlockSpec(memory_space=pltpu.MemorySpace.SMEM),   # b1
            pl.BlockSpec(memory_space=pltpu.MemorySpace.SMEM),   # w2
            pl.BlockSpec(memory_space=pltpu.MemorySpace.SMEM),   # b2
        ],
        out_specs=pl.BlockSpec(memory_space=pltpu.MemorySpace.VMEM),
        scratch_shapes=[pltpu.VMEM((C_MID, H_MID, W_MID), jnp.float32)],
        cost_estimate=pl.CostEstimate(
            flops=flops, transcendentals=0, bytes_accessed=bytes_accessed),
    )(x_nchw, w1, b1, w2, b2)


def _reference(x_nchw, w1, b1, w2, b2):
    # Plain-JAX reference of the same math (sanity check).
    x_pad = jnp.pad(x_nchw, ((0, 0), (0, 0), (1, 1), (1, 1)))
    v1 = 3.0 + jnp.einsum("nchw,oc->nohw", x_pad, w1) + b1[None, :, None, None]
    v3 = jnp.clip(v1, 0.0, 5.0) / 6.0
    v3_pad = jnp.pad(v3, ((0, 0), (0, 0), (1, 1), (1, 1)))
    v5 = jnp.einsum("nchw,oc->nohw", v3_pad, w2) + b2[None, :, None, None]
    return jnp.abs(v5)


if __name__ == "__main__":
    key = jax.random.PRNGKey(0)
    k_x, k_w1, k_b1, k_w2, k_b2 = jax.random.split(key, 5)

    # Input chosen as (1, 3, 62, 62) so the hardcoded reshape(1, 8, 64, 64)
    # in the PyTorch forward is exactly valid (conv_1 pads 62 -> 64).
    x = jax.random.normal(k_x, (1, 3, 62, 62), dtype=jnp.float32)

    # Deterministic params mimicking PyTorch Conv2d default init
    # (uniform(-1/sqrt(fan_in), 1/sqrt(fan_in)); 1x1 kernels stored as (out, in)).
    bound1 = 1.0 / jnp.sqrt(3.0)
    w1 = jax.random.uniform(k_w1, (8, 3), jnp.float32, -bound1, bound1)
    b1 = jax.random.uniform(k_b1, (8,), jnp.float32, -bound1, bound1)

    bound2 = 1.0 / jnp.sqrt(8.0)
    w2 = jax.random.uniform(k_w2, (8, 8), jnp.float32, -bound2, bound2)
    b2 = jax.random.uniform(k_b2, (8,), jnp.float32, -bound2, bound2)

    fwd = jax.jit(model_forward)
    out = jax.block_until_ready(fwd(x, w1, b1, w2, b2))
    ref = jax.block_until_ready(_reference(x, w1, b1, w2, b2))

    assert out.shape == (1, 8, 66, 66), out.shape
    assert jnp.allclose(out, ref, atol=1e-5, rtol=1e-5), float(
        jnp.max(jnp.abs(out - ref)))

    print("KERNEL_OK")
</pallas_src>

<mosaic_0001>
module attributes {stable_mosaic.version = 11 : i64} {
  func.func @_fused_model_kernel(%arg0: memref<1x3x62x62xf32, #tpu.memory_space<vmem>>, %arg1: memref<8x3xf32, #tpu.memory_space<smem>>, %arg2: memref<8xf32, #tpu.memory_space<smem>>, %arg3: memref<8x8xf32, #tpu.memory_space<smem>>, %arg4: memref<8xf32, #tpu.memory_space<smem>>, %arg5: memref<1x8x66x66xf32, #tpu.memory_space<vmem>>, %arg6: memref<8x64x64xf32, #tpu.memory_space<vmem>>) attributes {dimension_semantics = [], scalar_prefetch = 0 : i64, scratch_operands = 1 : i64, tpu.core_type = #tpu.core_type<tc>} {
    %c0 = arith.constant 0 : index
    %c0_0 = arith.constant 0 : index
    %c0_1 = arith.constant 0 : index
    %c0_2 = arith.constant 0 : index
    %0 = vector.load %arg0[%c0, %c0_0, %c0_1, %c0_2] : memref<1x3x62x62xf32, #tpu.memory_space<vmem>>, vector<1x1x62x62xf32>
    %1 = vector.shape_cast %0 : vector<1x1x62x62xf32> to vector<62x62xf32>
    %c0_3 = arith.constant 0 : index
    %c1 = arith.constant 1 : index
    %c0_4 = arith.constant 0 : index
    %c0_5 = arith.constant 0 : index
    %2 = vector.load %arg0[%c0_3, %c1, %c0_4, %c0_5] : memref<1x3x62x62xf32, #tpu.memory_space<vmem>>, vector<1x1x62x62xf32>
    %3 = vector.shape_cast %2 : vector<1x1x62x62xf32> to vector<62x62xf32>
    %c0_6 = arith.constant 0 : index
    %c2 = arith.constant 2 : index
    %c0_7 = arith.constant 0 : index
    %c0_8 = arith.constant 0 : index
    %4 = vector.load %arg0[%c0_6, %c2, %c0_7, %c0_8] : memref<1x3x62x62xf32, #tpu.memory_space<vmem>>, vector<1x1x62x62xf32>
    %5 = vector.shape_cast %4 : vector<1x1x62x62xf32> to vector<62x62xf32>
    %c0_9 = arith.constant 0 : index
    %6 = memref.load %arg2[%c0_9] : memref<8xf32, #tpu.memory_space<smem>>
    %7 = vector.broadcast %6 : f32 to vector<64x64xf32>
    %cst = arith.constant 3.000000e+00 : f32
    %8 = vector.broadcast %cst : f32 to vector<64x64xf32>
    %9 = arith.addf %7, %8 : vector<64x64xf32>
    %cst_10 = arith.constant 0.000000e+00 : f32
    %cst_11 = arith.constant 5.000000e+00 : f32
    %10 = vector.broadcast %cst_10 : f32 to vector<64x64xf32>
    %11 = arith.maximumf %10, %9 : vector<64x64xf32>
    %12 = vector.broadcast %cst_11 : f32 to vector<64x64xf32>
    %13 = arith.minimumf %12, %11 : vector<64x64xf32>
    %cst_12 = arith.constant 0.166666672 : f32
    %14 = vector.broadcast %cst_12 : f32 to vector<64x64xf32>
    %15 = arith.mulf %13, %14 : vector<64x64xf32>
    %c0_13 = arith.constant 0 : index
    %c0_14 = arith.constant 0 : index
    %c0_15 = arith.constant 0 : index
    %16 = vector.load %arg6[%c0_13, %c0_14, %c0_15] : memref<8x64x64xf32, #tpu.memory_space<vmem>>, vector<1x64x64xf32>
    %17 = vector.shape_cast %16 : vector<1x64x64xf32> to vector<64x64xf32>
    %18 = vector.shape_cast %15 : vector<64x64xf32> to vector<1x64x64xf32>
    tpu.vector_store %arg6[%c0_13, %c0_14, %c0_15], %18 {strides = array<i32>} : memref<8x64x64xf32, #tpu.memory_space<vmem>>, vector<1x64x64xf32>,
    %c0_16 = arith.constant 0 : index
    %c0_17 = arith.constant 0 : index
    %19 = memref.load %arg1[%c0_16, %c0_17] : memref<8x3xf32, #tpu.memory_space<smem>>
    %20 = vector.broadcast %19 : f32 to vector<62x62xf32>
    %21 = arith.mulf %1, %20 : vector<62x62xf32>
    %c0_18 = arith.constant 0 : index
    %c1_19 = arith.constant 1 : index
    %22 = memref.load %arg1[%c0_18, %c1_19] : memref<8x3xf32, #tpu.memory_space<smem>>
    %23 = vector.broadcast %22 : f32 to vector<62x62xf32>
    %24 = arith.mulf %3, %23 : vector<62x62xf32>
    %25 = arith.addf %21, %24 : vector<62x62xf32>
    %c0_20 = arith.constant 0 : index
    %c2_21 = arith.constant 2 : index
    %26 = memref.load %arg1[%c0_20, %c2_21] : memref<8x3xf32, #tpu.memory_space<smem>>
    %27 = vector.broadcast %26 : f32 to vector<62x62xf32>
    %28 = arith.mulf %5, %27 : vector<62x62xf32>
    %29 = arith.addf %25, %28 : vector<62x62xf32>
    %c0_22 = arith.constant 0 : index
    %30 = memref.load %arg2[%c0_22] : memref<8xf32, #tpu.memory_space<smem>>
    %31 = vector.broadcast %30 : f32 to vector<62x62xf32>
    %32 = arith.addf %29, %31 : vector<62x62xf32>
    %cst_23 = arith.constant 3.000000e+00 : f32
    %33 = vector.broadcast %cst_23 : f32 to vector<62x62xf32>
    %34 = arith.addf %32, %33 : vector<62x62xf32>
    %cst_24 = arith.constant 0.000000e+00 : f32
    %cst_25 = arith.constant 5.000000e+00 : f32
    %35 = vector.broadcast %cst_24 : f32 to vector<62x62xf32>
    %36 = arith.maximumf %35, %34 : vector<62x62xf32>
    %37 = vector.broadcast %cst_25 : f32 to vector<62x62xf32>
    %38 = arith.minimumf %37, %36 : vector<62x62xf32>
    %cst_26 = arith.constant 0.166666672 : f32
    %39 = vector.broadcast %cst_26 : f32 to vector<62x62xf32>
    %40 = arith.mulf %38, %39 : vector<62x62xf32>
    %c0_27 = arith.constant 0 : index
    %c1_28 = arith.constant 1 : index
    %c1_29 = arith.constant 1 : index
    %41 = vector.load %arg6[%c0_27, %c1_28, %c1_29] : memref<8x64x64xf32, #tpu.memory_space<vmem>>, vector<1x62x62xf32>
    %42 = vector.shape_cast %41 : vector<1x62x62xf32> to vector<62x62xf32>
    %43 = vector.shape_cast %40 : vector<62x62xf32> to vector<1x62x62xf32>
    tpu.vector_store %arg6[%c0_27, %c1_28, %c1_29], %43 {strides = array<i32>} : memref<8x64x64xf32, #tpu.memory_space<vmem>>, vector<1x62x62xf32>,
    %c1_30 = arith.constant 1 : index
    %44 = memref.load %arg2[%c1_30] : memref<8xf32, #tpu.memory_space<smem>>
    %45 = vector.broadcast %44 : f32 to vector<64x64xf32>
    %cst_31 = arith.constant 3.000000e+00 : f32
    %46 = vector.broadcast %cst_31 : f32 to vector<64x64xf32>
    %47 = arith.addf %45, %46 : vector<64x64xf32>
    %cst_32 = arith.constant 0.000000e+00 : f32
    %cst_33 = arith.constant 5.000000e+00 : f32
    %48 = vector.broadcast %cst_32 : f32 to vector<64x64xf32>
    %49 = arith.maximumf %48, %47 : vector<64x64xf32>
    %50 = vector.broadcast %cst_33 : f32 to vector<64x64xf32>
    %51 = arith.minimumf %50, %49 : vector<64x64xf32>
    %cst_34 = arith.constant 0.166666672 : f32
    %52 = vector.broadcast %cst_34 : f32 to vector<64x64xf32>
    %53 = arith.mulf %51, %52 : vector<64x64xf32>
    %c1_35 = arith.constant 1 : index
    %c0_36 = arith.constant 0 : index
    %c0_37 = arith.constant 0 : index
    %54 = vector.load %arg6[%c1_35, %c0_36, %c0_37] : memref<8x64x64xf32, #tpu.memory_space<vmem>>, vector<1x64x64xf32>
    %55 = vector.shape_cast %54 : vector<1x64x64xf32> to vector<64x64xf32>
    %56 = vector.shape_cast %53 : vector<64x64xf32> to vector<1x64x64xf32>
    tpu.vector_store %arg6[%c1_35, %c0_36, %c0_37], %56 {strides = array<i32>} : memref<8x64x64xf32, #tpu.memory_space<vmem>>, vector<1x64x64xf32>,
    %c1_38 = arith.constant 1 : index
    %c0_39 = arith.constant 0 : index
    %57 = memref.load %arg1[%c1_38, %c0_39] : memref<8x3xf32, #tpu.memory_space<smem>>
    %58 = vector.broadcast %57 : f32 to vector<62x62xf32>
    %59 = arith.mulf %1, %58 : vector<62x62xf32>
    %c1_40 = arith.constant 1 : index
    %c1_41 = arith.constant 1 : index
    %60 = memref.load %arg1[%c1_40, %c1_41] : memref<8x3xf32, #tpu.memory_space<smem>>
    %61 = vector.broadcast %60 : f32 to vector<62x62xf32>
    %62 = arith.mulf %3, %61 : vector<62x62xf32>
    %63 = arith.addf %59, %62 : vector<62x62xf32>
    %c1_42 = arith.constant 1 : index
    %c2_43 = arith.constant 2 : index
    %64 = memref.load %arg1[%c1_42, %c2_43] : memref<8x3xf32, #tpu.memory_space<smem>>
    %65 = vector.broadcast %64 : f32 to vector<62x62xf32>
    %66 = arith.mulf %5, %65 : vector<62x62xf32>
    %67 = arith.addf %63, %66 : vector<62x62xf32>
    %c1_44 = arith.constant 1 : index
    %68 = memref.load %arg2[%c1_44] : memref<8xf32, #tpu.memory_space<smem>>
    %69 = vector.broadcast %68 : f32 to vector<62x62xf32>
    %70 = arith.addf %67, %69 : vector<62x62xf32>
    %cst_45 = arith.constant 3.000000e+00 : f32
    %71 = vector.broadcast %cst_45 : f32 to vector<62x62xf32>
    %72 = arith.addf %70, %71 : vector<62x62xf32>
    %cst_46 = arith.constant 0.000000e+00 : f32
    %cst_47 = arith.constant 5.000000e+00 : f32
    %73 = vector.broadcast %cst_46 : f32 to vector<62x62xf32>
    %74 = arith.maximumf %73, %72 : vector<62x62xf32>
    %75 = vector.broadcast %cst_47 : f32 to vector<62x62xf32>
    %76 = arith.minimumf %75, %74 : vector<62x62xf32>
    %cst_48 = arith.constant 0.166666672 : f32
    %77 = vector.broadcast %cst_48 : f32 to vector<62x62xf32>
    %78 = arith.mulf %76, %77 : vector<62x62xf32>
    %c1_49 = arith.constant 1 : index
    %c1_50 = arith.constant 1 : index
    %c1_51 = arith.constant 1 : index
    %79 = vector.load %arg6[%c1_49, %c1_50, %c1_51] : memref<8x64x64xf32, #tpu.memory_space<vmem>>, vector<1x62x62xf32>
    %80 = vector.shape_cast %79 : vector<1x62x62xf32> to vector<62x62xf32>
    %81 = vector.shape_cast %78 : vector<62x62xf32> to vector<1x62x62xf32>
    tpu.vector_store %arg6[%c1_49, %c1_50, %c1_51], %81 {strides = array<i32>} : memref<8x64x64xf32, #tpu.memory_space<vmem>>, vector<1x62x62xf32>,
    %c2_52 = arith.constant 2 : index
    %82 = memref.load %arg2[%c2_52] : memref<8xf32, #tpu.memory_space<smem>>
    %83 = vector.broadcast %82 : f32 to vector<64x64xf32>
    %cst_53 = arith.constant 3.000000e+00 : f32
    %84 = vector.broadcast %cst_53 : f32 to vector<64x64xf32>
    %85 = arith.addf %83, %84 : vector<64x64xf32>
    %cst_54 = arith.constant 0.000000e+00 : f32
    %cst_55 = arith.constant 5.000000e+00 : f32
    %86 = vector.broadcast %cst_54 : f32 to vector<64x64xf32>
    %87 = arith.maximumf %86, %85 : vector<64x64xf32>
    %88 = vector.broadcast %cst_55 : f32 to vector<64x64xf32>
    %89 = arith.minimumf %88, %87 : vector<64x64xf32>
    %cst_56 = arith.constant 0.166666672 : f32
    %90 = vector.broadcast %cst_56 : f32 to vector<64x64xf32>
    %91 = arith.mulf %89, %90 : vector<64x64xf32>
    %c2_57 = arith.constant 2 : index
    %c0_58 = arith.constant 0 : index
    %c0_59 = arith.constant 0 : index
    %92 = vector.load %arg6[%c2_57, %c0_58, %c0_59] : memref<8x64x64xf32, #tpu.memory_space<vmem>>, vector<1x64x64xf32>
    %93 = vector.shape_cast %92 : vector<1x64x64xf32> to vector<64x64xf32>
    %94 = vector.shape_cast %91 : vector<64x64xf32> to vector<1x64x64xf32>
    tpu.vector_store %arg6[%c2_57, %c0_58, %c0_59], %94 {strides = array<i32>} : memref<8x64x64xf32, #tpu.memory_space<vmem>>, vector<1x64x64xf32>,
    %c2_60 = arith.constant 2 : index
    %c0_61 = arith.constant 0 : index
    %95 = memref.load %arg1[%c2_60, %c0_61] : memref<8x3xf32, #tpu.memory_space<smem>>
    %96 = vector.broadcast %95 : f32 to vector<62x62xf32>
    %97 = arith.mulf %1, %96 : vector<62x62xf32>
    %c2_62 = arith.constant 2 : index
    %c1_63 = arith.constant 1 : index
    %98 = memref.load %arg1[%c2_62, %c1_63] : memref<8x3xf32, #tpu.memory_space<smem>>
    %99 = vector.broadcast %98 : f32 to vector<62x62xf32>
    %100 = arith.mulf %3, %99 : vector<62x62xf32>
    %101 = arith.addf %97, %100 : vector<62x62xf32>
    %c2_64 = arith.constant 2 : index
    %c2_65 = arith.constant 2 : index
    %102 = memref.load %arg1[%c2_64, %c2_65] : memref<8x3xf32, #tpu.memory_space<smem>>
    %103 = vector.broadcast %102 : f32 to vector<62x62xf32>
    %104 = arith.mulf %5, %103 : vector<62x62xf32>
    %105 = arith.addf %101, %104 : vector<62x62xf32>
    %c2_66 = arith.constant 2 : index
    %106 = memref.load %arg2[%c2_66] : memref<8xf32, #tpu.memory_space<smem>>
    %107 = vector.broadcast %106 : f32 to vector<62x62xf32>
    %108 = arith.addf %105, %107 : vector<62x62xf32>
    %cst_67 = arith.constant 3.000000e+00 : f32
    %109 = vector.broadcast %cst_67 : f32 to vector<62x62xf32>
    %110 = arith.addf %108, %109 : vector<62x62xf32>
    %cst_68 = arith.constant 0.000000e+00 : f32
    %cst_69 = arith.constant 5.000000e+00 : f32
    %111 = vector.broadcast %cst_68 : f32 to vector<62x62xf32>
    %112 = arith.maximumf %111, %110 : vector<62x62xf32>
    %113 = vector.broadcast %cst_69 : f32 to vector<62x62xf32>
    %114 = arith.minimumf %113, %112 : vector<62x62xf32>
    %cst_70 = arith.constant 0.166666672 : f32
    %115 = vector.broadcast %cst_70 : f32 to vector<62x62xf32>
    %116 = arith.mulf %114, %115 : vector<62x62xf32>
    %c2_71 = arith.constant 2 : index
    %c1_72 = arith.constant 1 : index
    %c1_73 = arith.constant 1 : index
    %117 = vector.load %arg6[%c2_71, %c1_72, %c1_73] : memref<8x64x64xf32, #tpu.memory_space<vmem>>, vector<1x62x62xf32>
    %118 = vector.shape_cast %117 : vector<1x62x62xf32> to vector<62x62xf32>
    %119 = vector.shape_cast %116 : vector<62x62xf32> to vector<1x62x62xf32>
    tpu.vector_store %arg6[%c2_71, %c1_72, %c1_73], %119 {strides = array<i32>} : memref<8x64x64xf32, #tpu.memory_space<vmem>>, vector<1x62x62xf32>,
    %c3 = arith.constant 3 : index
    %120 = memref.load %arg2[%c3] : memref<8xf32, #tpu.memory_space<smem>>
    %121 = vector.broadcast %120 : f32 to vector<64x64xf32>
    %cst_74 = arith.constant 3.000000e+00 : f32
    %122 = vector.broadcast %cst_74 : f32 to vector<64x64xf32>
    %123 = arith.addf %121, %122 : vector<64x64xf32>
    %cst_75 = arith.constant 0.000000e+00 : f32
    %cst_76 = arith.constant 5.000000e+00 : f32
    %124 = vector.broadcast %cst_75 : f32 to vector<64x64xf32>
    %125 = arith.maximumf %124, %123 : vector<64x64xf32>
    %126 = vector.broadcast %cst_76 : f32 to vector<64x64xf32>
    %127 = arith.minimumf %126, %125 : vector<64x64xf32>
    %cst_77 = arith.constant 0.166666672 : f32
    %128 = vector.broadcast %cst_77 : f32 to vector<64x64xf32>
    %129 = arith.mulf %127, %128 : vector<64x64xf32>
    %c3_78 = arith.constant 3 : index
    %c0_79 = arith.constant 0 : index
    %c0_80 = arith.constant 0 : index
    %130 = vector.load %arg6[%c3_78, %c0_79, %c0_80] : memref<8x64x64xf32, #tpu.memory_space<vmem>>, vector<1x64x64xf32>
    %131 = vector.shape_cast %130 : vector<1x64x64xf32> to vector<64x64xf32>
    %132 = vector.shape_cast %129 : vector<64x64xf32> to vector<1x64x64xf32>
    tpu.vector_store %arg6[%c3_78, %c0_79, %c0_80], %132 {strides = array<i32>} : memref<8x64x64xf32, #tpu.memory_space<vmem>>, vector<1x64x64xf32>,
    %c3_81 = arith.constant 3 : index
    %c0_82 = arith.constant 0 : index
    %133 = memref.load %arg1[%c3_81, %c0_82] : memref<8x3xf32, #tpu.memory_space<smem>>
    %134 = vector.broadcast %133 : f32 to vector<62x62xf32>
    %135 = arith.mulf %1, %134 : vector<62x62xf32>
    %c3_83 = arith.constant 3 : index
    %c1_84 = arith.constant 1 : index
    %136 = memref.load %arg1[%c3_83, %c1_84] : memref<8x3xf32, #tpu.memory_space<smem>>
    %137 = vector.broadcast %136 : f32 to vector<62x62xf32>
    %138 = arith.mulf %3, %137 : vector<62x62xf32>
    %139 = arith.addf %135, %138 : vector<62x62xf32>
    %c3_85 = arith.constant 3 : index
    %c2_86 = arith.constant 2 : index
    %140 = memref.load %arg1[%c3_85, %c2_86] : memref<8x3xf32, #tpu.memory_space<smem>>
    %141 = vector.broadcast %140 : f32 to vector<62x62xf32>
    %142 = arith.mulf %5, %141 : vector<62x62xf32>
    %143 = arith.addf %139, %142 : vector<62x62xf32>
    %c3_87 = arith.constant 3 : index
    %144 = memref.load %arg2[%c3_87] : memref<8xf32, #tpu.memory_space<smem>>
    %145 = vector.broadcast %144 : f32 to vector<62x62xf32>
    %146 = arith.addf %143, %145 : vector<62x62xf32>
    %cst_88 = arith.constant 3.000000e+00 : f32
    %147 = vector.broadcast %cst_88 : f32 to vector<62x62xf32>
    %148 = arith.addf %146, %147 : vector<62x62xf32>
    %cst_89 = arith.constant 0.000000e+00 : f32
    %cst_90 = arith.constant 5.000000e+00 : f32
    %149 = vector.broadcast %cst_89 : f32 to vector<62x62xf32>
    %150 = arith.maximumf %149, %148 : vector<62x62xf32>
    %151 = vector.broadcast %cst_90 : f32 to vector<62x62xf32>
    %152 = arith.minimumf %151, %150 : vector<62x62xf32>
    %cst_91 = arith.constant 0.166666672 : f32
    %153 = vector.broadcast %cst_91 : f32 to vector<62x62xf32>
    %154 = arith.mulf %152, %153 : vector<62x62xf32>
    %c3_92 = arith.constant 3 : index
    %c1_93 = arith.constant 1 : index
    %c1_94 = arith.constant 1 : index
    %155 = vector.load %arg6[%c3_92, %c1_93, %c1_94] : memref<8x64x64xf32, #tpu.memory_space<vmem>>, vector<1x62x62xf32>
    %156 = vector.shape_cast %155 : vector<1x62x62xf32> to vector<62x62xf32>
    %157 = vector.shape_cast %154 : vector<62x62xf32> to vector<1x62x62xf32>
    tpu.vector_store %arg6[%c3_92, %c1_93, %c1_94], %157 {strides = array<i32>} : memref<8x64x64xf32, #tpu.memory_space<vmem>>, vector<1x62x62xf32>,
    %c4 = arith.constant 4 : index
    %158 = memref.load %arg2[%c4] : memref<8xf32, #tpu.memory_space<smem>>
    %159 = vector.broadcast %158 : f32 to vector<64x64xf32>
    %cst_95 = arith.constant 3.000000e+00 : f32
    %160 = vector.broadcast %cst_95 : f32 to vector<64x64xf32>
    %161 = arith.addf %159, %160 : vector<64x64xf32>
    %cst_96 = arith.constant 0.000000e+00 : f32
    %cst_97 = arith.constant 5.000000e+00 : f32
    %162 = vector.broadcast %cst_96 : f32 to vector<64x64xf32>
    %163 = arith.maximumf %162, %161 : vector<64x64xf32>
    %164 = vector.broadcast %cst_97 : f32 to vector<64x64xf32>
    %165 = arith.minimumf %164, %163 : vector<64x64xf32>
    %cst_98 = arith.constant 0.166666672 : f32
    %166 = vector.broadcast %cst_98 : f32 to vector<64x64xf32>
    %167 = arith.mulf %165, %166 : vector<64x64xf32>
    %c4_99 = arith.constant 4 : index
    %c0_100 = arith.constant 0 : index
    %c0_101 = arith.constant 0 : index
    %168 = vector.load %arg6[%c4_99, %c0_100, %c0_101] : memref<8x64x64xf32, #tpu.memory_space<vmem>>, vector<1x64x64xf32>
    %169 = vector.shape_cast %168 : vector<1x64x64xf32> to vector<64x64xf32>
    %170 = vector.shape_cast %167 : vector<64x64xf32> to vector<1x64x64xf32>
    tpu.vector_store %arg6[%c4_99, %c0_100, %c0_101], %170 {strides = array<i32>} : memref<8x64x64xf32, #tpu.memory_space<vmem>>, vector<1x64x64xf32>,
    %c4_102 = arith.constant 4 : index
    %c0_103 = arith.constant 0 : index
    %171 = memref.load %arg1[%c4_102, %c0_103] : memref<8x3xf32, #tpu.memory_space<smem>>
    %172 = vector.broadcast %171 : f32 to vector<62x62xf32>
    %173 = arith.mulf %1, %172 : vector<62x62xf32>
    %c4_104 = arith.constant 4 : index
    %c1_105 = arith.constant 1 : index
    %174 = memref.load %arg1[%c4_104, %c1_105] : memref<8x3xf32, #tpu.memory_space<smem>>
    %175 = vector.broadcast %174 : f32 to vector<62x62xf32>
    %176 = arith.mulf %3, %175 : vector<62x62xf32>
    %177 = arith.addf %173, %176 : vector<62x62xf32>
    %c4_106 = arith.constant 4 : index
    %c2_107 = arith.constant 2 : index
    %178 = memref.load %arg1[%c4_106, %c2_107] : memref<8x3xf32, #tpu.memory_space<smem>>
    %179 = vector.broadcast %178 : f32 to vector<62x62xf32>
    %180 = arith.mulf %5, %179 : vector<62x62xf32>
    %181 = arith.addf %177, %180 : vector<62x62xf32>
    %c4_108 = arith.constant 4 : index
    %182 = memref.load %arg2[%c4_108] : memref<8xf32, #tpu.memory_space<smem>>
    %183 = vector.broadcast %182 : f32 to vector<62x62xf32>
    %184 = arith.addf %181, %183 : vector<62x62xf32>
    %cst_109 = arith.constant 3.000000e+00 : f32
    %185 = vector.broadcast %cst_109 : f32 to vector<62x62xf32>
    %186 = arith.addf %184, %185 : vector<62x62xf32>
    %cst_110 = arith.constant 0.000000e+00 : f32
    %cst_111 = arith.constant 5.000000e+00 : f32
    %187 = vector.broadcast %cst_110 : f32 to vector<62x62xf32>
    %188 = arith.maximumf %187, %186 : vector<62x62xf32>
    %189 = vector.broadcast %cst_111 : f32 to vector<62x62xf32>
    %190 = arith.minimumf %189, %188 : vector<62x62xf32>
    %cst_112 = arith.constant 0.166666672 : f32
    %191 = vector.broadcast %cst_112 : f32 to vector<62x62xf32>
    %192 = arith.mulf %190, %191 : vector<62x62xf32>
    %c4_113 = arith.constant 4 : index
    %c1_114 = arith.constant 1 : index
    %c1_115 = arith.constant 1 : index
    %193 = vector.load %arg6[%c4_113, %c1_114, %c1_115] : memref<8x64x64xf32, #tpu.memory_space<vmem>>, vector<1x62x62xf32>
    %194 = vector.shape_cast %193 : vector<1x62x62xf32> to vector<62x62xf32>
    %195 = vector.shape_cast %192 : vector<62x62xf32> to vector<1x62x62xf32>
    tpu.vector_store %arg6[%c4_113, %c1_114, %c1_115], %195 {strides = array<i32>} : memref<8x64x64xf32, #tpu.memory_space<vmem>>, vector<1x62x62xf32>,
    %c5 = arith.constant 5 : index
    %196 = memref.load %arg2[%c5] : memref<8xf32, #tpu.memory_space<smem>>
    %197 = vector.broadcast %196 : f32 to vector<64x64xf32>
    %cst_116 = arith.constant 3.000000e+00 : f32
    %198 = vector.broadcast %cst_116 : f32 to vector<64x64xf32>
    %199 = arith.addf %197, %198 : vector<64x64xf32>
    %cst_117 = arith.constant 0.000000e+00 : f32
    %cst_118 = arith.constant 5.000000e+00 : f32
    %200 = vector.broadcast %cst_117 : f32 to vector<64x64xf32>
    %201 = arith.maximumf %200, %199 : vector<64x64xf32>
    %202 = vector.broadcast %cst_118 : f32 to vector<64x64xf32>
    %203 = arith.minimumf %202, %201 : vector<64x64xf32>
    %cst_119 = arith.constant 0.166666672 : f32
    %204 = vector.broadcast %cst_119 : f32 to vector<64x64xf32>
    %205 = arith.mulf %203, %204 : vector<64x64xf32>
    %c5_120 = arith.constant 5 : index
    %c0_121 = arith.constant 0 : index
    %c0_122 = arith.constant 0 : index
    %206 = vector.load %arg6[%c5_120, %c0_121, %c0_122] : memref<8x64x64xf32, #tpu.memory_space<vmem>>, vector<1x64x64xf32>
    %207 = vector.shape_cast %206 : vector<1x64x64xf32> to vector<64x64xf32>
    %208 = vector.shape_cast %205 : vector<64x64xf32> to vector<1x64x64xf32>
    tpu.vector_store %arg6[%c5_120, %c0_121, %c0_122], %208 {strides = array<i32>} : memref<8x64x64xf32, #tpu.memory_space<vmem>>, vector<1x64x64xf32>,
    %c5_123 = arith.constant 5 : index
    %c0_124 = arith.constant 0 : index
    %209 = memref.load %arg1[%c5_123, %c0_124] : memref<8x3xf32, #tpu.memory_space<smem>>
    %210 = vector.broadcast %209 : f32 to vector<62x62xf32>
    %211 = arith.mulf %1, %210 : vector<62x62xf32>
    %c5_125 = arith.constant 5 : index
    %c1_126 = arith.constant 1 : index
    %212 = memref.load %arg1[%c5_125, %c1_126] : memref<8x3xf32, #tpu.memory_space<smem>>
    %213 = vector.broadcast %212 : f32 to vector<62x62xf32>
    %214 = arith.mulf %3, %213 : vector<62x62xf32>
    %215 = arith.addf %211, %214 : vector<62x62xf32>
    %c5_127 = arith.constant 5 : index
    %c2_128 = arith.constant 2 : index
    %216 = memref.load %arg1[%c5_127, %c2_128] : memref<8x3xf32, #tpu.memory_space<smem>>
    %217 = vector.broadcast %216 : f32 to vector<62x62xf32>
    %218 = arith.mulf %5, %217 : vector<62x62xf32>
    %219 = arith.addf %215, %218 : vector<62x62xf32>
    %c5_129 = arith.constant 5 : index
    %220 = memref.load %arg2[%c5_129] : memref<8xf32, #tpu.memory_space<smem>>
    %221 = vector.broadcast %220 : f32 to vector<62x62xf32>
    %222 = arith.addf %219, %221 : vector<62x62xf32>
    %cst_130 = arith.constant 3.000000e+00 : f32
    %223 = vector.broadcast %cst_130 : f32 to vector<62x62xf32>
    %224 = arith.addf %222, %223 : vector<62x62xf32>
    %cst_131 = arith.constant 0.000000e+00 : f32
    %cst_132 = arith.constant 5.000000e+00 : f32
    %225 = vector.broadcast %cst_131 : f32 to vector<62x62xf32>
    %226 = arith.maximumf %225, %224 : vector<62x62xf32>
    %227 = vector.broadcast %cst_132 : f32 to vector<62x62xf32>
    %228 = arith.minimumf %227, %226 : vector<62x62xf32>
    %cst_133 = arith.constant 0.166666672 : f32
    %229 = vector.broadcast %cst_133 : f32 to vector<62x62xf32>
    %230 = arith.mulf %228, %229 : vector<62x62xf32>
    %c5_134 = arith.constant 5 : index
    %c1_135 = arith.constant 1 : index
    %c1_136 = arith.constant 1 : index
    %231 = vector.load %arg6[%c5_134, %c1_135, %c1_136] : memref<8x64x64xf32, #tpu.memory_space<vmem>>, vector<1x62x62xf32>
    %232 = vector.shape_cast %231 : vector<1x62x62xf32> to vector<62x62xf32>
    %233 = vector.shape_cast %230 : vector<62x62xf32> to vector<1x62x62xf32>
    tpu.vector_store %arg6[%c5_134, %c1_135, %c1_136], %233 {strides = array<i32>} : memref<8x64x64xf32, #tpu.memory_space<vmem>>, vector<1x62x62xf32>,
    %c6 = arith.constant 6 : index
    %234 = memref.load %arg2[%c6] : memref<8xf32, #tpu.memory_space<smem>>
    %235 = vector.broadcast %234 : f32 to vector<64x64xf32>
    %cst_137 = arith.constant 3.000000e+00 : f32
    %236 = vector.broadcast %cst_137 : f32 to vector<64x64xf32>
    %237 = arith.addf %235, %236 : vector<64x64xf32>
    %cst_138 = arith.constant 0.000000e+00 : f32
    %cst_139 = arith.constant 5.000000e+00 : f32
    %238 = vector.broadcast %cst_138 : f32 to vector<64x64xf32>
    %239 = arith.maximumf %238, %237 : vector<64x64xf32>
    %240 = vector.broadcast %cst_139 : f32 to vector<64x64xf32>
    %241 = arith.minimumf %240, %239 : vector<64x64xf32>
    %cst_140 = arith.constant 0.166666672 : f32
    %242 = vector.broadcast %cst_140 : f32 to vector<64x64xf32>
    %243 = arith.mulf %241, %242 : vector<64x64xf32>
    %c6_141 = arith.constant 6 : index
    %c0_142 = arith.constant 0 : index
    %c0_143 = arith.constant 0 : index
    %244 = vector.load %arg6[%c6_141, %c0_142, %c0_143] : memref<8x64x64xf32, #tpu.memory_space<vmem>>, vector<1x64x64xf32>
    %245 = vector.shape_cast %244 : vector<1x64x64xf32> to vector<64x64xf32>
    %246 = vector.shape_cast %243 : vector<64x64xf32> to vector<1x64x64xf32>
    tpu.vector_store %arg6[%c6_141, %c0_142, %c0_143], %246 {strides = array<i32>} : memref<8x64x64xf32, #tpu.memory_space<vmem>>, vector<1x64x64xf32>,
    %c6_144 = arith.constant 6 : index
    %c0_145 = arith.constant 0 : index
    %247 = memref.load %arg1[%c6_144, %c0_145] : memref<8x3xf32, #tpu.memory_space<smem>>
    %248 = vector.broadcast %247 : f32 to vector<62x62xf32>
    %249 = arith.mulf %1, %248 : vector<62x62xf32>
    %c6_146 = arith.constant 6 : index
    %c1_147 = arith.constant 1 : index
    %250 = memref.load %arg1[%c6_146, %c1_147] : memref<8x3xf32, #tpu.memory_space<smem>>
    %251 = vector.broadcast %250 : f32 to vector<62x62xf32>
    %252 = arith.mulf %3, %251 : vector<62x62xf32>
    %253 = arith.addf %249, %252 : vector<62x62xf32>
    %c6_148 = arith.constant 6 : index
    %c2_149 = arith.constant 2 : index
    %254 = memref.load %arg1[%c6_148, %c2_149] : memref<8x3xf32, #tpu.memory_space<smem>>
    %255 = vector.broadcast %254 : f32 to vector<62x62xf32>
    %256 = arith.mulf %5, %255 : vector<62x62xf32>
    %257 = arith.addf %253, %256 : vector<62x62xf32>
    %c6_150 = arith.constant 6 : index
    %258 = memref.load %arg2[%c6_150] : memref<8xf32, #tpu.memory_space<smem>>
    %259 = vector.broadcast %258 : f32 to vector<62x62xf32>
    %260 = arith.addf %257, %259 : vector<62x62xf32>
    %cst_151 = arith.constant 3.000000e+00 : f32
    %261 = vector.broadcast %cst_151 : f32 to vector<62x62xf32>
    %262 = arith.addf %260, %261 : vector<62x62xf32>
    %cst_152 = arith.constant 0.000000e+00 : f32
    %cst_153 = arith.constant 5.000000e+00 : f32
    %263 = vector.broadcast %cst_152 : f32 to vector<62x62xf32>
    %264 = arith.maximumf %263, %262 : vector<62x62xf32>
    %265 = vector.broadcast %cst_153 : f32 to vector<62x62xf32>
    %266 = arith.minimumf %265, %264 : vector<62x62xf32>
    %cst_154 = arith.constant 0.166666672 : f32
    %267 = vector.broadcast %cst_154 : f32 to vector<62x62xf32>
    %268 = arith.mulf %266, %267 : vector<62x62xf32>
    %c6_155 = arith.constant 6 : index
    %c1_156 = arith.constant 1 : index
    %c1_157 = arith.constant 1 : index
    %269 = vector.load %arg6[%c6_155, %c1_156, %c1_157] : memref<8x64x64xf32, #tpu.memory_space<vmem>>, vector<1x62x62xf32>
    %270 = vector.shape_cast %269 : vector<1x62x62xf32> to vector<62x62xf32>
    %271 = vector.shape_cast %268 : vector<62x62xf32> to vector<1x62x62xf32>
    tpu.vector_store %arg6[%c6_155, %c1_156, %c1_157], %271 {strides = array<i32>} : memref<8x64x64xf32, #tpu.memory_space<vmem>>, vector<1x62x62xf32>,
    %c7 = arith.constant 7 : index
    %272 = memref.load %arg2[%c7] : memref<8xf32, #tpu.memory_space<smem>>
    %273 = vector.broadcast %272 : f32 to vector<64x64xf32>
    %cst_158 = arith.constant 3.000000e+00 : f32
    %274 = vector.broadcast %cst_158 : f32 to vector<64x64xf32>
    %275 = arith.addf %273, %274 : vector<64x64xf32>
    %cst_159 = arith.constant 0.000000e+00 : f32
    %cst_160 = arith.constant 5.000000e+00 : f32
    %276 = vector.broadcast %cst_159 : f32 to vector<64x64xf32>
    %277 = arith.maximumf %276, %275 : vector<64x64xf32>
    %278 = vector.broadcast %cst_160 : f32 to vector<64x64xf32>
    %279 = arith.minimumf %278, %277 : vector<64x64xf32>
    %cst_161 = arith.constant 0.166666672 : f32
    %280 = vector.broadcast %cst_161 : f32 to vector<64x64xf32>
    %281 = arith.mulf %279, %280 : vector<64x64xf32>
    %c7_162 = arith.constant 7 : index
    %c0_163 = arith.constant 0 : index
    %c0_164 = arith.constant 0 : index
    %282 = vector.load %arg6[%c7_162, %c0_163, %c0_164] : memref<8x64x64xf32, #tpu.memory_space<vmem>>, vector<1x64x64xf32>
    %283 = vector.shape_cast %282 : vector<1x64x64xf32> to vector<64x64xf32>
    %284 = vector.shape_cast %281 : vector<64x64xf32> to vector<1x64x64xf32>
    tpu.vector_store %arg6[%c7_162, %c0_163, %c0_164], %284 {strides = array<i32>} : memref<8x64x64xf32, #tpu.memory_space<vmem>>, vector<1x64x64xf32>,
    %c7_165 = arith.constant 7 : index
    %c0_166 = arith.constant 0 : index
    %285 = memref.load %arg1[%c7_165, %c0_166] : memref<8x3xf32, #tpu.memory_space<smem>>
    %286 = vector.broadcast %285 : f32 to vector<62x62xf32>
    %287 = arith.mulf %1, %286 : vector<62x62xf32>
    %c7_167 = arith.constant 7 : index
    %c1_168 = arith.constant 1 : index
    %288 = memref.load %arg1[%c7_167, %c1_168] : memref<8x3xf32, #tpu.memory_space<smem>>
    %289 = vector.broadcast %288 : f32 to vector<62x62xf32>
    %290 = arith.mulf %3, %289 : vector<62x62xf32>
    %291 = arith.addf %287, %290 : vector<62x62xf32>
    %c7_169 = arith.constant 7 : index
    %c2_170 = arith.constant 2 : index
    %292 = memref.load %arg1[%c7_169, %c2_170] : memref<8x3xf32, #tpu.memory_space<smem>>
    %293 = vector.broadcast %292 : f32 to vector<62x62xf32>
    %294 = arith.mulf %5, %293 : vector<62x62xf32>
    %295 = arith.addf %291, %294 : vector<62x62xf32>
    %c7_171 = arith.constant 7 : index
    %296 = memref.load %arg2[%c7_171] : memref<8xf32, #tpu.memory_space<smem>>
    %297 = vector.broadcast %296 : f32 to vector<62x62xf32>
    %298 = arith.addf %295, %297 : vector<62x62xf32>
    %cst_172 = arith.constant 3.000000e+00 : f32
    %299 = vector.broadcast %cst_172 : f32 to vector<62x62xf32>
    %300 = arith.addf %298, %299 : vector<62x62xf32>
    %cst_173 = arith.constant 0.000000e+00 : f32
    %cst_174 = arith.constant 5.000000e+00 : f32
    %301 = vector.broadcast %cst_173 : f32 to vector<62x62xf32>
    %302 = arith.maximumf %301, %300 : vector<62x62xf32>
    %303 = vector.broadcast %cst_174 : f32 to vector<62x62xf32>
    %304 = arith.minimumf %303, %302 : vector<62x62xf32>
    %cst_175 = arith.constant 0.166666672 : f32
    %305 = vector.broadcast %cst_175 : f32 to vector<62x62xf32>
    %306 = arith.mulf %304, %305 : vector<62x62xf32>
    %c7_176 = arith.constant 7 : index
    %c1_177 = arith.constant 1 : index
    %c1_178 = arith.constant 1 : index
    %307 = vector.load %arg6[%c7_176, %c1_177, %c1_178] : memref<8x64x64xf32, #tpu.memory_space<vmem>>, vector<1x62x62xf32>
    %308 = vector.shape_cast %307 : vector<1x62x62xf32> to vector<62x62xf32>
    %309 = vector.shape_cast %306 : vector<62x62xf32> to vector<1x62x62xf32>
    tpu.vector_store %arg6[%c7_176, %c1_177, %c1_178], %309 {strides = array<i32>} : memref<8x64x64xf32, #tpu.memory_space<vmem>>, vector<1x62x62xf32>,
    %c0_179 = arith.constant 0 : index
    %c0_180 = arith.constant 0 : index
    %c0_181 = arith.constant 0 : index
    %310 = vector.load %arg6[%c0_179, %c0_180, %c0_181] : memref<8x64x64xf32, #tpu.memory_space<vmem>>, vector<1x64x64xf32>
    %311 = vector.shape_cast %310 : vector<1x64x64xf32> to vector<64x64xf32>
    %c1_182 = arith.constant 1 : index
    %c0_183 = arith.constant 0 : index
    %c0_184 = arith.constant 0 : index
    %312 = vector.load %arg6[%c1_182, %c0_183, %c0_184] : memref<8x64x64xf32, #tpu.memory_space<vmem>>, vector<1x64x64xf32>
    %313 = vector.shape_cast %312 : vector<1x64x64xf32> to vector<64x64xf32>
    %c2_185 = arith.constant 2 : index
    %c0_186 = arith.constant 0 : index
    %c0_187 = arith.constant 0 : index
    %314 = vector.load %arg6[%c2_185, %c0_186, %c0_187] : memref<8x64x64xf32, #tpu.memory_space<vmem>>, vector<1x64x64xf32>
    %315 = vector.shape_cast %314 : vector<1x64x64xf32> to vector<64x64xf32>
    %c3_188 = arith.constant 3 : index
    %c0_189 = arith.constant 0 : index
    %c0_190 = arith.constant 0 : index
    %316 = vector.load %arg6[%c3_188, %c0_189, %c0_190] : memref<8x64x64xf32, #tpu.memory_space<vmem>>, vector<1x64x64xf32>
    %317 = vector.shape_cast %316 : vector<1x64x64xf32> to vector<64x64xf32>
    %c4_191 = arith.constant 4 : index
    %c0_192 = arith.constant 0 : index
    %c0_193 = arith.constant 0 : index
    %318 = vector.load %arg6[%c4_191, %c0_192, %c0_193] : memref<8x64x64xf32, #tpu.memory_space<vmem>>, vector<1x64x64xf32>
    %319 = vector.shape_cast %318 : vector<1x64x64xf32> to vector<64x64xf32>
    %c5_194 = arith.constant 5 : index
    %c0_195 = arith.constant 0 : index
    %c0_196 = arith.constant 0 : index
    %320 = vector.load %arg6[%c5_194, %c0_195, %c0_196] : memref<8x64x64xf32, #tpu.memory_space<vmem>>, vector<1x64x64xf32>
    %321 = vector.shape_cast %320 : vector<1x64x64xf32> to vector<64x64xf32>
    %c6_197 = arith.constant 6 : index
    %c0_198 = arith.constant 0 : index
    %c0_199 = arith.constant 0 : index
    %322 = vector.load %arg6[%c6_197, %c0_198, %c0_199] : memref<8x64x64xf32, #tpu.memory_space<vmem>>, vector<1x64x64xf32>
    %323 = vector.shape_cast %322 : vector<1x64x64xf32> to vector<64x64xf32>
    %c7_200 = arith.constant 7 : index
    %c0_201 = arith.constant 0 : index
    %c0_202 = arith.constant 0 : index
    %324 = vector.load %arg6[%c7_200, %c0_201, %c0_202] : memref<8x64x64xf32, #tpu.memory_space<vmem>>, vector<1x64x64xf32>
    %325 = vector.shape_cast %324 : vector<1x64x64xf32> to vector<64x64xf32>
    %c0_203 = arith.constant 0 : index
    %326 = memref.load %arg4[%c0_203] : memref<8xf32, #tpu.memory_space<smem>>
    %327 = vector.broadcast %326 : f32 to vector<66x66xf32>
    %328 = math.absf %327 : vector<66x66xf32>
    %c0_204 = arith.constant 0 : index
    %c0_205 = arith.constant 0 : index
    %c0_206 = arith.constant 0 : index
    %c0_207 = arith.constant 0 : index
    %329 = vector.load %arg5[%c0_204, %c0_205, %c0_206, %c0_207] : memref<1x8x66x66xf32, #tpu.memory_space<vmem>>, vector<1x1x66x66xf32>
    %330 = vector.shape_cast %329 : vector<1x1x66x66xf32> to vector<66x66xf32>
    %331 = vector.shape_cast %328 : vector<66x66xf32> to vector<1x1x66x66xf32>
    tpu.vector_store %arg5[%c0_204, %c0_205, %c0_206, %c0_207], %331 {strides = array<i32>} : memref<1x8x66x66xf32, #tpu.memory_space<vmem>>, vector<1x1x66x66xf32>,
    %c0_208 = arith.constant 0 : index
    %c0_209 = arith.constant 0 : index
    %332 = memref.load %arg3[%c0_208, %c0_209] : memref<8x8xf32, #tpu.memory_space<smem>>
    %333 = vector.broadcast %332 : f32 to vector<64x64xf32>
    %334 = arith.mulf %311, %333 : vector<64x64xf32>
    %c0_210 = arith.constant 0 : index
    %c1_211 = arith.constant 1 : index
    %335 = memref.load %arg3[%c0_210, %c1_211] : memref<8x8xf32, #tpu.memory_space<smem>>
    %336 = vector.broadcast %335 : f32 to vector<64x64xf32>
    %337 = arith.mulf %313, %336 : vector<64x64xf32>
    %338 = arith.addf %334, %337 : vector<64x64xf32>
    %c0_212 = arith.constant 0 : index
    %c2_213 = arith.constant 2 : index
    %339 = memref.load %arg3[%c0_212, %c2_213] : memref<8x8xf32, #tpu.memory_space<smem>>
    %340 = vector.broadcast %339 : f32 to vector<64x64xf32>
    %341 = arith.mulf %315, %340 : vector<64x64xf32>
    %342 = arith.addf %338, %341 : vector<64x64xf32>
    %c0_214 = arith.constant 0 : index
    %c3_215 = arith.constant 3 : index
    %343 = memref.load %arg3[%c0_214, %c3_215] : memref<8x8xf32, #tpu.memory_space<smem>>
    %344 = vector.broadcast %343 : f32 to vector<64x64xf32>
    %345 = arith.mulf %317, %344 : vector<64x64xf32>
    %346 = arith.addf %342, %345 : vector<64x64xf32>
    %c0_216 = arith.constant 0 : index
    %c4_217 = arith.constant 4 : index
    %347 = memref.load %arg3[%c0_216, %c4_217] : memref<8x8xf32, #tpu.memory_space<smem>>
    %348 = vector.broadcast %347 : f32 to vector<64x64xf32>
    %349 = arith.mulf %319, %348 : vector<64x64xf32>
    %350 = arith.addf %346, %349 : vector<64x64xf32>
    %c0_218 = arith.constant 0 : index
    %c5_219 = arith.constant 5 : index
    %351 = memref.load %arg3[%c0_218, %c5_219] : memref<8x8xf32, #tpu.memory_space<smem>>
    %352 = vector.broadcast %351 : f32 to vector<64x64xf32>
    %353 = arith.mulf %321, %352 : vector<64x64xf32>
    %354 = arith.addf %350, %353 : vector<64x64xf32>
    %c0_220 = arith.constant 0 : index
    %c6_221 = arith.constant 6 : index
    %355 = memref.load %arg3[%c0_220, %c6_221] : memref<8x8xf32, #tpu.memory_space<smem>>
    %356 = vector.broadcast %355 : f32 to vector<64x64xf32>
    %357 = arith.mulf %323, %356 : vector<64x64xf32>
    %358 = arith.addf %354, %357 : vector<64x64xf32>
    %c0_222 = arith.constant 0 : index
    %c7_223 = arith.constant 7 : index
    %359 = memref.load %arg3[%c0_222, %c7_223] : memref<8x8xf32, #tpu.memory_space<smem>>
    %360 = vector.broadcast %359 : f32 to vector<64x64xf32>
    %361 = arith.mulf %325, %360 : vector<64x64xf32>
    %362 = arith.addf %358, %361 : vector<64x64xf32>
    %c0_224 = arith.constant 0 : index
    %363 = memref.load %arg4[%c0_224] : memref<8xf32, #tpu.memory_space<smem>>
    %364 = vector.broadcast %363 : f32 to vector<64x64xf32>
    %365 = arith.addf %362, %364 : vector<64x64xf32>
    %366 = math.absf %365 : vector<64x64xf32>
    %c0_225 = arith.constant 0 : index
    %c0_226 = arith.constant 0 : index
    %c1_227 = arith.constant 1 : index
    %c1_228 = arith.constant 1 : index
    %367 = vector.load %arg5[%c0_225, %c0_226, %c1_227, %c1_228] : memref<1x8x66x66xf32, #tpu.memory_space<vmem>>, vector<1x1x64x64xf32>
    %368 = vector.shape_cast %367 : vector<1x1x64x64xf32> to vector<64x64xf32>
    %369 = vector.shape_cast %366 : vector<64x64xf32> to vector<1x1x64x64xf32>
    tpu.vector_store %arg5[%c0_225, %c0_226, %c1_227, %c1_228], %369 {strides = array<i32>} : memref<1x8x66x66xf32, #tpu.memory_space<vmem>>, vector<1x1x64x64xf32>,
    %c1_229 = arith.constant 1 : index
    %370 = memref.load %arg4[%c1_229] : memref<8xf32, #tpu.memory_space<smem>>
    %371 = vector.broadcast %370 : f32 to vector<66x66xf32>
    %372 = math.absf %371 : vector<66x66xf32>
    %c0_230 = arith.constant 0 : index
    %c1_231 = arith.constant 1 : index
    %c0_232 = arith.constant 0 : index
    %c0_233 = arith.constant 0 : index
    %373 = vector.load %arg5[%c0_230, %c1_231, %c0_232, %c0_233] : memref<1x8x66x66xf32, #tpu.memory_space<vmem>>, vector<1x1x66x66xf32>
    %374 = vector.shape_cast %373 : vector<1x1x66x66xf32> to vector<66x66xf32>
    %375 = vector.shape_cast %372 : vector<66x66xf32> to vector<1x1x66x66xf32>
    tpu.vector_store %arg5[%c0_230, %c1_231, %c0_232, %c0_233], %375 {strides = array<i32>} : memref<1x8x66x66xf32, #tpu.memory_space<vmem>>, vector<1x1x66x66xf32>,
    %c1_234 = arith.constant 1 : index
    %c0_235 = arith.constant 0 : index
    %376 = memref.load %arg3[%c1_234, %c0_235] : memref<8x8xf32, #tpu.memory_space<smem>>
    %377 = vector.broadcast %376 : f32 to vector<64x64xf32>
    %378 = arith.mulf %311, %377 : vector<64x64xf32>
    %c1_236 = arith.constant 1 : index
    %c1_237 = arith.constant 1 : index
    %379 = memref.load %arg3[%c1_236, %c1_237] : memref<8x8xf32, #tpu.memory_space<smem>>
    %380 = vector.broadcast %379 : f32 to vector<64x64xf32>
    %381 = arith.mulf %313, %380 : vector<64x64xf32>
    %382 = arith.addf %378, %381 : vector<64x64xf32>
    %c1_238 = arith.constant 1 : index
    %c2_239 = arith.constant 2 : index
    %383 = memref.load %arg3[%c1_238, %c2_239] : memref<8x8xf32, #tpu.memory_space<smem>>
    %384 = vector.broadcast %383 : f32 to vector<64x64xf32>
    %385 = arith.mulf %315, %384 : vector<64x64xf32>
    %386 = arith.addf %382, %385 : vector<64x64xf32>
    %c1_240 = arith.constant 1 : index
    %c3_241 = arith.constant 3 : index
    %387 = memref.load %arg3[%c1_240, %c3_241] : memref<8x8xf32, #tpu.memory_space<smem>>
    %388 = vector.broadcast %387 : f32 to vector<64x64xf32>
    %389 = arith.mulf %317, %388 : vector<64x64xf32>
    %390 = arith.addf %386, %389 : vector<64x64xf32>
    %c1_242 = arith.constant 1 : index
    %c4_243 = arith.constant 4 : index
    %391 = memref.load %arg3[%c1_242, %c4_243] : memref<8x8xf32, #tpu.memory_space<smem>>
    %392 = vector.broadcast %391 : f32 to vector<64x64xf32>
    %393 = arith.mulf %319, %392 : vector<64x64xf32>
    %394 = arith.addf %390, %393 : vector<64x64xf32>
    %c1_244 = arith.constant 1 : index
    %c5_245 = arith.constant 5 : index
    %395 = memref.load %arg3[%c1_244, %c5_245] : memref<8x8xf32, #tpu.memory_space<smem>>
    %396 = vector.broadcast %395 : f32 to vector<64x64xf32>
    %397 = arith.mulf %321, %396 : vector<64x64xf32>
    %398 = arith.addf %394, %397 : vector<64x64xf32>
    %c1_246 = arith.constant 1 : index
    %c6_247 = arith.constant 6 : index
    %399 = memref.load %arg3[%c1_246, %c6_247] : memref<8x8xf32, #tpu.memory_space<smem>>
    %400 = vector.broadcast %399 : f32 to vector<64x64xf32>
    %401 = arith.mulf %323, %400 : vector<64x64xf32>
    %402 = arith.addf %398, %401 : vector<64x64xf32>
    %c1_248 = arith.constant 1 : index
    %c7_249 = arith.constant 7 : index
    %403 = memref.load %arg3[%c1_248, %c7_249] : memref<8x8xf32, #tpu.memory_space<smem>>
    %404 = vector.broadcast %403 : f32 to vector<64x64xf32>
    %405 = arith.mulf %325, %404 : vector<64x64xf32>
    %406 = arith.addf %402, %405 : vector<64x64xf32>
    %c1_250 = arith.constant 1 : index
    %407 = memref.load %arg4[%c1_250] : memref<8xf32, #tpu.memory_space<smem>>
    %408 = vector.broadcast %407 : f32 to vector<64x64xf32>
    %409 = arith.addf %406, %408 : vector<64x64xf32>
    %410 = math.absf %409 : vector<64x64xf32>
    %c0_251 = arith.constant 0 : index
    %c1_252 = arith.constant 1 : index
    %c1_253 = arith.constant 1 : index
    %c1_254 = arith.constant 1 : index
    %411 = vector.load %arg5[%c0_251, %c1_252, %c1_253, %c1_254] : memref<1x8x66x66xf32, #tpu.memory_space<vmem>>, vector<1x1x64x64xf32>
    %412 = vector.shape_cast %411 : vector<1x1x64x64xf32> to vector<64x64xf32>
    %413 = vector.shape_cast %410 : vector<64x64xf32> to vector<1x1x64x64xf32>
    tpu.vector_store %arg5[%c0_251, %c1_252, %c1_253, %c1_254], %413 {strides = array<i32>} : memref<1x8x66x66xf32, #tpu.memory_space<vmem>>, vector<1x1x64x64xf32>,
    %c2_255 = arith.constant 2 : index
    %414 = memref.load %arg4[%c2_255] : memref<8xf32, #tpu.memory_space<smem>>
    %415 = vector.broadcast %414 : f32 to vector<66x66xf32>
    %416 = math.absf %415 : vector<66x66xf32>
    %c0_256 = arith.constant 0 : index
    %c2_257 = arith.constant 2 : index
    %c0_258 = arith.constant 0 : index
    %c0_259 = arith.constant 0 : index
    %417 = vector.load %arg5[%c0_256, %c2_257, %c0_258, %c0_259] : memref<1x8x66x66xf32, #tpu.memory_space<vmem>>, vector<1x1x66x66xf32>
    %418 = vector.shape_cast %417 : vector<1x1x66x66xf32> to vector<66x66xf32>
    %419 = vector.shape_cast %416 : vector<66x66xf32> to vector<1x1x66x66xf32>
    tpu.vector_store %arg5[%c0_256, %c2_257, %c0_258, %c0_259], %419 {strides = array<i32>} : memref<1x8x66x66xf32, #tpu.memory_space<vmem>>, vector<1x1x66x66xf32>,
    %c2_260 = arith.constant 2 : index
    %c0_261 = arith.constant 0 : index
    %420 = memref.load %arg3[%c2_260, %c0_261] : memref<8x8xf32, #tpu.memory_space<smem>>
    %421 = vector.broadcast %420 : f32 to vector<64x64xf32>
    %422 = arith.mulf %311, %421 : vector<64x64xf32>
    %c2_262 = arith.constant 2 : index
    %c1_263 = arith.constant 1 : index
    %423 = memref.load %arg3[%c2_262, %c1_263] : memref<8x8xf32, #tpu.memory_space<smem>>
    %424 = vector.broadcast %423 : f32 to vector<64x64xf32>
    %425 = arith.mulf %313, %424 : vector<64x64xf32>
    %426 = arith.addf %422, %425 : vector<64x64xf32>
    %c2_264 = arith.constant 2 : index
    %c2_265 = arith.constant 2 : index
    %427 = memref.load %arg3[%c2_264, %c2_265] : memref<8x8xf32, #tpu.memory_space<smem>>
    %428 = vector.broadcast %427 : f32 to vector<64x64xf32>
    %429 = arith.mulf %315, %428 : vector<64x64xf32>
    %430 = arith.addf %426, %429 : vector<64x64xf32>
    %c2_266 = arith.constant 2 : index
    %c3_267 = arith.constant 3 : index
    %431 = memref.load %arg3[%c2_266, %c3_267] : memref<8x8xf32, #tpu.memory_space<smem>>
    %432 = vector.broadcast %431 : f32 to vector<64x64xf32>
    %433 = arith.mulf %317, %432 : vector<64x64xf32>
    %434 = arith.addf %430, %433 : vector<64x64xf32>
    %c2_268 = arith.constant 2 : index
    %c4_269 = arith.constant 4 : index
    %435 = memref.load %arg3[%c2_268, %c4_269] : memref<8x8xf32, #tpu.memory_space<smem>>
    %436 = vector.broadcast %435 : f32 to vector<64x64xf32>
    %437 = arith.mulf %319, %436 : vector<64x64xf32>
    %438 = arith.addf %434, %437 : vector<64x64xf32>
    %c2_270 = arith.constant 2 : index
    %c5_271 = arith.constant 5 : index
    %439 = memref.load %arg3[%c2_270, %c5_271] : memref<8x8xf32, #tpu.memory_space<smem>>
    %440 = vector.broadcast %439 : f32 to vector<64x64xf32>
    %441 = arith.mulf %321, %440 : vector<64x64xf32>
    %442 = arith.addf %438, %441 : vector<64x64xf32>
    %c2_272 = arith.constant 2 : index
    %c6_273 = arith.constant 6 : index
    %443 = memref.load %arg3[%c2_272, %c6_273] : memref<8x8xf32, #tpu.memory_space<smem>>
    %444 = vector.broadcast %443 : f32 to vector<64x64xf32>
    %445 = arith.mulf %323, %444 : vector<64x64xf32>
    %446 = arith.addf %442, %445 : vector<64x64xf32>
    %c2_274 = arith.constant 2 : index
    %c7_275 = arith.constant 7 : index
    %447 = memref.load %arg3[%c2_274, %c7_275] : memref<8x8xf32, #tpu.memory_space<smem>>
    %448 = vector.broadcast %447 : f32 to vector<64x64xf32>
    %449 = arith.mulf %325, %448 : vector<64x64xf32>
    %450 = arith.addf %446, %449 : vector<64x64xf32>
    %c2_276 = arith.constant 2 : index
    %451 = memref.load %arg4[%c2_276] : memref<8xf32, #tpu.memory_space<smem>>
    %452 = vector.broadcast %451 : f32 to vector<64x64xf32>
    %453 = arith.addf %450, %452 : vector<64x64xf32>
    %454 = math.absf %453 : vector<64x64xf32>
    %c0_277 = arith.constant 0 : index
    %c2_278 = arith.constant 2 : index
    %c1_279 = arith.constant 1 : index
    %c1_280 = arith.constant 1 : index
    %455 = vector.load %arg5[%c0_277, %c2_278, %c1_279, %c1_280] : memref<1x8x66x66xf32, #tpu.memory_space<vmem>>, vector<1x1x64x64xf32>
    %456 = vector.shape_cast %455 : vector<1x1x64x64xf32> to vector<64x64xf32>
    %457 = vector.shape_cast %454 : vector<64x64xf32> to vector<1x1x64x64xf32>
    tpu.vector_store %arg5[%c0_277, %c2_278, %c1_279, %c1_280], %457 {strides = array<i32>} : memref<1x8x66x66xf32, #tpu.memory_space<vmem>>, vector<1x1x64x64xf32>,
    %c3_281 = arith.constant 3 : index
    %458 = memref.load %arg4[%c3_281] : memref<8xf32, #tpu.memory_space<smem>>
    %459 = vector.broadcast %458 : f32 to vector<66x66xf32>
    %460 = math.absf %459 : vector<66x66xf32>
    %c0_282 = arith.constant 0 : index
    %c3_283 = arith.constant 3 : index
    %c0_284 = arith.constant 0 : index
    %c0_285 = arith.constant 0 : index
    %461 = vector.load %arg5[%c0_282, %c3_283, %c0_284, %c0_285] : memref<1x8x66x66xf32, #tpu.memory_space<vmem>>, vector<1x1x66x66xf32>
    %462 = vector.shape_cast %461 : vector<1x1x66x66xf32> to vector<66x66xf32>
    %463 = vector.shape_cast %460 : vector<66x66xf32> to vector<1x1x66x66xf32>
    tpu.vector_store %arg5[%c0_282, %c3_283, %c0_284, %c0_285], %463 {strides = array<i32>} : memref<1x8x66x66xf32, #tpu.memory_space<vmem>>, vector<1x1x66x66xf32>,
    %c3_286 = arith.constant 3 : index
    %c0_287 = arith.constant 0 : index
    %464 = memref.load %arg3[%c3_286, %c0_287] : memref<8x8xf32, #tpu.memory_space<smem>>
    %465 = vector.broadcast %464 : f32 to vector<64x64xf32>
    %466 = arith.mulf %311, %465 : vector<64x64xf32>
    %c3_288 = arith.constant 3 : index
    %c1_289 = arith.constant 1 : index
    %467 = memref.load %arg3[%c3_288, %c1_289] : memref<8x8xf32, #tpu.memory_space<smem>>
    %468 = vector.broadcast %467 : f32 to vector<64x64xf32>
    %469 = arith.mulf %313, %468 : vector<64x64xf32>
    %470 = arith.addf %466, %469 : vector<64x64xf32>
    %c3_290 = arith.constant 3 : index
    %c2_291 = arith.constant 2 : index
    %471 = memref.load %arg3[%c3_290, %c2_291] : memref<8x8xf32, #tpu.memory_space<smem>>
    %472 = vector.broadcast %471 : f32 to vector<64x64xf32>
    %473 = arith.mulf %315, %472 : vector<64x64xf32>
    %474 = arith.addf %470, %473 : vector<64x64xf32>
    %c3_292 = arith.constant 3 : index
    %c3_293 = arith.constant 3 : index
    %475 = memref.load %arg3[%c3_292, %c3_293] : memref<8x8xf32, #tpu.memory_space<smem>>
    %476 = vector.broadcast %475 : f32 to vector<64x64xf32>
    %477 = arith.mulf %317, %476 : vector<64x64xf32>
    %478 = arith.addf %474, %477 : vector<64x64xf32>
    %c3_294 = arith.constant 3 : index
    %c4_295 = arith.constant 4 : index
    %479 = memref.load %arg3[%c3_294, %c4_295] : memref<8x8xf32, #tpu.memory_space<smem>>
    %480 = vector.broadcast %479 : f32 to vector<64x64xf32>
    %481 = arith.mulf %319, %480 : vector<64x64xf32>
    %482 = arith.addf %478, %481 : vector<64x64xf32>
    %c3_296 = arith.constant 3 : index
    %c5_297 = arith.constant 5 : index
    %483 = memref.load %arg3[%c3_296, %c5_297] : memref<8x8xf32, #tpu.memory_space<smem>>
    %484 = vector.broadcast %483 : f32 to vector<64x64xf32>
    %485 = arith.mulf %321, %484 : vector<64x64xf32>
    %486 = arith.addf %482, %485 : vector<64x64xf32>
    %c3_298 = arith.constant 3 : index
    %c6_299 = arith.constant 6 : index
    %487 = memref.load %arg3[%c3_298, %c6_299] : memref<8x8xf32, #tpu.memory_space<smem>>
    %488 = vector.broadcast %487 : f32 to vector<64x64xf32>
    %489 = arith.mulf %323, %488 : vector<64x64xf32>
    %490 = arith.addf %486, %489 : vector<64x64xf32>
    %c3_300 = arith.constant 3 : index
    %c7_301 = arith.constant 7 : index
    %491 = memref.load %arg3[%c3_300, %c7_301] : memref<8x8xf32, #tpu.memory_space<smem>>
    %492 = vector.broadcast %491 : f32 to vector<64x64xf32>
    %493 = arith.mulf %325, %492 : vector<64x64xf32>
    %494 = arith.addf %490, %493 : vector<64x64xf32>
    %c3_302 = arith.constant 3 : index
    %495 = memref.load %arg4[%c3_302] : memref<8xf32, #tpu.memory_space<smem>>
    %496 = vector.broadcast %495 : f32 to vector<64x64xf32>
    %497 = arith.addf %494, %496 : vector<64x64xf32>
    %498 = math.absf %497 : vector<64x64xf32>
    %c0_303 = arith.constant 0 : index
    %c3_304 = arith.constant 3 : index
    %c1_305 = arith.constant 1 : index
    %c1_306 = arith.constant 1 : index
    %499 = vector.load %arg5[%c0_303, %c3_304, %c1_305, %c1_306] : memref<1x8x66x66xf32, #tpu.memory_space<vmem>>, vector<1x1x64x64xf32>
    %500 = vector.shape_cast %499 : vector<1x1x64x64xf32> to vector<64x64xf32>
    %501 = vector.shape_cast %498 : vector<64x64xf32> to vector<1x1x64x64xf32>
    tpu.vector_store %arg5[%c0_303, %c3_304, %c1_305, %c1_306], %501 {strides = array<i32>} : memref<1x8x66x66xf32, #tpu.memory_space<vmem>>, vector<1x1x64x64xf32>,
    %c4_307 = arith.constant 4 : index
    %502 = memref.load %arg4[%c4_307] : memref<8xf32, #tpu.memory_space<smem>>
    %503 = vector.broadcast %502 : f32 to vector<66x66xf32>
    %504 = math.absf %503 : vector<66x66xf32>
    %c0_308 = arith.constant 0 : index
    %c4_309 = arith.constant 4 : index
    %c0_310 = arith.constant 0 : index
    %c0_311 = arith.constant 0 : index
    %505 = vector.load %arg5[%c0_308, %c4_309, %c0_310, %c0_311] : memref<1x8x66x66xf32, #tpu.memory_space<vmem>>, vector<1x1x66x66xf32>
    %506 = vector.shape_cast %505 : vector<1x1x66x66xf32> to vector<66x66xf32>
    %507 = vector.shape_cast %504 : vector<66x66xf32> to vector<1x1x66x66xf32>
    tpu.vector_store %arg5[%c0_308, %c4_309, %c0_310, %c0_311], %507 {strides = array<i32>} : memref<1x8x66x66xf32, #tpu.memory_space<vmem>>, vector<1x1x66x66xf32>,
    %c4_312 = arith.constant 4 : index
    %c0_313 = arith.constant 0 : index
    %508 = memref.load %arg3[%c4_312, %c0_313] : memref<8x8xf32, #tpu.memory_space<smem>>
    %509 = vector.broadcast %508 : f32 to vector<64x64xf32>
    %510 = arith.mulf %311, %509 : vector<64x64xf32>
    %c4_314 = arith.constant 4 : index
    %c1_315 = arith.constant 1 : index
    %511 = memref.load %arg3[%c4_314, %c1_315] : memref<8x8xf32, #tpu.memory_space<smem>>
    %512 = vector.broadcast %511 : f32 to vector<64x64xf32>
    %513 = arith.mulf %313, %512 : vector<64x64xf32>
    %514 = arith.addf %510, %513 : vector<64x64xf32>
    %c4_316 = arith.constant 4 : index
    %c2_317 = arith.constant 2 : index
    %515 = memref.load %arg3[%c4_316, %c2_317] : memref<8x8xf32, #tpu.memory_space<smem>>
    %516 = vector.broadcast %515 : f32 to vector<64x64xf32>
    %517 = arith.mulf %315, %516 : vector<64x64xf32>
    %518 = arith.addf %514, %517 : vector<64x64xf32>
    %c4_318 = arith.constant 4 : index
    %c3_319 = arith.constant 3 : index
    %519 = memref.load %arg3[%c4_318, %c3_319] : memref<8x8xf32, #tpu.memory_space<smem>>
    %520 = vector.broadcast %519 : f32 to vector<64x64xf32>
    %521 = arith.mulf %317, %520 : vector<64x64xf32>
    %522 = arith.addf %518, %521 : vector<64x64xf32>
    %c4_320 = arith.constant 4 : index
    %c4_321 = arith.constant 4 : index
    %523 = memref.load %arg3[%c4_320, %c4_321] : memref<8x8xf32, #tpu.memory_space<smem>>
    %524 = vector.broadcast %523 : f32 to vector<64x64xf32>
    %525 = arith.mulf %319, %524 : vector<64x64xf32>
    %526 = arith.addf %522, %525 : vector<64x64xf32>
    %c4_322 = arith.constant 4 : index
    %c5_323 = arith.constant 5 : index
    %527 = memref.load %arg3[%c4_322, %c5_323] : memref<8x8xf32, #tpu.memory_space<smem>>
    %528 = vector.broadcast %527 : f32 to vector<64x64xf32>
    %529 = arith.mulf %321, %528 : vector<64x64xf32>
    %530 = arith.addf %526, %529 : vector<64x64xf32>
    %c4_324 = arith.constant 4 : index
    %c6_325 = arith.constant 6 : index
    %531 = memref.load %arg3[%c4_324, %c6_325] : memref<8x8xf32, #tpu.memory_space<smem>>
    %532 = vector.broadcast %531 : f32 to vector<64x64xf32>
    %533 = arith.mulf %323, %532 : vector<64x64xf32>
    %534 = arith.addf %530, %533 : vector<64x64xf32>
    %c4_326 = arith.constant 4 : index
    %c7_327 = arith.constant 7 : index
    %535 = memref.load %arg3[%c4_326, %c7_327] : memref<8x8xf32, #tpu.memory_space<smem>>
    %536 = vector.broadcast %535 : f32 to vector<64x64xf32>
    %537 = arith.mulf %325, %536 : vector<64x64xf32>
    %538 = arith.addf %534, %537 : vector<64x64xf32>
    %c4_328 = arith.constant 4 : index
    %539 = memref.load %arg4[%c4_328] : memref<8xf32, #tpu.memory_space<smem>>
    %540 = vector.broadcast %539 : f32 to vector<64x64xf32>
    %541 = arith.addf %538, %540 : vector<64x64xf32>
    %542 = math.absf %541 : vector<64x64xf32>
    %c0_329 = arith.constant 0 : index
    %c4_330 = arith.constant 4 : index
    %c1_331 = arith.constant 1 : index
    %c1_332 = arith.constant 1 : index
    %543 = vector.load %arg5[%c0_329, %c4_330, %c1_331, %c1_332] : memref<1x8x66x66xf32, #tpu.memory_space<vmem>>, vector<1x1x64x64xf32>
    %544 = vector.shape_cast %543 : vector<1x1x64x64xf32> to vector<64x64xf32>
    %545 = vector.shape_cast %542 : vector<64x64xf32> to vector<1x1x64x64xf32>
    tpu.vector_store %arg5[%c0_329, %c4_330, %c1_331, %c1_332], %545 {strides = array<i32>} : memref<1x8x66x66xf32, #tpu.memory_space<vmem>>, vector<1x1x64x64xf32>,
    %c5_333 = arith.constant 5 : index
    %546 = memref.load %arg4[%c5_333] : memref<8xf32, #tpu.memory_space<smem>>
    %547 = vector.broadcast %546 : f32 to vector<66x66xf32>
    %548 = math.absf %547 : vector<66x66xf32>
    %c0_334 = arith.constant 0 : index
    %c5_335 = arith.constant 5 : index
    %c0_336 = arith.constant 0 : index
    %c0_337 = arith.constant 0 : index
    %549 = vector.load %arg5[%c0_334, %c5_335, %c0_336, %c0_337] : memref<1x8x66x66xf32, #tpu.memory_space<vmem>>, vector<1x1x66x66xf32>
    %550 = vector.shape_cast %549 : vector<1x1x66x66xf32> to vector<66x66xf32>
    %551 = vector.shape_cast %548 : vector<66x66xf32> to vector<1x1x66x66xf32>
    tpu.vector_store %arg5[%c0_334, %c5_335, %c0_336, %c0_337], %551 {strides = array<i32>} : memref<1x8x66x66xf32, #tpu.memory_space<vmem>>, vector<1x1x66x66xf32>,
    %c5_338 = arith.constant 5 : index
    %c0_339 = arith.constant 0 : index
    %552 = memref.load %arg3[%c5_338, %c0_339] : memref<8x8xf32, #tpu.memory_space<smem>>
    %553 = vector.broadcast %552 : f32 to vector<64x64xf32>
    %554 = arith.mulf %311, %553 : vector<64x64xf32>
    %c5_340 = arith.constant 5 : index
    %c1_341 = arith.constant 1 : index
    %555 = memref.load %arg3[%c5_340, %c1_341] : memref<8x8xf32, #tpu.memory_space<smem>>
    %556 = vector.broadcast %555 : f32 to vector<64x64xf32>
    %557 = arith.mulf %313, %556 : vector<64x64xf32>
    %558 = arith.addf %554, %557 : vector<64x64xf32>
    %c5_342 = arith.constant 5 : index
    %c2_343 = arith.constant 2 : index
    %559 = memref.load %arg3[%c5_342, %c2_343] : memref<8x8xf32, #tpu.memory_space<smem>>
    %560 = vector.broadcast %559 : f32 to vector<64x64xf32>
    %561 = arith.mulf %315, %560 : vector<64x64xf32>
    %562 = arith.addf %558, %561 : vector<64x64xf32>
    %c5_344 = arith.constant 5 : index
    %c3_345 = arith.constant 3 : index
    %563 = memref.load %arg3[%c5_344, %c3_345] : memref<8x8xf32, #tpu.memory_space<smem>>
    %564 = vector.broadcast %563 : f32 to vector<64x64xf32>
    %565 = arith.mulf %317, %564 : vector<64x64xf32>
    %566 = arith.addf %562, %565 : vector<64x64xf32>
    %c5_346 = arith.constant 5 : index
    %c4_347 = arith.constant 4 : index
    %567 = memref.load %arg3[%c5_346, %c4_347] : memref<8x8xf32, #tpu.memory_space<smem>>
    %568 = vector.broadcast %567 : f32 to vector<64x64xf32>
    %569 = arith.mulf %319, %568 : vector<64x64xf32>
    %570 = arith.addf %566, %569 : vector<64x64xf32>
    %c5_348 = arith.constant 5 : index
    %c5_349 = arith.constant 5 : index
    %571 = memref.load %arg3[%c5_348, %c5_349] : memref<8x8xf32, #tpu.memory_space<smem>>
    %572 = vector.broadcast %571 : f32 to vector<64x64xf32>
    %573 = arith.mulf %321, %572 : vector<64x64xf32>
    %574 = arith.addf %570, %573 : vector<64x64xf32>
    %c5_350 = arith.constant 5 : index
    %c6_351 = arith.constant 6 : index
    %575 = memref.load %arg3[%c5_350, %c6_351] : memref<8x8xf32, #tpu.memory_space<smem>>
    %576 = vector.broadcast %575 : f32 to vector<64x64xf32>
    %577 = arith.mulf %323, %576 : vector<64x64xf32>
    %578 = arith.addf %574, %577 : vector<64x64xf32>
    %c5_352 = arith.constant 5 : index
    %c7_353 = arith.constant 7 : index
    %579 = memref.load %arg3[%c5_352, %c7_353] : memref<8x8xf32, #tpu.memory_space<smem>>
    %580 = vector.broadcast %579 : f32 to vector<64x64xf32>
    %581 = arith.mulf %325, %580 : vector<64x64xf32>
    %582 = arith.addf %578, %581 : vector<64x64xf32>
    %c5_354 = arith.constant 5 : index
    %583 = memref.load %arg4[%c5_354] : memref<8xf32, #tpu.memory_space<smem>>
    %584 = vector.broadcast %583 : f32 to vector<64x64xf32>
    %585 = arith.addf %582, %584 : vector<64x64xf32>
    %586 = math.absf %585 : vector<64x64xf32>
    %c0_355 = arith.constant 0 : index
    %c5_356 = arith.constant 5 : index
    %c1_357 = arith.constant 1 : index
    %c1_358 = arith.constant 1 : index
    %587 = vector.load %arg5[%c0_355, %c5_356, %c1_357, %c1_358] : memref<1x8x66x66xf32, #tpu.memory_space<vmem>>, vector<1x1x64x64xf32>
    %588 = vector.shape_cast %587 : vector<1x1x64x64xf32> to vector<64x64xf32>
    %589 = vector.shape_cast %586 : vector<64x64xf32> to vector<1x1x64x64xf32>
    tpu.vector_store %arg5[%c0_355, %c5_356, %c1_357, %c1_358], %589 {strides = array<i32>} : memref<1x8x66x66xf32, #tpu.memory_space<vmem>>, vector<1x1x64x64xf32>,
    %c6_359 = arith.constant 6 : index
    %590 = memref.load %arg4[%c6_359] : memref<8xf32, #tpu.memory_space<smem>>
    %591 = vector.broadcast %590 : f32 to vector<66x66xf32>
    %592 = math.absf %591 : vector<66x66xf32>
    %c0_360 = arith.constant 0 : index
    %c6_361 = arith.constant 6 : index
    %c0_362 = arith.constant 0 : index
    %c0_363 = arith.constant 0 : index
    %593 = vector.load %arg5[%c0_360, %c6_361, %c0_362, %c0_363] : memref<1x8x66x66xf32, #tpu.memory_space<vmem>>, vector<1x1x66x66xf32>
    %594 = vector.shape_cast %593 : vector<1x1x66x66xf32> to vector<66x66xf32>
    %595 = vector.shape_cast %592 : vector<66x66xf32> to vector<1x1x66x66xf32>
    tpu.vector_store %arg5[%c0_360, %c6_361, %c0_362, %c0_363], %595 {strides = array<i32>} : memref<1x8x66x66xf32, #tpu.memory_space<vmem>>, vector<1x1x66x66xf32>,
    %c6_364 = arith.constant 6 : index
    %c0_365 = arith.constant 0 : index
    %596 = memref.load %arg3[%c6_364, %c0_365] : memref<8x8xf32, #tpu.memory_space<smem>>
    %597 = vector.broadcast %596 : f32 to vector<64x64xf32>
    %598 = arith.mulf %311, %597 : vector<64x64xf32>
    %c6_366 = arith.constant 6 : index
    %c1_367 = arith.constant 1 : index
    %599 = memref.load %arg3[%c6_366, %c1_367] : memref<8x8xf32, #tpu.memory_space<smem>>
    %600 = vector.broadcast %599 : f32 to vector<64x64xf32>
    %601 = arith.mulf %313, %600 : vector<64x64xf32>
    %602 = arith.addf %598, %601 : vector<64x64xf32>
    %c6_368 = arith.constant 6 : index
    %c2_369 = arith.constant 2 : index
    %603 = memref.load %arg3[%c6_368, %c2_369] : memref<8x8xf32, #tpu.memory_space<smem>>
    %604 = vector.broadcast %603 : f32 to vector<64x64xf32>
    %605 = arith.mulf %315, %604 : vector<64x64xf32>
    %606 = arith.addf %602, %605 : vector<64x64xf32>
    %c6_370 = arith.constant 6 : index
    %c3_371 = arith.constant 3 : index
    %607 = memref.load %arg3[%c6_370, %c3_371] : memref<8x8xf32, #tpu.memory_space<smem>>
    %608 = vector.broadcast %607 : f32 to vector<64x64xf32>
    %609 = arith.mulf %317, %608 : vector<64x64xf32>
    %610 = arith.addf %606, %609 : vector<64x64xf32>
    %c6_372 = arith.constant 6 : index
    %c4_373 = arith.constant 4 : index
    %611 = memref.load %arg3[%c6_372, %c4_373] : memref<8x8xf32, #tpu.memory_space<smem>>
    %612 = vector.broadcast %611 : f32 to vector<64x64xf32>
    %613 = arith.mulf %319, %612 : vector<64x64xf32>
    %614 = arith.addf %610, %613 : vector<64x64xf32>
    %c6_374 = arith.constant 6 : index
    %c5_375 = arith.constant 5 : index
    %615 = memref.load %arg3[%c6_374, %c5_375] : memref<8x8xf32, #tpu.memory_space<smem>>
    %616 = vector.broadcast %615 : f32 to vector<64x64xf32>
    %617 = arith.mulf %321, %616 : vector<64x64xf32>
    %618 = arith.addf %614, %617 : vector<64x64xf32>
    %c6_376 = arith.constant 6 : index
    %c6_377 = arith.constant 6 : index
    %619 = memref.load %arg3[%c6_376, %c6_377] : memref<8x8xf32, #tpu.memory_space<smem>>
    %620 = vector.broadcast %619 : f32 to vector<64x64xf32>
    %621 = arith.mulf %323, %620 : vector<64x64xf32>
    %622 = arith.addf %618, %621 : vector<64x64xf32>
    %c6_378 = arith.constant 6 : index
    %c7_379 = arith.constant 7 : index
    %623 = memref.load %arg3[%c6_378, %c7_379] : memref<8x8xf32, #tpu.memory_space<smem>>
    %624 = vector.broadcast %623 : f32 to vector<64x64xf32>
    %625 = arith.mulf %325, %624 : vector<64x64xf32>
    %626 = arith.addf %622, %625 : vector<64x64xf32>
    %c6_380 = arith.constant 6 : index
    %627 = memref.load %arg4[%c6_380] : memref<8xf32, #tpu.memory_space<smem>>
    %628 = vector.broadcast %627 : f32 to vector<64x64xf32>
    %629 = arith.addf %626, %628 : vector<64x64xf32>
    %630 = math.absf %629 : vector<64x64xf32>
    %c0_381 = arith.constant 0 : index
    %c6_382 = arith.constant 6 : index
    %c1_383 = arith.constant 1 : index
    %c1_384 = arith.constant 1 : index
    %631 = vector.load %arg5[%c0_381, %c6_382, %c1_383, %c1_384] : memref<1x8x66x66xf32, #tpu.memory_space<vmem>>, vector<1x1x64x64xf32>
    %632 = vector.shape_cast %631 : vector<1x1x64x64xf32> to vector<64x64xf32>
    %633 = vector.shape_cast %630 : vector<64x64xf32> to vector<1x1x64x64xf32>
    tpu.vector_store %arg5[%c0_381, %c6_382, %c1_383, %c1_384], %633 {strides = array<i32>} : memref<1x8x66x66xf32, #tpu.memory_space<vmem>>, vector<1x1x64x64xf32>,
    %c7_385 = arith.constant 7 : index
    %634 = memref.load %arg4[%c7_385] : memref<8xf32, #tpu.memory_space<smem>>
    %635 = vector.broadcast %634 : f32 to vector<66x66xf32>
    %636 = math.absf %635 : vector<66x66xf32>
    %c0_386 = arith.constant 0 : index
    %c7_387 = arith.constant 7 : index
    %c0_388 = arith.constant 0 : index
    %c0_389 = arith.constant 0 : index
    %637 = vector.load %arg5[%c0_386, %c7_387, %c0_388, %c0_389] : memref<1x8x66x66xf32, #tpu.memory_space<vmem>>, vector<1x1x66x66xf32>
    %638 = vector.shape_cast %637 : vector<1x1x66x66xf32> to vector<66x66xf32>
    %639 = vector.shape_cast %636 : vector<66x66xf32> to vector<1x1x66x66xf32>
    tpu.vector_store %arg5[%c0_386, %c7_387, %c0_388, %c0_389], %639 {strides = array<i32>} : memref<1x8x66x66xf32, #tpu.memory_space<vmem>>, vector<1x1x66x66xf32>,
    %c7_390 = arith.constant 7 : index
    %c0_391 = arith.constant 0 : index
    %640 = memref.load %arg3[%c7_390, %c0_391] : memref<8x8xf32, #tpu.memory_space<smem>>
    %641 = vector.broadcast %640 : f32 to vector<64x64xf32>
    %642 = arith.mulf %311, %641 : vector<64x64xf32>
    %c7_392 = arith.constant 7 : index
    %c1_393 = arith.constant 1 : index
    %643 = memref.load %arg3[%c7_392, %c1_393] : memref<8x8xf32, #tpu.memory_space<smem>>
    %644 = vector.broadcast %643 : f32 to vector<64x64xf32>
    %645 = arith.mulf %313, %644 : vector<64x64xf32>
    %646 = arith.addf %642, %645 : vector<64x64xf32>
    %c7_394 = arith.constant 7 : index
    %c2_395 = arith.constant 2 : index
    %647 = memref.load %arg3[%c7_394, %c2_395] : memref<8x8xf32, #tpu.memory_space<smem>>
    %648 = vector.broadcast %647 : f32 to vector<64x64xf32>
    %649 = arith.mulf %315, %648 : vector<64x64xf32>
    %650 = arith.addf %646, %649 : vector<64x64xf32>
    %c7_396 = arith.constant 7 : index
    %c3_397 = arith.constant 3 : index
    %651 = memref.load %arg3[%c7_396, %c3_397] : memref<8x8xf32, #tpu.memory_space<smem>>
    %652 = vector.broadcast %651 : f32 to vector<64x64xf32>
    %653 = arith.mulf %317, %652 : vector<64x64xf32>
    %654 = arith.addf %650, %653 : vector<64x64xf32>
    %c7_398 = arith.constant 7 : index
    %c4_399 = arith.constant 4 : index
    %655 = memref.load %arg3[%c7_398, %c4_399] : memref<8x8xf32, #tpu.memory_space<smem>>
    %656 = vector.broadcast %655 : f32 to vector<64x64xf32>
    %657 = arith.mulf %319, %656 : vector<64x64xf32>
    %658 = arith.addf %654, %657 : vector<64x64xf32>
    %c7_400 = arith.constant 7 : index
    %c5_401 = arith.constant 5 : index
    %659 = memref.load %arg3[%c7_400, %c5_401] : memref<8x8xf32, #tpu.memory_space<smem>>
    %660 = vector.broadcast %659 : f32 to vector<64x64xf32>
    %661 = arith.mulf %321, %660 : vector<64x64xf32>
    %662 = arith.addf %658, %661 : vector<64x64xf32>
    %c7_402 = arith.constant 7 : index
    %c6_403 = arith.constant 6 : index
    %663 = memref.load %arg3[%c7_402, %c6_403] : memref<8x8xf32, #tpu.memory_space<smem>>
    %664 = vector.broadcast %663 : f32 to vector<64x64xf32>
    %665 = arith.mulf %323, %664 : vector<64x64xf32>
    %666 = arith.addf %662, %665 : vector<64x64xf32>
    %c7_404 = arith.constant 7 : index
    %c7_405 = arith.constant 7 : index
    %667 = memref.load %arg3[%c7_404, %c7_405] : memref<8x8xf32, #tpu.memory_space<smem>>
    %668 = vector.broadcast %667 : f32 to vector<64x64xf32>
    %669 = arith.mulf %325, %668 : vector<64x64xf32>
    %670 = arith.addf %666, %669 : vector<64x64xf32>
    %c7_406 = arith.constant 7 : index
    %671 = memref.load %arg4[%c7_406] : memref<8xf32, #tpu.memory_space<smem>>
    %672 = vector.broadcast %671 : f32 to vector<64x64xf32>
    %673 = arith.addf %670, %672 : vector<64x64xf32>
    %674 = math.absf %673 : vector<64x64xf32>
    %c0_407 = arith.constant 0 : index
    %c7_408 = arith.constant 7 : index
    %c1_409 = arith.constant 1 : index
    %c1_410 = arith.constant 1 : index
    %675 = vector.load %arg5[%c0_407, %c7_408, %c1_409, %c1_410] : memref<1x8x66x66xf32, #tpu.memory_space<vmem>>, vector<1x1x64x64xf32>
    %676 = vector.shape_cast %675 : vector<1x1x64x64xf32> to vector<64x64xf32>
    %677 = vector.shape_cast %674 : vector<64x64xf32> to vector<1x1x64x64xf32>
    tpu.vector_store %arg5[%c0_407, %c7_408, %c1_409, %c1_410], %677 {strides = array<i32>} : memref<1x8x66x66xf32, #tpu.memory_space<vmem>>, vector<1x1x64x64xf32>,
    return
  }
}

</mosaic_0001>

<bundles_post_ra>
// kernel: model_forward.1
= control target key start
LH: loop header
LB: loop body
LE: loop exit
PB: predicated region body
PF: predicated region fallthrough
CT: control target
= control target key end

     0   :  { %10 = vsyncpa [#allocation4], 0  ;;  %s7682_s0 = inlined_call_operand.vmem [shape: f32[1,3,62,62], index: 0, kind: input, shape index: {}]   ;;  %s7683_s1 = inlined_call_operand.vmem [shape: f32[8,3], index: 1, kind: input, shape index: {}]   ;;  %s7684_s2 = inlined_call_operand.vmem [shape: f32[8], index: 2, kind: input, shape index: {}]   ;;  %s7685_s3 = inlined_call_operand.vmem [shape: f32[8,8], index: 3, kind: input, shape index: {}]   ;;  %s7686_s4 = inlined_call_operand.vmem [shape: f32[8], index: 4, kind: input, shape index: {}]   ;;  %s7687_s5 = inlined_call_operand.vmem [shape: f32[1,8,66,66], index: 5, kind: output, shape index: {}]  }
   0x1   :  { %11 = vsyncpa [#allocation6], 0  ;;  %s29_s20 = sshll.u32 %s7684_s2, 4  ;;  %s30_s20 = int_to_ptr.vmem [resolvable:$true] %s29_s20 }
   0x2   :  { %12 = vsyncpa [#allocation9], 0  ;;  %s20_s23 = sshll.u32 %s7683_s1, 4  ;;  %s3391_s24 = smov [#allocation5]   ;;  %s21_s23 = int_to_ptr.vmem [resolvable:$true] %s20_s23 }
   0x3   :  { %32 = dma.vmem_to_smem %s30_s20, 16, %s3391_s24, [#allocation6]  }
   0x4   :  { %s3392_s25 = smov [#allocation3]   ;;  %s38_s28 = sshll.u32 %s7685_s3, 4  ;;  %s39_s28 = int_to_ptr.vmem [resolvable:$true] %s38_s28 }
   0x5   :  { %23 = dma.vmem_to_smem %s21_s23, 128, %s3392_s25, [#allocation4]  }
   0x6   :  { %s47_s2 = sshll.u32 %s7686_s4, 4  ;;  %s3393_s6 = smov [#allocation7]   ;;  %s48_s2 = int_to_ptr.vmem [resolvable:$true] %s47_s2 }
   0x7   :  { %41 = dma.vmem_to_smem %s39_s28, 128, %s3393_s6, [#allocation6]  }
   0x8   :  { %s3394_s7 = smov [#allocation8]  }
   0x9   :  { %50 = dma.vmem_to_smem %s48_s2, 16, %s3394_s7, [#allocation9]  }
   0xa   :  { %3385 = dma.done.wait [#allocation4], 128  }
   0xb   :  { %3386 = vsyncadd [#allocation4], 4294967168 }
   0xc   :  { %3387 = dma.done.wait [#allocation6], 144  }
   0xd   :  { %3388 = vsyncadd [#allocation6], 4294967152 }
   0xe   :  { %3389 = dma.done.wait [#allocation9], 16  }
   0xf   :  { %3390 = vsyncadd [#allocation9], 4294967280 }
  0x10   :  { %67 = sfence }
  0x11   :  { %s109_s1 = sld [smem:[#allocation3]]  ;;  %v3441_v0 = vld [vmem:[%s7682_s0 + $0x10] sm:$0xff]  ;;  %v3446_v1 = vld [vmem:[%s7682_s0] sm:$0xff]  ;;  %v3496_v14 = vld [vmem:[%s7682_s0 + $0x18] sm:$0xff]  ;;  %s3395_s6 = smov 1   ;;  %vm100_vm0 = vcmask 523264  }
  0x12   :  { %s2985_s8 = sld [smem:[#allocation3 + $0x1]]  ;;  %v3451_v2 = vld [vmem:[%s7682_s0 + $0x20] sm:$0xff]  ;;  %v3456_v3 = vld [vmem:[%s7682_s0 + $0x50] sm:$0xff]  ;;  %v3501_v15 = vld [vmem:[%s7682_s0 + $0x58] sm:$0xff]  ;;  %vm229_vm1 = vcmask 515080   ;;  %vm237_vm2 = vcmask 513032  }
  0x13   :  { %s2986_s3 = sld [smem:[#allocation3 + $0x2]]  ;;  %v3461_v4 = vld [vmem:[%s7682_s0 + $0x40] sm:$0xff]  ;;  %v3471_v6 = vld [vmem:[%s7682_s0 + $0x90] sm:$0xff]  ;;  %v3514_v20 = vld [vmem:[%s7682_s0 + $0x98] sm:$0xff]  ;;  %vm1307_vm3 = vcmask 539648   ;;  %vm1316_vm4 = vcmask 533504  }
  0x14   :  { %s155_s9 = sld [smem:[#allocation5]]  ;;  %v3466_v5 = vld [vmem:[%s7682_s0 + $0x60] sm:$0xff]  ;;  %v3519_v21 = vld [vmem:[%s7682_s0 + $0x8] sm:$0xff]  ;;  %v3569_v43 = vld [vmem:[%s7682_s0 + $0x38] sm:$0x3f]  ;;  %vm1504_vm5 = vcmask 531464  }
  0x15   :  { %v3478_v8 = vld [vmem:[%s7682_s0 + $0x80] sm:$0xff]  ;;  %v3524_v22 = vld [vmem:[%s7682_s0 + $0x48] sm:$0xff]  ;;  %v3578_v48 = vld [vmem:[%s7682_s0 + $0x78] sm:$0x3f]  ;;  %s3592_s22 = sld [smem:[#allocation3 + $0x80]] }
  0x16   :  { %v3483_v9 = vld [vmem:[%s7682_s0 + $0xa0] sm:$0xff]  ;;  %v3537_v27 = vld [vmem:[%s7682_s0 + $0x88] sm:$0xff]  ;;  %v3588_v53 = vld [vmem:[%s7682_s0 + $0xb8] sm:$0x3f]  ;;  %s3601_s25 = sld [smem:[#allocation3 + $0x81]] }
  0x17   :  { %v3473_v7 = vstv %s109_s1  ;;  %v3544_v32 = vld [vmem:[%s7682_s0 + $0x28] sm:$0xff]  ;;  %v3599_v62 = vld [vmem:[%s7682_s0 + $0x30] sm:$0xff]  ;;  %s3612_s28 = sld [smem:[#allocation3 + $0x82]] }
  0x18   :  { %v113_v10 = vmul.f32 %v3473_v7, %v3441_v0  ;;  %v3487_v11 = vstv %s2985_s8  ;;  %v111_v12 = vmul.f32 %v3473_v7, %v3446_v1  ;;  %v115_v13 = vmul.f32 %v3473_v7, %v3451_v2  ;;  %v3549_v33 = vld [vmem:[%s7682_s0 + $0x68] sm:$0xff]  ;;  %s3617_s29 = sld [smem:[#allocation5 + $0x1]] }
  0x19   :  { %v123_v16 = vmul.f32 %v3456_v3, %v3487_v11  ;;  %v3505_v17 = vstv %s2986_s3  ;;  %v121_v18 = vmul.f32 %v3461_v4, %v3487_v11  ;;  %v125_v19 = vmul.f32 %v3466_v5, %v3487_v11  ;;  %v3562_v38 = vld [vmem:[%s7682_s0 + $0xa8] sm:$0xff]  ;;  %s3663_s7 = sld [smem:[#allocation3 + $0x100]] }
  0x1a   :  { %v141_v23 = vmul.f32 %v3471_v6, %v3505_v17  ;;  %v3528_v24 = vstv %s155_s9  ;;  %v139_v25 = vmul.f32 %v3478_v8, %v3505_v17  ;;  %v143_v26 = vmul.f32 %v3483_v9, %v3505_v17  ;;  %s3665_s1 = sld [smem:[#allocation3 + $0x101]] }
  0x1b   :  { %v131_v28 = vadd.f32 %v123_v16, %v113_v10  ;;  %v129_v29 = vadd.f32 %v121_v18, %v111_v12  ;;  %v133_v30 = vadd.f32 %v125_v19, %v115_v13  ;;  %v114_v31 = vmul.f32 %v3473_v7, %v3496_v14  ;;  %s3683_s8 = sld [smem:[#allocation3 + $0x102]] }
  0x1c   :  { %v124_v34 = vmul.f32 %v3501_v15, %v3487_v11  ;;  %v142_v35 = vmul.f32 %v3514_v20, %v3505_v17  ;;  %v112_v36 = vmul.f32 %v3473_v7, %v3519_v21  ;;  %v122_v37 = vmul.f32 %v3524_v22, %v3487_v11  ;;  %s3688_s10 = sld [smem:[#allocation5 + $0x2]] }
  0x1d   :  { %v149_v39 = vadd.f32 %v141_v23, %v131_v28  ;;  %v147_v40 = vadd.f32 %v139_v25, %v129_v29  ;;  %v151_v41 = vadd.f32 %v143_v26, %v133_v30  ;;  %v140_v42 = vmul.f32 %v3537_v27, %v3505_v17  ;;  %v3610_v25 = vld [vmem:[%s7682_s0 + $0x70] sm:$0xff]  ;;  %s3709_s3 = sld [smem:[#allocation3 + $0x180]] }
  0x1e   :  { %v132_v44 = vadd.f32 %v124_v34, %v114_v31  ;;  %v130_v45 = vadd.f32 %v122_v37, %v112_v36  ;;  %v116_v46 = vmul.f32 %v3473_v7, %v3544_v32  ;;  %v126_v47 = vmul.f32 %v3549_v33, %v3487_v11  ;;  %s3767_s11 = sld [smem:[#allocation3 + $0x181]] }
  0x1f   :  { %v159_v49 = vadd.f32 %v3528_v24, %v149_v39  ;;  %v157_v50 = vadd.f32 %v3528_v24, %v147_v40  ;;  %v161_v51 = vadd.f32 %v3528_v24, %v151_v41  ;;  %v144_v52 = vmul.f32 %v3562_v38, %v3505_v17  ;;  %v3622_v41 = vld [vmem:[%s7682_s0 + $0xb0] sm:$0xff]  ;;  %s3772_s4 = sld [smem:[#allocation3 + $0x182]] }
  0x20   :  { %v150_v54 = vadd.f32 %v142_v35, %v132_v44  ;;  %v148_v55 = vadd.f32 %v140_v42, %v130_v45  ;;  %v134_v56 = vadd.f32 %v126_v47, %v116_v46  ;;  %v118_v57 = vmul.f32 %v3473_v7, %v3569_v43  ;;  %s3779_s9 = sld [smem:[#allocation5 + $0x3]] }
  0x21   :  { %v167_v58 = vadd.f32 3.0, %v159_v49  ;;  %v165_v59 = vadd.f32 3.0, %v157_v50  ;;  %v169_v60 = vadd.f32 3.0, %v161_v51  ;;  %v128_v61 = vmul.f32 %v3578_v48, %v3487_v11  ;;  %s3849_s12 = sld [smem:[#allocation3 + $0x200]] }
  0x22   :  { %v160_v63 = vadd.f32 %v3528_v24, %v150_v54  ;;  %v158_v10 = vadd.f32 %v3528_v24, %v148_v55  ;;  %v152_v12 = vadd.f32 %v144_v52, %v134_v56  ;;  %v146_v13 = vmul.f32 %v3588_v53, %v3505_v17  ;;  %s3854_s13 = sld [smem:[#allocation3 + $0x201]] }
  0x23   :  { %v175_v16 = vmax.f32 %v167_v58, 0.0  ;;  %v173_v18 = vmax.f32 %v165_v59, 0.0  ;;  %v177_v19 = vmax.f32 %v169_v60, 0.0  ;;  %v136_v23 = vadd.f32 %v128_v61, %v118_v57  ;;  %s3859_s14 = sld [smem:[#allocation3 + $0x202]] }
  0x24   :  { %v168_v26 = vadd.f32 3.0, %v160_v63  ;;  %v166_v28 = vadd.f32 3.0, %v158_v10  ;;  %v162_v29 = vadd.f32 %v3528_v24, %v152_v12  ;;  %v117_v30 = vmul.f32 %v3473_v7, %v3599_v62  ;;  %s3867_s15 = sld [smem:[#allocation5 + $0x4]] }
  0x25   :  { %v183_v31 = vmin.f32 %v175_v16, 5.0  ;;  %v181_v34 = vmin.f32 %v173_v18, 5.0  ;;  %v185_v35 = vmin.f32 %v177_v19, 5.0  ;;  %v154_v36 = vadd.f32 %v146_v13, %v136_v23  ;;  %s3926_s16 = sld [smem:[#allocation3 + $0x280]] }
  0x26   :  { %v176_v37 = vmax.f32 %v168_v26, 0.0  ;;  %v174_v39 = vmax.f32 %v166_v28, 0.0  ;;  %v170_v40 = vadd.f32 3.0, %v162_v29  ;;  %v127_v42 = vmul.f32 %v3610_v25, %v3487_v11  ;;  %s3934_s17 = sld [smem:[#allocation3 + $0x281]] }
  0x27   :  { %v191_v7 = vmul.f32 0.16666667, %v183_v31  ;;  %v189_v44 = vmul.f32 0.16666667, %v181_v34  ;;  %v193_v45 = vmul.f32 0.16666667, %v185_v35  ;;  %v164_v46 = vadd.f32 %v3528_v24, %v154_v36 }
  0x28   :  { %v184_v47 = vmin.f32 %v176_v37, 5.0  ;;  %v182_v49 = vmin.f32 %v174_v39, 5.0  ;;  %v178_v50 = vmax.f32 %v170_v40, 0.0  ;;  %v135_v51 = vadd.f32 %v127_v42, %v117_v30  ;;  %s3937_s18 = sld [smem:[#allocation3 + $0x282]] }
  0x29   :  { %209 = vrot.lane.b32.xlu1 %v191_v7, %s3395_s6  ;;  %205 = vrot.lane.b32.xlu0 %v189_v44, %s3395_s6  ;;  %v172_v52 = vadd.f32 3.0, %v164_v46  ;;  %v145_v11 = vmul.f32 %v3622_v41, %v3505_v17  ;;  %v3632_v54 = vstv %s3592_s22  ;;  %v3635_v55 = vstv %s3601_s25  ;;  %s3939_s19 = sld [smem:[#allocation5 + $0x5]] }
  0x2a   :  { %213 = vrot.lane.b32.xlu2 %v193_v45, %s3395_s6  ;;  %v192_v56 = vmul.f32 0.16666667, %v184_v47  ;;  %v190_v57 = vmul.f32 0.16666667, %v182_v49  ;;  %v186_v58 = vmin.f32 %v178_v50, 5.0  ;;  %v258_v59 = vmul.f32 %v3632_v54, %v3441_v0  ;;  %s4036_s26 = sld [smem:[#allocation3 + $0x300]] }
  0x2b   :  { %v180_v60 = vmax.f32 %v172_v52, 0.0  ;;  %v153_v61 = vadd.f32 %v145_v11, %v135_v51  ;;  %v268_v63 = vmul.f32 %v3456_v3, %v3635_v55  ;;  %v3643_v10 = vstv %s3612_s28  ;;  %s4041_s27 = sld [smem:[#allocation3 + $0x301]] }
  0x2c   :  { %v194_v17 = vmul.f32 0.16666667, %v186_v58  ;;  %v286_v12 = vmul.f32 %v3471_v6, %v3643_v10  ;;  %v3648_v13 = vstv %s3617_s29  ;;  %v256_v16 = vmul.f32 %v3632_v54, %v3446_v1  ;;  %s4045_s28 = sld [smem:[#allocation3 + $0x302]] }
  0x2d   :  { %v188_v18 = vmin.f32 %v180_v60, 5.0  ;;  %v163_v19 = vadd.f32 %v3528_v24, %v153_v61  ;;  %v276_v23 = vadd.f32 %v268_v63, %v258_v59  ;;  %v266_v26 = vmul.f32 %v3461_v4, %v3635_v55  ;;  %s4049_s29 = sld [smem:[#allocation5 + $0x6]] }
  0x2e   :  { %v284_v28 = vmul.f32 %v3478_v8, %v3643_v10  ;;  %v257_v29 = vmul.f32 %v3632_v54, %v3519_v21  ;;  %v267_v30 = vmul.f32 %v3524_v22, %v3635_v55  ;;  %v285_v31 = vmul.f32 %v3537_v27, %v3643_v10  ;;  %s4366_s21 = sld [smem:[#allocation7]] }
  0x2f   :  { %v196_v34 = vmul.f32 0.16666667, %v188_v18  ;;  %v171_v35 = vadd.f32 3.0, %v163_v19  ;;  %v294_v36 = vadd.f32 %v286_v12, %v276_v23  ;;  %v274_v37 = vadd.f32 %v266_v26, %v256_v16  ;;  %s4374_s22 = sld [smem:[#allocation7 + $0x1]] }
  0x30   :  { %v275_v39 = vadd.f32 %v267_v30, %v257_v29  ;;  %v261_v40 = vmul.f32 %v3632_v54, %v3544_v32  ;;  %v271_v42 = vmul.f32 %v3549_v33, %v3635_v55  ;;  %v289_v7 = vmul.f32 %v3562_v38, %v3643_v10  ;;  %s4420_s23 = sld [smem:[#allocation7 + $0x2]] }
  0x31   :  { %211 = vrot.lane.b32.xlu1 %v192_v56, %s3395_s6  ;;  %207 = vrot.lane.b32.xlu0 %v190_v57, %s3395_s6  ;;  %v179_v44 = vmax.f32 %v171_v35, 0.0  ;;  %v304_v45 = vadd.f32 %v3648_v13, %v294_v36  ;;  %v292_v46 = vadd.f32 %v284_v28, %v274_v37  ;;  %v260_v47 = vmul.f32 %v3632_v54, %v3451_v2  ;;  %s4430_s24 = sld [smem:[#allocation7 + $0x80]] }
  0x32   :  { %215 = vrot.lane.b32.xlu2 %v194_v17, %s3395_s6  ;;  %v293_v49 = vadd.f32 %v285_v31, %v275_v39  ;;  %v279_v50 = vadd.f32 %v271_v42, %v261_v40  ;;  %v270_v51 = vmul.f32 %v3466_v5, %v3635_v55  ;;  %v288_v52 = vmul.f32 %v3483_v9, %v3643_v10  ;;  %s4439_s25 = sld [smem:[#allocation7 + $0x81]] }
  0x33   :  { %v187_v11 = vmin.f32 %v179_v44, 5.0  ;;  %v312_v56 = vadd.f32 3.0, %v304_v45  ;;  %v302_v57 = vadd.f32 %v3648_v13, %v292_v46  ;;  %v259_v58 = vmul.f32 %v3632_v54, %v3496_v14  ;;  %s4631_s30 = sld [smem:[#allocation7 + $0x180]] }
  0x34   :  { %v303_v59 = vadd.f32 %v3648_v13, %v293_v49  ;;  %v297_v60 = vadd.f32 %v289_v7, %v279_v50  ;;  %v278_v61 = vadd.f32 %v270_v51, %v260_v47  ;;  %v269_v63 = vmul.f32 %v3501_v15, %v3635_v55  ;;  %s4641_s2 = sld [smem:[#allocation7 + $0x181]] }
  0x35   :  { %v195_v17 = vmul.f32 0.16666667, %v187_v11  ;;  %v320_v12 = vmax.f32 %v312_v56, 0.0  ;;  %v310_v16 = vadd.f32 3.0, %v302_v57  ;;  %v287_v18 = vmul.f32 %v3514_v20, %v3643_v10  ;;  %s5228_s20 = sld [smem:[#allocation7 + $0x85]] }
  0x36   :  { %v311_v19 = vadd.f32 3.0, %v303_v59  ;;  %v307_v23 = vadd.f32 %v3648_v13, %v297_v60  ;;  %v296_v26 = vadd.f32 %v288_v52, %v278_v61  ;;  %v277_v28 = vadd.f32 %v269_v63, %v259_v58 }
  0x37   :  { %v328_v29 = vmin.f32 %v320_v12, 5.0  ;;  %v318_v30 = vmax.f32 %v310_v16, 0.0  ;;  %v3697_v31 = vstv %s3663_s7  ;;  %v3700_v35 = vstv %s3665_s1  ;;  %s4649_s7 = sld [smem:[#allocation7 + $0x3]] }
  0x38   :  { %v319_v36 = vmax.f32 %v311_v19, 0.0  ;;  %v315_v37 = vadd.f32 3.0, %v307_v23  ;;  %v306_v39 = vadd.f32 %v3648_v13, %v296_v26  ;;  %v295_v40 = vadd.f32 %v287_v18, %v277_v28  ;;  %s4670_s1 = sld [smem:[#allocation7 + $0x4]] }
  0x39   :  { %219 = vrot.lane.b32.xlu1 %v196_v34, %s3395_s6  ;;  %217 = vrot.lane.b32.xlu0 %v195_v17, %s3395_s6  ;;  %v336_v42 = vmul.f32 0.16666667, %v328_v29  ;;  %v326_v7 = vmin.f32 %v318_v30, 5.0  ;;  %v399_v44 = vmul.f32 %v3697_v31, %v3446_v1  ;;  %v409_v45 = vmul.f32 %v3461_v4, %v3700_v35 }
  0x3a   :  { %v327_v46 = vmin.f32 %v319_v36, 5.0  ;;  %v323_v47 = vmax.f32 %v315_v37, 0.0  ;;  %v314_v49 = vadd.f32 3.0, %v306_v39  ;;  %v305_v50 = vadd.f32 %v3648_v13, %v295_v40 }
  0x3b   :  { %v334_v51 = vmul.f32 0.16666667, %v326_v7  ;;  %v417_v52 = vadd.f32 %v409_v45, %v399_v44  ;;  %v3713_v34 = vstv %s3683_s8  ;;  %v3716_v11 = vstv %s3688_s10  ;;  %s4725_s8 = sld [smem:[#allocation7 + $0x182]] }
  0x3c   :  { %v335_v56 = vmul.f32 0.16666667, %v327_v46  ;;  %v331_v57 = vmin.f32 %v323_v47, 5.0  ;;  %v322_v58 = vmax.f32 %v314_v49, 0.0  ;;  %v313_v59 = vadd.f32 3.0, %v305_v50  ;;  %s4771_s10 = sld [smem:[#allocation7 + $0x83]] }
  0x3d   :  { %350 = vrot.lane.b32.xlu2 %v334_v51, %s3395_s6  ;;  %v427_v60 = vmul.f32 %v3478_v8, %v3713_v34  ;;  %v263_v61 = vmul.f32 %v3632_v54, %v3569_v43  ;;  %v273_v63 = vmul.f32 %v3578_v48, %v3635_v55  ;;  %v291_v17 = vmul.f32 %v3588_v53, %v3643_v10 }
  0x3e   :  { %v339_v12 = vmul.f32 0.16666667, %v331_v57  ;;  %v330_v16 = vmin.f32 %v322_v58, 5.0  ;;  %v321_v18 = vmax.f32 %v313_v59, 0.0  ;;  %v262_v19 = vmul.f32 %v3632_v54, %v3599_v62 }
  0x3f   :  { %v435_v23 = vadd.f32 %v427_v60, %v417_v52  ;;  %v281_v26 = vadd.f32 %v273_v63, %v263_v61  ;;  %v272_v28 = vmul.f32 %v3610_v25, %v3635_v55  ;;  %v290_v29 = vmul.f32 %v3622_v41, %v3643_v10 }
  0x40   :  { %v338_v30 = vmul.f32 0.16666667, %v330_v16  ;;  %v329_v36 = vmin.f32 %v321_v18, 5.0  ;;  %v402_v37 = vmul.f32 %v3697_v31, %v3496_v14  ;;  %v412_v39 = vmul.f32 %v3501_v15, %v3700_v35 }
  0x41   :  { %354 = vrot.lane.b32.xlu1 %v336_v42, %s3395_s6  ;;  %352 = vrot.lane.b32.xlu0 %v335_v56, %s3395_s6  ;;  %v445_v54 = vadd.f32 %v3716_v11, %v435_v23  ;;  %v299_v40 = vadd.f32 %v291_v17, %v281_v26  ;;  %v280_v7 = vadd.f32 %v272_v28, %v262_v19  ;;  %v3741_v55 = vstv %s3709_s3  ;;  %s4805_s3 = sld [smem:[#allocation7 + $0x84]] }
  0x42   :  { %v337_v44 = vmul.f32 0.16666667, %v329_v36  ;;  %v420_v10 = vadd.f32 %v412_v39, %v402_v37  ;;  %v430_v45 = vmul.f32 %v3514_v20, %v3713_v34  ;;  %v401_v46 = vmul.f32 %v3697_v31, %v3441_v0 }
  0x43   :  { %v453_v47 = vadd.f32 3.0, %v445_v54  ;;  %v309_v49 = vadd.f32 %v3648_v13, %v299_v40  ;;  %v298_v42 = vadd.f32 %v290_v29, %v280_v7  ;;  %v411_v50 = vmul.f32 %v3456_v3, %v3700_v35 }
  0x44   :  { %v438_v51 = vadd.f32 %v430_v45, %v420_v10  ;;  %v429_v52 = vmul.f32 %v3471_v6, %v3713_v34  ;;  %v400_v56 = vmul.f32 %v3697_v31, %v3519_v21  ;;  %v410_v57 = vmul.f32 %v3524_v22, %v3700_v35 }
  0x45   :  { %356 = vrot.lane.b32.xlu2 %v337_v44, %s3395_s6  ;;  %v461_v58 = vmax.f32 %v453_v47, 0.0  ;;  %v317_v59 = vadd.f32 3.0, %v309_v49  ;;  %v308_v60 = vadd.f32 %v3648_v13, %v298_v42  ;;  %v419_v61 = vadd.f32 %v411_v50, %v401_v46 }
  0x46   :  { %v448_v63 = vadd.f32 %v3716_v11, %v438_v51  ;;  %v418_v17 = vadd.f32 %v410_v57, %v400_v56  ;;  %v428_v16 = vmul.f32 %v3537_v27, %v3713_v34  ;;  %v405_v18 = vmul.f32 %v3697_v31, %v3599_v62 }
  0x47   :  { %v469_v19 = vmin.f32 %v461_v58, 5.0  ;;  %v325_v23 = vmax.f32 %v317_v59, 0.0  ;;  %v316_v26 = vadd.f32 3.0, %v308_v60  ;;  %v437_v28 = vadd.f32 %v429_v52, %v419_v61 }
  0x48   :  { %v456_v29 = vadd.f32 3.0, %v448_v63  ;;  %v436_v36 = vadd.f32 %v428_v16, %v418_v17  ;;  %v415_v37 = vmul.f32 %v3610_v25, %v3700_v35  ;;  %v433_v39 = vmul.f32 %v3622_v41, %v3713_v34 }
  0x49   :  { %360 = vrot.lane.b32.xlu1 %v339_v12, %s3395_s6  ;;  %358 = vrot.lane.b32.xlu0 %v338_v30, %s3395_s6  ;;  %v477_v54 = vmul.f32 0.16666667, %v469_v19  ;;  %v333_v40 = vmin.f32 %v325_v23, 5.0  ;;  %v324_v7 = vmax.f32 %v316_v26, 0.0  ;;  %v447_v44 = vadd.f32 %v3716_v11, %v437_v28 }
  0x4a   :  { %v464_v10 = vmax.f32 %v456_v29, 0.0  ;;  %v446_v45 = vadd.f32 %v3716_v11, %v436_v36  ;;  %v423_v46 = vadd.f32 %v415_v37, %v405_v18  ;;  %v404_v47 = vmul.f32 %v3697_v31, %v3544_v32 }
  0x4b   :  { %v341_v49 = vmul.f32 0.16666667, %v333_v40  ;;  %v332_v42 = vmin.f32 %v324_v7, 5.0  ;;  %v455_v50 = vadd.f32 3.0, %v447_v44  ;;  %v414_v12 = vmul.f32 %v3549_v33, %v3700_v35 }
  0x4c   :  { %v472_v30 = vmin.f32 %v464_v10, 5.0  ;;  %v454_v51 = vadd.f32 3.0, %v446_v45  ;;  %v441_v52 = vadd.f32 %v433_v39, %v423_v46  ;;  %v432_v56 = vmul.f32 %v3562_v38, %v3713_v34 }
  0x4d   :  { %v340_v57 = vmul.f32 0.16666667, %v332_v42  ;;  %v463_v58 = vmax.f32 %v455_v50, 0.0  ;;  %v422_v59 = vadd.f32 %v414_v12, %v404_v47  ;;  %v403_v60 = vmul.f32 %v3697_v31, %v3451_v2 }
  0x4e   :  { %v480_v61 = vmul.f32 0.16666667, %v472_v30  ;;  %v462_v63 = vmax.f32 %v454_v51, 0.0  ;;  %v451_v17 = vadd.f32 %v3716_v11, %v441_v52  ;;  %v413_v16 = vmul.f32 %v3466_v5, %v3700_v35 }
  0x4f   :  { %362 = vrot.lane.b32.xlu2 %v340_v57, %s3395_s6  ;;  %v471_v18 = vmin.f32 %v463_v58, 5.0  ;;  %v440_v19 = vadd.f32 %v432_v56, %v422_v59  ;;  %v431_v23 = vmul.f32 %v3483_v9, %v3713_v34  ;;  %v543_v26 = vmul.f32 %v3741_v55, %v3519_v21 }
  0x50   :  { %v470_v28 = vmin.f32 %v462_v63, 5.0  ;;  %v459_v29 = vadd.f32 3.0, %v451_v17  ;;  %v421_v36 = vadd.f32 %v413_v16, %v403_v60  ;;  %v3794_v37 = vstv %s3767_s11  ;;  %s4850_s11 = sld [smem:[#allocation7 + $0x103]] }
  0x51   :  { %493 = vrot.lane.b32.xlu1 %v477_v54, %s3395_s6  ;;  %364 = vrot.lane.b32.xlu0 %v341_v49, %s3395_s6  ;;  %v479_v39 = vmul.f32 0.16666667, %v471_v18  ;;  %v450_v40 = vadd.f32 %v3716_v11, %v440_v19  ;;  %v553_v7 = vmul.f32 %v3524_v22, %v3794_v37  ;;  %v3802_v44 = vstv %s3772_s4  ;;  %s4899_s4 = sld [smem:[#allocation7 + $0x104]] }
  0x52   :  { %v478_v10 = vmul.f32 0.16666667, %v470_v28  ;;  %v467_v45 = vmax.f32 %v459_v29, 0.0  ;;  %v439_v46 = vadd.f32 %v431_v23, %v421_v36  ;;  %v571_v47 = vmul.f32 %v3537_v27, %v3802_v44 }
  0x53   :  { %v458_v42 = vadd.f32 3.0, %v450_v40  ;;  %v561_v50 = vadd.f32 %v553_v7, %v543_v26  ;;  %v3807_v12 = vstv %s3779_s9  ;;  %v542_v54 = vmul.f32 %v3741_v55, %v3446_v1  ;;  %s4239_s9 = sld [smem:[#allocation3 + $0x380]] }
  0x54   :  { %v475_v49 = vmin.f32 %v467_v45, 5.0  ;;  %v449_v30 = vadd.f32 %v3716_v11, %v439_v46  ;;  %v552_v51 = vmul.f32 %v3461_v4, %v3794_v37  ;;  %v570_v52 = vmul.f32 %v3478_v8, %v3802_v44 }
  0x55   :  { %v466_v56 = vmax.f32 %v458_v42, 0.0  ;;  %v579_v57 = vadd.f32 %v571_v47, %v561_v50  ;;  %v406_v58 = vmul.f32 %v3697_v31, %v3569_v43  ;;  %v416_v59 = vmul.f32 %v3578_v48, %v3700_v35 }
  0x56   :  { %v483_v60 = vmul.f32 0.16666667, %v475_v49  ;;  %v457_v63 = vadd.f32 3.0, %v449_v30  ;;  %v560_v17 = vadd.f32 %v552_v51, %v542_v54  ;;  %v434_v16 = vmul.f32 %v3588_v53, %v3713_v34 }
  0x57   :  { %495 = vrot.lane.b32.xlu2 %v478_v10, %s3395_s6  ;;  %v474_v18 = vmin.f32 %v466_v56, 5.0  ;;  %v589_v19 = vadd.f32 %v3807_v12, %v579_v57  ;;  %v424_v23 = vadd.f32 %v416_v59, %v406_v58  ;;  %v546_v26 = vmul.f32 %v3741_v55, %v3451_v2 }
  0x58   :  { %v465_v28 = vmax.f32 %v457_v63, 0.0  ;;  %v578_v31 = vadd.f32 %v570_v52, %v560_v17  ;;  %v556_v35 = vmul.f32 %v3466_v5, %v3794_v37  ;;  %v574_v29 = vmul.f32 %v3483_v9, %v3802_v44 }
  0x59   :  { %499 = vrot.lane.b32.xlu1 %v480_v61, %s3395_s6  ;;  %497 = vrot.lane.b32.xlu0 %v479_v39, %s3395_s6  ;;  %v482_v34 = vmul.f32 0.16666667, %v474_v18  ;;  %v597_v36 = vadd.f32 3.0, %v589_v19  ;;  %v442_v40 = vadd.f32 %v434_v16, %v424_v23  ;;  %v545_v7 = vmul.f32 %v3741_v55, %v3496_v14 }
  0x5a   :  { %v473_v10 = vmin.f32 %v465_v28, 5.0  ;;  %v588_v45 = vadd.f32 %v3807_v12, %v578_v31  ;;  %v564_v46 = vadd.f32 %v556_v35, %v546_v26  ;;  %v555_v47 = vmul.f32 %v3501_v15, %v3794_v37 }
  0x5b   :  { %v605_v42 = vmax.f32 %v597_v36, 0.0  ;;  %v452_v50 = vadd.f32 %v3716_v11, %v442_v40  ;;  %v573_v61 = vmul.f32 %v3514_v20, %v3802_v44  ;;  %v544_v39 = vmul.f32 %v3741_v55, %v3441_v0 }
  0x5c   :  { %v481_v54 = vmul.f32 0.16666667, %v473_v10  ;;  %v596_v49 = vadd.f32 3.0, %v588_v45  ;;  %v582_v30 = vadd.f32 %v574_v29, %v564_v46  ;;  %v563_v51 = vadd.f32 %v555_v47, %v545_v7 }
  0x5d   :  { %v613_v52 = vmin.f32 %v605_v42, 5.0  ;;  %v460_v56 = vadd.f32 3.0, %v452_v50  ;;  %v554_v57 = vmul.f32 %v3456_v3, %v3794_v37  ;;  %v572_v58 = vmul.f32 %v3471_v6, %v3802_v44 }
  0x5e   :  { %v604_v59 = vmax.f32 %v596_v49, 0.0  ;;  %v592_v11 = vadd.f32 %v3807_v12, %v582_v30  ;;  %v581_v63 = vadd.f32 %v573_v61, %v563_v51  ;;  %v549_v17 = vmul.f32 %v3741_v55, %v3569_v43 }
  0x5f   :  { %501 = vrot.lane.b32.xlu2 %v481_v54, %s3395_s6  ;;  %v621_v16 = vmul.f32 0.16666667, %v613_v52  ;;  %v468_v18 = vmax.f32 %v460_v56, 0.0  ;;  %v562_v19 = vadd.f32 %v554_v57, %v544_v39  ;;  %v559_v23 = vmul.f32 %v3578_v48, %v3794_v37 }
  0x60   :  { %v612_v26 = vmin.f32 %v604_v59, 5.0  ;;  %v600_v28 = vadd.f32 3.0, %v592_v11  ;;  %v591_v31 = vadd.f32 %v3807_v12, %v581_v63  ;;  %v577_v35 = vmul.f32 %v3588_v53, %v3802_v44 }
  0x61   :  { %505 = vrot.lane.b32.xlu1 %v483_v60, %s3395_s6  ;;  %503 = vrot.lane.b32.xlu0 %v482_v34, %s3395_s6  ;;  %v476_v29 = vmin.f32 %v468_v18, 5.0  ;;  %v580_v36 = vadd.f32 %v572_v58, %v562_v19  ;;  %v567_v40 = vadd.f32 %v559_v23, %v549_v17  ;;  %v548_v7 = vmul.f32 %v3741_v55, %v3599_v62 }
  0x62   :  { %v620_v10 = vmul.f32 0.16666667, %v612_v26  ;;  %v608_v45 = vmax.f32 %v600_v28, 0.0  ;;  %v599_v46 = vadd.f32 3.0, %v591_v31  ;;  %v558_v47 = vmul.f32 %v3610_v25, %v3794_v37 }
  0x63   :  { %v484_v42 = vmul.f32 0.16666667, %v476_v29  ;;  %v590_v60 = vadd.f32 %v3807_v12, %v580_v36  ;;  %v585_v50 = vadd.f32 %v577_v35, %v567_v40  ;;  %v576_v34 = vmul.f32 %v3622_v41, %v3802_v44 }
  0x64   :  { %v616_v61 = vmin.f32 %v608_v45, 5.0  ;;  %v607_v39 = vmax.f32 %v599_v46, 0.0  ;;  %v566_v54 = vadd.f32 %v558_v47, %v548_v7  ;;  %v547_v49 = vmul.f32 %v3741_v55, %v3544_v32 }
  0x65   :  { %v598_v30 = vadd.f32 3.0, %v590_v60  ;;  %v595_v51 = vadd.f32 %v3807_v12, %v585_v50  ;;  %v557_v52 = vmul.f32 %v3549_v33, %v3794_v37  ;;  %v575_v56 = vmul.f32 %v3562_v38, %v3802_v44 }
  0x66   :  { %v624_v57 = vmul.f32 0.16666667, %v616_v61  ;;  %v584_v58 = vadd.f32 %v576_v34, %v566_v54  ;;  %v3880_v59 = vstv %s3849_s12  ;;  %v615_v18 = vmin.f32 %v607_v39, 5.0  ;;  %s4244_s12 = sld [smem:[#allocation3 + $0x381]] }
  0x67   :  { %507 = vrot.lane.b32.xlu2 %v484_v42, %s3395_s6  ;;  %v606_v11 = vmax.f32 %v598_v30, 0.0  ;;  %v603_v63 = vadd.f32 3.0, %v595_v51  ;;  %v565_v55 = vadd.f32 %v557_v52, %v547_v49  ;;  %v687_v17 = vmul.f32 %v3880_v59, %v3441_v0 }
  0x68   :  { %v594_v19 = vadd.f32 %v3807_v12, %v584_v58  ;;  %v3887_v37 = vstv %s3854_s13  ;;  %v3890_v23 = vstv %s3859_s14  ;;  %v3899_v29 = vstv %s3867_s15  ;;  %s4248_s13 = sld [smem:[#allocation3 + $0x382]] }
  0x69   :  { %638 = vrot.lane.b32.xlu1 %v621_v16, %s3395_s6  ;;  %636 = vrot.lane.b32.xlu0 %v620_v10, %s3395_s6  ;;  %v614_v44 = vmin.f32 %v606_v11, 5.0  ;;  %v611_v26 = vmax.f32 %v603_v63, 0.0  ;;  %v583_v28 = vadd.f32 %v575_v56, %v565_v55  ;;  %v697_v31 = vmul.f32 %v3456_v3, %v3887_v37  ;;  %s4251_s14 = sld [smem:[#allocation5 + $0x7]] }
  0x6a   :  { %v602_v35 = vadd.f32 3.0, %v594_v19  ;;  %v715_v0 = vmul.f32 %v3471_v6, %v3890_v23  ;;  %v686_v36 = vmul.f32 %v3880_v59, %v3519_v21  ;;  %v696_v46 = vmul.f32 %v3524_v22, %v3887_v37  ;;  %s5082_s15 = sld [smem:[#allocation7 + $0x202]] }
  0x6b   :  { %v622_v40 = vmul.f32 0.16666667, %v614_v44  ;;  %v619_v7 = vmin.f32 %v611_v26, 5.0  ;;  %v593_v16 = vadd.f32 %v3807_v12, %v583_v28  ;;  %v705_v10 = vadd.f32 %v697_v31, %v687_v17 }
  0x6c   :  { %v610_v45 = vmax.f32 %v602_v35, 0.0  ;;  %v714_v3 = vmul.f32 %v3537_v27, %v3890_v23  ;;  %v685_v6 = vmul.f32 %v3880_v59, %v3446_v1  ;;  %v623_v47 = vmul.f32 0.16666667, %v615_v18 }
  0x6d   :  { %v601_v42 = vadd.f32 3.0, %v593_v16  ;;  %v723_v60 = vadd.f32 %v715_v0, %v705_v10  ;;  %v695_v50 = vmul.f32 %v3461_v4, %v3887_v37  ;;  %v627_v34 = vmul.f32 0.16666667, %v619_v7 }
  0x6e   :  { %v704_v61 = vadd.f32 %v696_v46, %v686_v36  ;;  %v713_v12 = vmul.f32 %v3478_v8, %v3890_v23  ;;  %v690_v39 = vmul.f32 %v3880_v59, %v3544_v32  ;;  %v700_v51 = vmul.f32 %v3549_v33, %v3887_v37 }
  0x6f   :  { %640 = vrot.lane.b32.xlu2 %v622_v40, %s3395_s6  ;;  %v609_v54 = vmax.f32 %v601_v42, 0.0  ;;  %v733_v49 = vadd.f32 %v3899_v29, %v723_v60  ;;  %v703_v30 = vadd.f32 %v695_v50, %v685_v6  ;;  %v618_v52 = vmin.f32 %v610_v45, 5.0 }
  0x70   :  { %v722_v56 = vadd.f32 %v714_v3, %v704_v61  ;;  %v718_v58 = vmul.f32 %v3562_v38, %v3890_v23  ;;  %v689_v11 = vmul.f32 %v3880_v59, %v3451_v2  ;;  %v708_v17 = vadd.f32 %v700_v51, %v690_v39 }
  0x71   :  { %644 = vrot.lane.b32.xlu1 %v624_v57, %s3395_s6  ;;  %642 = vrot.lane.b32.xlu0 %v623_v47, %s3395_s6  ;;  %v617_v32 = vmin.f32 %v609_v54, 5.0  ;;  %v741_v63 = vadd.f32 3.0, %v733_v49  ;;  %v721_v55 = vadd.f32 %v713_v12, %v703_v30  ;;  %v699_v18 = vmul.f32 %v3466_v5, %v3887_v37 }
  0x72   :  { %v732_v33 = vadd.f32 %v3899_v29, %v722_v56  ;;  %v717_v38 = vmul.f32 %v3483_v9, %v3890_v23  ;;  %v96_v2 = vadd.f32 3.0, %v3528_v24  ;;  %v726_v26 = vadd.f32 %v718_v58, %v708_v17 }
  0x73   :  { %v625_v57 = vmul.f32 0.16666667, %v617_v32  ;;  %v749_v19 = vmax.f32 %v741_v63, 0.0  ;;  %v731_v44 = vadd.f32 %v3899_v29, %v721_v55  ;;  %v626_v28 = vmul.f32 0.16666667, %v618_v52 }
  0x74   :  { %v740_v31 = vadd.f32 3.0, %v732_v33  ;;  %v707_v35 = vadd.f32 %v699_v18, %v689_v11  ;;  %v97_v0 = vmax.f32 %v96_v2, 0.0  ;;  %v736_v9 = vadd.f32 %v3899_v29, %v726_v26 }
  0x75   :  { %v757_v5 = vmin.f32 %v749_v19, 5.0  ;;  %v739_v36 = vadd.f32 3.0, %v731_v44  ;;  %v688_v16 = vmul.f32 %v3880_v59, %v3496_v14  ;;  %v698_v3 = vmul.f32 %v3501_v15, %v3887_v37 }
  0x76   :  { %v748_v24 = vmax.f32 %v740_v31, 0.0  ;;  %v725_v40 = vadd.f32 %v717_v38, %v707_v35  ;;  %v98_v7 = vmin.f32 %v97_v0, 5.0  ;;  %v744_v46 = vadd.f32 3.0, %v736_v9 }
  0x77   :  { %646 = vrot.lane.b32.xlu2 %v625_v57, %s3395_s6  ;;  %v765_v10 = vmul.f32 0.16666667, %v757_v5  ;;  %v747_v45 = vmax.f32 %v739_v36, 0.0  ;;  %v716_v60 = vmul.f32 %v3514_v20, %v3890_v23  ;;  %v706_v12 = vadd.f32 %v698_v3, %v688_v16 }
  0x78   :  { %v756_v6 = vmin.f32 %v748_v24, 5.0  ;;  %v735_v47 = vadd.f32 %v3899_v29, %v725_v40  ;;  %v99_v42 = vmul.f32 0.16666667, %v98_v7  ;;  %v752_v61 = vmax.f32 %v744_v46, 0.0 }
  0x79   :  { %650 = vrot.lane.b32.xlu1 %v627_v34, %s3395_s6  ;;  %648 = vrot.lane.b32.xlu0 %v626_v28, %s3395_s6  ;;  %v755_v50 = vmin.f32 %v747_v45, 5.0  ;;  %v3953_v39 = vstv %s3926_s16  ;;  %v3959_v51 = vstv %s3934_s17  ;;  %v724_v56 = vadd.f32 %v716_v60, %v706_v12  ;;  %s5097_s16 = sld [smem:[#allocation7 + $0x5]] }
  0x7a   :  { %v764_v54 = vmul.f32 0.16666667, %v756_v6  ;;  %v743_v49 = vadd.f32 3.0, %v735_v47  ;;  %105 = vst.msk [vmem:[#allocation2 + $0x20] sm:$0xff] %vm100_vm0, %v99_v42  ;;  %v828_v30 = vmul.f32 %v3953_v39, %v3446_v1  ;;  %v760_v52 = vmin.f32 %v752_v61, 5.0  ;;  %s5140_s17 = sld [smem:[#allocation7 + $0x6]] }
  0x7b   :  { %v763_v34 = vmul.f32 0.16666667, %v755_v50  ;;  %106 = vst.msk [vmem:[#allocation2 + $0x28] sm:$0xff] %vm100_vm0, %v99_v42  ;;  %v838_v58 = vmul.f32 %v3461_v4, %v3959_v51  ;;  %v3966_v32 = vstv %s3937_s18  ;;  %v3969_v63 = vstv %s3939_s19  ;;  %s5156_s18 = sld [smem:[#allocation7 + $0x7]] }
  0x7c   :  { %v751_v11 = vmax.f32 %v743_v49, 0.0  ;;  %101 = vst.msk [vmem:[#allocation2] sm:$0xff] %vm100_vm0, %v99_v42  ;;  %v692_v1 = vmul.f32 %v3880_v59, %v3569_v43  ;;  %v768_v55 = vmul.f32 0.16666667, %v760_v52  ;;  %v734_v17 = vadd.f32 %v3899_v29, %v724_v56  ;;  %s5172_s19 = sld [smem:[#allocation8]] }
  0x7d   :  { %102 = vst.msk [vmem:[#allocation2 + $0x8] sm:$0xff] %vm100_vm0, %v99_v42  ;;  %v846_v33 = vadd.f32 %v838_v58, %v828_v30  ;;  %v856_v18 = vmul.f32 %v3478_v8, %v3966_v32  ;;  %v702_v38 = vmul.f32 %v3578_v48, %v3887_v37  ;;  %v720_v2 = vmul.f32 %v3588_v53, %v3890_v23 }
  0x7e   :  { %v759_v4 = vmin.f32 %v751_v11, 5.0  ;;  %103 = vst.msk [vmem:[#allocation2 + $0x10] sm:$0xff] %vm100_vm0, %v99_v42  ;;  %v691_v43 = vmul.f32 %v3880_v59, %v3599_v62  ;;  %v742_v57 = vadd.f32 3.0, %v734_v17  ;;  %v701_v8 = vmul.f32 %v3610_v25, %v3887_v37 }
  0x7f   :  { %779 = vrot.lane.b32.xlu2 %v763_v34, %s3395_s6  ;;  %104 = vst.msk [vmem:[#allocation2 + $0x18] sm:$0xff] %vm100_vm0, %v99_v42  ;;  %v864_v19 = vadd.f32 %v856_v18, %v846_v33  ;;  %v719_v44 = vmul.f32 %v3622_v41, %v3890_v23  ;;  %v710_v48 = vadd.f32 %v702_v38, %v692_v1  ;;  %v241_v31 = vadd.f32 3.0, %v3648_v13  ;;  %v4012_v13 = vld [vmem:[%s7682_s0 + $0x50] sm:$0xff] }
  0x80   :  { %v767_v26 = vmul.f32 0.16666667, %v759_v4  ;;  %107 = vst.msk [vmem:[#allocation2 + $0x30] sm:$0xff] %vm100_vm0, %v99_v42  ;;  %v831_v53 = vmul.f32 %v3953_v39, %v3496_v14  ;;  %v841_v59 = vmul.f32 %v3501_v15, %v3959_v51  ;;  %v750_v37 = vmax.f32 %v742_v57, 0.0  ;;  %v4005_v15 = vld [vmem:[%s7682_s0 + $0x10] sm:$0xff] }
  0x81   :  { %783 = vrot.lane.b32.xlu1 %v765_v10, %s3395_s6  ;;  %781 = vrot.lane.b32.xlu0 %v764_v54, %s3395_s6  ;;  %108 = vst.msk [vmem:[#allocation2 + $0x38] sm:$0xff] %vm100_vm0, %v99_v42  ;;  %v874_v28 = vadd.f32 %v3969_v63, %v864_v19  ;;  %v709_v23 = vadd.f32 %v701_v8, %v691_v43  ;;  %v4020_v10 = vld [vmem:[%s7682_s0 + $0x90] sm:$0xff]  ;;  %v242_v30 = vmax.f32 %v241_v31, 0.0  ;;  %v4073_v31 = vld [vmem:[%s7682_s0 + $0xa8] sm:$0xff] }
  0x82   :  { %v728_v35 = vadd.f32 %v720_v2, %v710_v48  ;;  %v849_v0 = vadd.f32 %v841_v59, %v831_v53  ;;  %v859_v14 = vmul.f32 %v3514_v20, %v3966_v32  ;;  %v830_v5 = vmul.f32 %v4005_v15, %v3953_v39  ;;  %v4056_v48 = vld [vmem:[%s7682_s0 + $0x28] sm:$0xff] }
  0x83   :  { %v758_v36 = vmin.f32 %v750_v37, 5.0  ;;  %v882_v9 = vadd.f32 3.0, %v874_v28  ;;  %v727_v24 = vadd.f32 %v719_v44, %v709_v23  ;;  %v840_v40 = vmul.f32 %v4012_v13, %v3959_v51  ;;  %v4063_v53 = vld [vmem:[%s7682_s0 + $0x68] sm:$0xff] }
  0x84   :  { %v214_v20 = vpop.permute.xlu2 %213  ;;  %v738_v7 = vadd.f32 %v3899_v29, %v728_v35  ;;  %v867_v16 = vadd.f32 %v859_v14, %v849_v0  ;;  %v858_v45 = vmul.f32 %v4020_v10, %v3966_v32  ;;  %v829_v46 = vmul.f32 %v3953_v39, %v3519_v21 }
  0x85   :  { %234 = vst.msk [vmem:[#allocation2 + $0x21] sm:$0xff] %vm229_vm1, %v214_v20  ;;  %v766_v3 = vmul.f32 0.16666667, %v758_v36  ;;  %v890_v6 = vmax.f32 %v882_v9, 0.0  ;;  %v737_v47 = vadd.f32 %v3899_v29, %v727_v24  ;;  %v848_v42 = vadd.f32 %v840_v40, %v830_v5  ;;  %v4082_v5 = vld [vmem:[%s7682_s0 + $0x20] sm:$0xff] }
  0x86   :  { %v746_v60 = vadd.f32 3.0, %v738_v7  ;;  %v877_v50 = vadd.f32 %v3969_v63, %v867_v16  ;;  %v839_v61 = vmul.f32 %v3524_v22, %v3959_v51  ;;  %v857_v12 = vmul.f32 %v3537_v27, %v3966_v32  ;;  %v4089_v9 = vld [vmem:[%s7682_s0 + $0x60] sm:$0xff] }
  0x87   :  { %785 = vrot.lane.b32.xlu2 %v766_v3, %s3395_s6  ;;  %v898_v54 = vmin.f32 %v890_v6, 5.0  ;;  %v745_v21 = vadd.f32 3.0, %v737_v47  ;;  %v866_v49 = vadd.f32 %v858_v45, %v848_v42  ;;  %v834_v58 = vmul.f32 %v3953_v39, %v3599_v62  ;;  %v4098_v7 = vld [vmem:[%s7682_s0 + $0xa0] sm:$0xff] }
  0x88   :  { %v754_v34 = vmax.f32 %v746_v60, 0.0  ;;  %v885_v52 = vadd.f32 3.0, %v877_v50  ;;  %v847_v56 = vadd.f32 %v839_v61, %v829_v46  ;;  %v243_v1 = vmin.f32 %v242_v30, 5.0  ;;  %v4115_v50 = vld [vmem:[%s7682_s0 + $0x8] sm:$0xff] }
  0x89   :  { %789 = vrot.lane.b32.xlu1 %v768_v55, %s3395_s6  ;;  %787 = vrot.lane.b32.xlu0 %v767_v26, %s3395_s6  ;;  %v906_v22 = vmul.f32 0.16666667, %v898_v54  ;;  %v753_v27 = vmax.f32 %v745_v21, 0.0  ;;  %v876_v11 = vadd.f32 %v3969_v63, %v866_v49  ;;  %v844_v4 = vmul.f32 %v3610_v25, %v3959_v51 }
  0x8a   :  { %v762_v17 = vmin.f32 %v754_v34, 5.0  ;;  %v893_v33 = vmax.f32 %v885_v52, 0.0  ;;  %v865_v18 = vadd.f32 %v857_v12, %v847_v56  ;;  %v244_v55 = vmul.f32 0.16666667, %v243_v1  ;;  %v4122_v12 = vld [vmem:[%s7682_s0 + $0x48] sm:$0xff] }
  0x8b   :  { %v761_v62 = vmin.f32 %v753_v27, 5.0  ;;  %v884_v38 = vadd.f32 3.0, %v876_v11  ;;  %v862_v2 = vmul.f32 %v3622_v41, %v3966_v32  ;;  %v852_v44 = vadd.f32 %v844_v4, %v834_v58 }
  0x8c   :  { %v770_v43 = vmul.f32 0.16666667, %v762_v17  ;;  %v216_v57 = vpop.permute.xlu2 %215  ;;  %v901_v19 = vmin.f32 %v893_v33, 5.0  ;;  %v875_v8 = vadd.f32 %v3969_v63, %v865_v18  ;;  %v833_v41 = vmul.f32 %v4056_v48, %v3953_v39  ;;  %246 = vst.msk [vmem:[#allocation2 + $0x40] sm:$0xff] %vm100_vm0, %v244_v55  ;;  %v4147_v17 = vld [vmem:[%s7682_s0] sm:$0xff] }
  0x8d   :  { %235 = vst.msk [vmem:[#allocation2 + $0x29] sm:$0xff] %vm229_vm1, %v216_v57  ;;  %v769_v26 = vmul.f32 0.16666667, %v761_v62  ;;  %v892_v25 = vmax.f32 %v884_v38, 0.0  ;;  %v843_v59 = vmul.f32 %v4063_v53, %v3959_v51  ;;  %v870_v23 = vadd.f32 %v862_v2, %v852_v44  ;;  %v4154_v18 = vld [vmem:[%s7682_s0 + $0x40] sm:$0xff] }
  0x8e   :  { %v4067_v37 = vmul.f32 0.16666667, %v901_v19  ;;  %v883_v28 = vadd.f32 3.0, %v875_v8  ;;  %v861_v35 = vmul.f32 %v4073_v31, %v3966_v32  ;;  %247 = vst.msk [vmem:[#allocation2 + $0x48] sm:$0xff] %vm100_vm0, %v244_v55  ;;  %v832_v36 = vmul.f32 %v4082_v5, %v3953_v39  ;;  %v4169_v44 = vld [vmem:[%s7682_s0 + $0x38] sm:$0x3f] }
  0x8f   :  { %791 = vrot.lane.b32.xlu2 %v769_v26, %s3395_s6  ;;  %v900_v0 = vmin.f32 %v892_v25, 5.0  ;;  %v851_v14 = vadd.f32 %v843_v59, %v833_v41  ;;  %v842_v24 = vmul.f32 %v4089_v9, %v3959_v51  ;;  %248 = vst.msk [vmem:[#allocation2 + $0x50] sm:$0xff] %vm100_vm0, %v244_v55  ;;  %v880_v20 = vadd.f32 %v3969_v63, %v870_v23  ;;  %v4180_v59 = vld [vmem:[%s7682_s0 + $0x78] sm:$0x3f] }
  0x90   :  { %v891_v40 = vmax.f32 %v883_v28, 0.0  ;;  %v860_v16 = vmul.f32 %v4098_v7, %v3966_v32  ;;  %v4103_v45 = vstv %s4036_s26  ;;  %249 = vst.msk [vmem:[#allocation2 + $0x58] sm:$0xff] %vm100_vm0, %v244_v55  ;;  %v4109_v47 = vstv %s4041_s27  ;;  %v4187_v23 = vld [vmem:[%s7682_s0 + $0xb8] sm:$0x3f]  ;;  %s4469_s26 = sld [smem:[#allocation7 + $0x100]] }
  0x91   :  { %922 = vrot.lane.b32.xlu1 %v906_v22, %s3395_s6  ;;  %793 = vrot.lane.b32.xlu0 %v770_v43, %s3395_s6  ;;  %v908_v46 = vmul.f32 0.16666667, %v900_v0  ;;  %v869_v3 = vadd.f32 %v861_v35, %v851_v14  ;;  %v850_v6 = vadd.f32 %v842_v24, %v832_v36  ;;  %250 = vst.msk [vmem:[#allocation2 + $0x60] sm:$0xff] %vm100_vm0, %v244_v55  ;;  %v888_v60 = vadd.f32 3.0, %v880_v20  ;;  %v4138_v22 = vld [vmem:[%s7682_s0 + $0x88] sm:$0xff]  ;;  %s4481_s27 = sld [smem:[#allocation7 + $0x101]] }
  0x92   :  { %v899_v42 = vmin.f32 %v891_v40, 5.0  ;;  %v972_v61 = vmul.f32 %v4115_v50, %v4103_v45  ;;  %v982_v54 = vmul.f32 %v4122_v12, %v4109_v47  ;;  %251 = vst.msk [vmem:[#allocation2 + $0x68] sm:$0xff] %vm100_vm0, %v244_v55  ;;  %v4129_v30 = vstv %s4045_s28  ;;  %s4173_s28 = sld [smem:[#allocation5 + $0x2]] }
  0x93   :  { %v879_v21 = vadd.f32 %v3969_v63, %v869_v3  ;;  %v868_v49 = vadd.f32 %v860_v16, %v850_v6  ;;  %v4132_v34 = vstv %s4049_s29  ;;  %252 = vst.msk [vmem:[#allocation2 + $0x70] sm:$0xff] %vm100_vm0, %v244_v55  ;;  %v896_v56 = vmax.f32 %v888_v60, 0.0  ;;  %v4204_v6 = vld [vmem:[%s7682_s0 + $0x18] sm:$0xff]  ;;  %s4582_s29 = sld [smem:[#allocation7 + $0x102]] }
  0x94   :  { %v907_v52 = vmul.f32 0.16666667, %v899_v42  ;;  %v990_v58 = vadd.f32 %v982_v54, %v972_v61  ;;  %v1000_v27 = vmul.f32 %v4138_v22, %v4129_v30  ;;  %253 = vst.msk [vmem:[#allocation2 + $0x78] sm:$0xff] %vm100_vm0, %v244_v55  ;;  %v971_v33 = vmul.f32 %v4147_v17, %v4103_v45  ;;  %v4161_v55 = vld [vmem:[%s7682_s0 + $0x80] sm:$0xff] }
  0x95   :  { %v887_v11 = vadd.f32 3.0, %v879_v21  ;;  %v878_v1 = vadd.f32 %v3969_v63, %v868_v49  ;;  %v981_v4 = vmul.f32 %v4154_v18, %v4109_v47  ;;  %v904_v62 = vmin.f32 %v896_v56, 5.0  ;;  %v4212_v21 = vld [vmem:[%s7682_s0 + $0x58] sm:$0xff] }
  0x96   :  { %v1008_v38 = vadd.f32 %v1000_v27, %v990_v58  ;;  %v999_v2 = vmul.f32 %v4161_v55, %v4129_v30  ;;  %v835_v26 = vmul.f32 %v4169_v44, %v3953_v39  ;;  %v845_v28 = vmul.f32 %v4180_v59, %v3959_v51  ;;  %v4220_v58 = vld [vmem:[%s7682_s0 + $0x98] sm:$0xff] }
  0x97   :  { %924 = vrot.lane.b32.xlu2 %v907_v52, %s3395_s6  ;;  %v351_v43 = vpop.permute.xlu2 %350  ;;  %v895_v57 = vmax.f32 %v887_v11, 0.0  ;;  %v886_v19 = vadd.f32 3.0, %v878_v1  ;;  %v989_v8 = vadd.f32 %v981_v4, %v971_v33  ;;  %v912_v25 = vmul.f32 0.16666667, %v904_v62 }
  0x98   :  { %374 = vst.msk [vmem:[#allocation2 + $0x41] sm:$0xff] %vm229_vm1, %v351_v43  ;;  %v1018_v41 = vadd.f32 %v4132_v34, %v1008_v38  ;;  %v863_v39 = vmul.f32 %v4187_v23, %v3966_v32  ;;  %v975_v36 = vmul.f32 %v4082_v5, %v4103_v45  ;;  %v853_v24 = vadd.f32 %v845_v28, %v835_v26 }
  0x99   :  { %928 = vrot.lane.b32.xlu1 %v4067_v37, %s3395_s6  ;;  %926 = vrot.lane.b32.xlu0 %v908_v46, %s3395_s6  ;;  %v903_v35 = vmin.f32 %v895_v57, 5.0  ;;  %v894_v0 = vmax.f32 %v886_v19, 0.0  ;;  %v1007_v14 = vadd.f32 %v999_v2, %v989_v8  ;;  %v985_v40 = vmul.f32 %v4089_v9, %v4109_v47 }
  0x9a   :  { %v1026_v51 = vadd.f32 3.0, %v1018_v41  ;;  %v1003_v20 = vmul.f32 %v4098_v7, %v4129_v30  ;;  %v974_v42 = vmul.f32 %v4204_v6, %v4103_v45  ;;  %v871_v61 = vadd.f32 %v863_v39, %v853_v24 }
  0x9b   :  { %v210_v32 = vpop.permute.xlu1 %209  ;;  %v206_v16 = vpop.permute.xlu0 %205  ;;  %v911_v3 = vmul.f32 0.16666667, %v903_v35  ;;  %v902_v37 = vmin.f32 %v894_v0, 5.0  ;;  %v1017_v46 = vadd.f32 %v4132_v34, %v1007_v14  ;;  %v993_v54 = vadd.f32 %v985_v40, %v975_v36 }
  0x9c   :  { %232 = vst.msk [vmem:[#allocation2 + $0x11] sm:$0xff] %vm229_vm1, %v210_v32  ;;  %v1034_v60 = vmax.f32 %v1026_v51, 0.0  ;;  %v984_v49 = vmul.f32 %v4212_v21, %v4109_v47  ;;  %v1002_v27 = vmul.f32 %v4220_v58, %v4129_v30  ;;  %v973_v11 = vmul.f32 %v4005_v15, %v4103_v45 }
  0x9d   :  { %230 = vst.msk [vmem:[#allocation2 + $0x1] sm:$0xff] %vm229_vm1, %v206_v16  ;;  %v910_v52 = vmul.f32 0.16666667, %v902_v37  ;;  %v1025_v56 = vadd.f32 3.0, %v1017_v46  ;;  %v881_v33 = vadd.f32 %v3969_v63, %v871_v61  ;;  %v1011_v4 = vadd.f32 %v1003_v20, %v993_v54 }
  0x9e   :  { %v1042_v1 = vmin.f32 %v1034_v60, 5.0  ;;  %v992_v62 = vadd.f32 %v984_v49, %v974_v42  ;;  %v983_v43 = vmul.f32 %v4012_v13, %v4109_v47  ;;  %v1001_v57 = vmul.f32 %v4020_v10, %v4129_v30 }
  0x9f   :  { %930 = vrot.lane.b32.xlu2 %v910_v52, %s3395_s6  ;;  %v357_v38 = vpop.permute.xlu2 %356  ;;  %v1033_v2 = vmax.f32 %v1025_v56, 0.0  ;;  %v383_v19 = vstv %s4173_s28  ;;  %v889_v26 = vadd.f32 3.0, %v881_v33  ;;  %v1021_v41 = vadd.f32 %v4132_v34, %v1011_v4  ;;  %v4258_v52 = vld [vmem:[%s7682_s0 + $0x30] sm:$0xff]  ;;  %s4517_s28 = sld [smem:[#allocation7 + $0x82]] }
  0xa0   :  { %377 = vst.msk [vmem:[#allocation2 + $0x59] sm:$0xff] %vm229_vm1, %v357_v38  ;;  %v1050_v8 = vmul.f32 0.16666667, %v1042_v1  ;;  %v1010_v28 = vadd.f32 %v1002_v27, %v992_v62  ;;  %v991_v35 = vadd.f32 %v983_v43, %v973_v11  ;;  %v384_v0 = vadd.f32 3.0, %v383_v19  ;;  %v4265_v27 = vld [vmem:[%s7682_s0 + $0x70] sm:$0xff] }
  0xa1   :  { %934 = vrot.lane.b32.xlu1 %v912_v25, %s3395_s6  ;;  %932 = vrot.lane.b32.xlu0 %v911_v3, %s3395_s6  ;;  %v1041_v39 = vmin.f32 %v1033_v2, 5.0  ;;  %v978_v14 = vmul.f32 %v4169_v44, %v4103_v45  ;;  %v897_v36 = vmax.f32 %v889_v26, 0.0  ;;  %v1029_v51 = vadd.f32 3.0, %v1021_v41 }
  0xa2   :  { %v1020_v24 = vadd.f32 %v4132_v34, %v1010_v28  ;;  %v988_v40 = vmul.f32 %v4180_v59, %v4109_v47  ;;  %v1009_v16 = vadd.f32 %v1001_v57, %v991_v35  ;;  %v385_v3 = vmax.f32 %v384_v0, 0.0  ;;  %v4274_v57 = vld [vmem:[%s7682_s0 + $0xb0] sm:$0xff]  ;;  %s4314_s0 = sld [smem:[#allocation5 + $0x3]] }
  0xa3   :  { %v212_v25 = vpop.permute.xlu1 %211  ;;  %v208_v20 = vpop.permute.xlu0 %207  ;;  %v1049_v32 = vmul.f32 0.16666667, %v1041_v39  ;;  %v1006_v37 = vmul.f32 %v4187_v23, %v4129_v30  ;;  %v905_v46 = vmin.f32 %v897_v36, 5.0  ;;  %v1037_v42 = vmax.f32 %v1029_v51, 0.0 }
  0xa4   :  { %233 = vst.msk [vmem:[#allocation2 + $0x19] sm:$0xff] %vm229_vm1, %v212_v25  ;;  %v1028_v60 = vadd.f32 3.0, %v1020_v24  ;;  %v996_v61 = vadd.f32 %v988_v40, %v978_v14  ;;  %v1019_v54 = vadd.f32 %v4132_v34, %v1009_v16  ;;  %v386_v49 = vmin.f32 %v385_v3, 5.0 }
  0xa5   :  { %231 = vst.msk [vmem:[#allocation2 + $0x9] sm:$0xff] %vm229_vm1, %v208_v20  ;;  %v977_v56 = vmul.f32 %v4258_v52, %v4103_v45  ;;  %v987_v11 = vmul.f32 %v4265_v27, %v4109_v47  ;;  %v913_v1 = vmul.f32 0.16666667, %v905_v46  ;;  %v1045_v33 = vmin.f32 %v1037_v42, 5.0 }
  0xa6   :  { %v1036_v4 = vmax.f32 %v1028_v60, 0.0  ;;  %v1014_v62 = vadd.f32 %v1006_v37, %v996_v61  ;;  %v1027_v38 = vadd.f32 3.0, %v1019_v54  ;;  %v4269_v2 = vmul.f32 0.16666667, %v386_v49 }
  0xa7   :  { %v995_v43 = vadd.f32 %v987_v11, %v977_v56  ;;  %v1005_v19 = vmul.f32 %v4274_v57, %v4129_v30  ;;  %936 = vrot.lane.b32.xlu2 %v913_v1, %s3395_s6  ;;  %v1053_v26 = vmul.f32 0.16666667, %v1045_v33  ;;  %v976_v39 = vmul.f32 %v4056_v48, %v4103_v45 }
  0xa8   :  { %v1044_v41 = vmin.f32 %v1036_v4, 5.0  ;;  %v1024_v28 = vadd.f32 %v4132_v34, %v1014_v62  ;;  %v1035_v0 = vmax.f32 %v1027_v38, 0.0  ;;  %390 = vst.msk [vmem:[#allocation2 + $0x88] sm:$0xff] %vm100_vm0, %v4269_v2  ;;  %v986_v36 = vmul.f32 %v4063_v53, %v4109_v47 }
  0xa9   :  { %1067 = vrot.lane.b32.xlu1 %v1050_v8, %s3395_s6  ;;  %1065 = vrot.lane.b32.xlu0 %v1049_v32, %s3395_s6  ;;  %v363_v35 = vpop.permute.xlu2 %362  ;;  %v1013_v14 = vadd.f32 %v1005_v19, %v995_v43  ;;  %v4289_v51 = vstv %s4239_s9  ;;  %v1004_v24 = vmul.f32 %v4073_v31, %v4129_v30  ;;  %391 = vst.msk [vmem:[#allocation2 + $0x90] sm:$0xff] %vm100_vm0, %v4269_v2  ;;  %v4300_v3 = vstv %s4244_s12  ;;  %s4928_s9 = sld [smem:[#allocation7 + $0x200]] }
  0xaa   :  { %380 = vst.msk [vmem:[#allocation2 + $0x71] sm:$0xff] %vm229_vm1, %v363_v35  ;;  %v1052_v45 = vmul.f32 0.16666667, %v1044_v41  ;;  %v1032_v8 = vadd.f32 3.0, %v1024_v28  ;;  %v1116_v40 = vmul.f32 %v4005_v15, %v4289_v51  ;;  %v1043_v32 = vmin.f32 %v1035_v0, 5.0  ;;  %s4962_s12 = sld [smem:[#allocation7 + $0x201]] }
  0xab   :  { %v220_v25 = vpop.permute.xlu1 %219  ;;  %v218_v20 = vpop.permute.xlu0 %217  ;;  %v1023_v47 = vadd.f32 %v4132_v34, %v1013_v14  ;;  %v994_v16 = vadd.f32 %v986_v36, %v976_v39  ;;  %v1126_v30 = vmul.f32 %v4012_v13, %v4300_v3  ;;  %v4306_v46 = vstv %s4248_s13  ;;  %389 = vst.msk [vmem:[#allocation2 + $0x80] sm:$0xff] %vm100_vm0, %v4269_v2  ;;  %s4985_s13 = sld [smem:[#allocation7 + $0x183]] }
  0xac   :  { %238 = vst.msk [vmem:[#allocation2 + $0x39] sm:$0x3f] %vm237_vm2, %v220_v25  ;;  %v1040_v37 = vmax.f32 %v1032_v8, 0.0  ;;  %v4309_v15 = vstv %s4251_s14  ;;  %v1051_v42 = vmul.f32 0.16666667, %v1043_v32  ;;  %v1144_v54 = vmul.f32 %v4020_v10, %v4306_v46  ;;  %s5009_s14 = sld [smem:[#allocation7 + $0x184]] }
  0xad   :  { %7828 = vst [vmem:[#allocation13_spill] sm:$0xff] %v4309_v15  ;;  %v1031_v60 = vadd.f32 3.0, %v1023_v47  ;;  %v1012_v61 = vadd.f32 %v1004_v24, %v994_v16  ;;  %v1134_v56 = vadd.f32 %v1126_v30, %v1116_v40  ;;  %v1115_v13 = vmul.f32 %v4115_v50, %v4289_v51 }
  0xae   :  { %236 = vst.msk [vmem:[#allocation2 + $0x31] sm:$0xff] %vm229_vm1, %v218_v20  ;;  %v1048_v49 = vmin.f32 %v1040_v37, 5.0  ;;  %v1125_v11 = vmul.f32 %v4122_v12, %v4300_v3  ;;  %v1143_v10 = vmul.f32 %v4138_v22, %v4306_v46  ;;  %v1114_v4 = vmul.f32 %v4147_v17, %v4289_v51 }
  0xaf   :  { %392 = vst.msk [vmem:[#allocation2 + $0x98] sm:$0xff] %vm100_vm0, %v4269_v2  ;;  %v1039_v1 = vmax.f32 %v1031_v60, 0.0  ;;  %v1022_v33 = vadd.f32 %v4132_v34, %v1012_v61  ;;  %1069 = vrot.lane.b32.xlu2 %v1051_v42, %s3395_s6  ;;  %v1152_v62 = vadd.f32 %v1144_v54, %v1134_v56  ;;  %v1124_v38 = vmul.f32 %v4154_v18, %v4300_v3 }
  0xb0   :  { %393 = vst.msk [vmem:[#allocation2 + $0xa0] sm:$0xff] %vm100_vm0, %v4269_v2  ;;  %v1056_v50 = vmul.f32 0.16666667, %v1048_v49  ;;  %v1133_v12 = vadd.f32 %v1125_v11, %v1115_v13  ;;  %v1142_v19 = vmul.f32 %v4161_v55, %v4306_v46  ;;  %v1119_v41 = vmul.f32 %v4056_v48, %v4289_v51 }
  0xb1   :  { %1073 = vrot.lane.b32.xlu1 %v1053_v26, %s3395_s6  ;;  %1071 = vrot.lane.b32.xlu0 %v1052_v45, %s3395_s6  ;;  %v496_v43 = vpop.permute.xlu2 %495  ;;  %394 = vst.msk [vmem:[#allocation2 + $0xa8] sm:$0xff] %vm100_vm0, %v4269_v2  ;;  %v1047_v22 = vmin.f32 %v1039_v1, 5.0  ;;  %v1030_v17 = vadd.f32 3.0, %v1022_v33  ;;  %v1162_v18 = vadd.f32 %v4309_v15, %v1152_v62  ;;  %v1132_v26 = vadd.f32 %v1124_v38, %v1114_v4 }
  0xb2   :  { %518 = vst.msk [vmem:[#allocation2 + $0x89] sm:$0xff] %vm229_vm1, %v496_v43  ;;  %v1151_v28 = vadd.f32 %v1143_v10, %v1133_v12  ;;  %v1129_v39 = vmul.f32 %v4063_v53, %v4300_v3  ;;  %v1147_v48 = vmul.f32 %v4073_v31, %v4306_v46  ;;  %v1118_v36 = vmul.f32 %v4082_v5, %v4289_v51 }
  0xb3   :  { %v355_v35 = vpop.permute.xlu1 %354  ;;  %v353_v0 = vpop.permute.xlu0 %352  ;;  %395 = vst.msk [vmem:[#allocation2 + $0xb0] sm:$0xff] %vm100_vm0, %v4269_v2  ;;  %v1055_v14 = vmul.f32 0.16666667, %v1047_v22  ;;  %v1038_v55 = vmax.f32 %v1030_v17, 0.0  ;;  %v1170_v45 = vadd.f32 3.0, %v1162_v18  ;;  %v1150_v53 = vadd.f32 %v1142_v19, %v1132_v26 }
  0xb4   :  { %376 = vst.msk [vmem:[#allocation2 + $0x51] sm:$0xff] %vm229_vm1, %v355_v35  ;;  %v1161_v8 = vadd.f32 %v4309_v15, %v1151_v28  ;;  %v1137_v24 = vadd.f32 %v1129_v39, %v1119_v41  ;;  %v1128_v25 = vmul.f32 %v4089_v9, %v4300_v3  ;;  %v1146_v20 = vmul.f32 %v4098_v7, %v4306_v46 }
  0xb5   :  { %375 = vst.msk [vmem:[#allocation2 + $0x49] sm:$0xff] %vm229_vm1, %v353_v0  ;;  %v1046_v40 = vmin.f32 %v1038_v55, 5.0  ;;  %v526_v31 = vstv %s4314_s0  ;;  %v1178_v5 = vmax.f32 %v1170_v45, 0.0  ;;  %v1160_v47 = vadd.f32 %v4309_v15, %v1150_v53  ;;  %v4399_v55 = vld [vmem:[#allocation2] sm:$0xff]  ;;  %s5299_s0 = sld [smem:[#allocation7 + $0x105]] }
  0xb6   :  { %396 = vst.msk [vmem:[#allocation2 + $0xb8] sm:$0xff] %vm100_vm0, %v4269_v2  ;;  %v1169_v32 = vadd.f32 3.0, %v1161_v8  ;;  %v1155_v16 = vadd.f32 %v1147_v48, %v1137_v24  ;;  %v1136_v30 = vadd.f32 %v1128_v25, %v1118_v36  ;;  %v527_v42 = vadd.f32 3.0, %v526_v31 }
  0xb7   :  { %v1054_v37 = vmul.f32 0.16666667, %v1046_v40  ;;  %v1121_v60 = vmul.f32 %v4169_v44, %v4289_v51  ;;  %v1186_v61 = vmin.f32 %v1178_v5, 5.0  ;;  %v1168_v54 = vadd.f32 3.0, %v1160_v47  ;;  %7830 = vst [vmem:[#allocation15_spill] sm:$0xff] %v4399_v55  ;;  %v4422_v40 = vld [vmem:[#allocation2 + $0x18] sm:$0xff] }
  0xb8   :  { %v1177_v9 = vmax.f32 %v1169_v32, 0.0  ;;  %v1165_v7 = vadd.f32 %v4309_v15, %v1155_v16  ;;  %v1154_v49 = vadd.f32 %v1146_v20, %v1136_v30  ;;  %v528_v56 = vmax.f32 %v527_v42, 0.0  ;;  %7832 = vst [vmem:[#allocation17_spill] sm:$0xff] %v4422_v40  ;;  %v4432_v16 = vld [vmem:[#allocation2 + $0x10] sm:$0xff] }
  0xb9   :  { %1079 = vrot.lane.b32.xlu1 %v1056_v50, %s3395_s6  ;;  %1077 = vrot.lane.b32.xlu0 %v1055_v14, %s3395_s6  ;;  %v502_v2 = vpop.permute.xlu2 %501  ;;  %v1131_v13 = vmul.f32 %v4180_v59, %v4300_v3  ;;  %v1149_v44 = vmul.f32 %v4187_v23, %v4306_v46  ;;  %v1194_v11 = vmul.f32 0.16666667, %v1186_v61  ;;  %v1176_v33 = vmax.f32 %v1168_v54, 0.0  ;;  %v4397_v14 = vld [vmem:[#allocation2 + $0x40] sm:$0xff]  ;;  %7833 = vst [vmem:[#allocation18_spill] sm:$0xff] %v4432_v16  ;;  %v4443_v54 = vld [vmem:[#allocation2 + $0x8] sm:$0xff] }
  0xba   :  { %1075 = vrot.lane.b32.xlu2 %v1054_v37, %s3395_s6  ;;  %521 = vst.msk [vmem:[#allocation2 + $0xa1] sm:$0xff] %vm229_vm1, %v502_v2  ;;  %v1185_v1 = vmin.f32 %v1177_v9, 5.0  ;;  %v1173_v10 = vadd.f32 3.0, %v1165_v7  ;;  %v1164_v62 = vadd.f32 %v4309_v15, %v1154_v49  ;;  %v529_v12 = vmin.f32 %v528_v56, 5.0 }
  0xbb   :  { %v361_v4 = vpop.permute.xlu1 %360  ;;  %v359_v50 = vpop.permute.xlu0 %358  ;;  %v1139_v38 = vadd.f32 %v1131_v13, %v1121_v60  ;;  %v1117_v59 = vmul.f32 %v4204_v6, %v4289_v51  ;;  %v1184_v43 = vmin.f32 %v1176_v33, 5.0  ;;  %v1127_v22 = vmul.f32 %v4212_v21, %v4300_v3  ;;  %7829 = vst [vmem:[#allocation14_spill] sm:$0xff] %v4397_v14  ;;  %v4408_v36 = vld [vmem:[#allocation2 + $0x58] sm:$0xff]  ;;  %v4457_v33 = vld [vmem:[#allocation2 + $0x30] sm:$0xff] }
  0xbc   :  { %379 = vst.msk [vmem:[#allocation2 + $0x69] sm:$0xff] %vm229_vm1, %v361_v4  ;;  %v1193_v23 = vmul.f32 0.16666667, %v1185_v1  ;;  %v1145_v17 = vmul.f32 %v4220_v58, %v4306_v46  ;;  %v1181_v19 = vmax.f32 %v1173_v10, 0.0  ;;  %v1172_v41 = vadd.f32 3.0, %v1164_v62  ;;  %v4434_v37 = vld [vmem:[#allocation2 + $0x50] sm:$0xff] }
  0xbd   :  { %378 = vst.msk [vmem:[#allocation2 + $0x61] sm:$0xff] %vm229_vm1, %v359_v50  ;;  %v4387_v18 = vmul.f32 0.16666667, %v529_v12  ;;  %v1157_v28 = vadd.f32 %v1149_v44, %v1139_v38  ;;  %v1192_v26 = vmul.f32 0.16666667, %v1184_v43  ;;  %v1135_v6 = vadd.f32 %v1127_v22, %v1117_v59  ;;  %v4445_v7 = vld [vmem:[#allocation2 + $0x48] sm:$0xff] }
  0xbe   :  { %v670_v39 = vadd.f32 3.0, %v3899_v29  ;;  %v1120_v35 = vmul.f32 %v4258_v52, %v4289_v51  ;;  %v1180_v0 = vmax.f32 %v1172_v41, 0.0  ;;  %v1130_v58 = vmul.f32 %v4265_v27, %v4300_v3  ;;  %7831 = vst [vmem:[#allocation16_spill] sm:$0xff] %v4408_v36 }
  0xbf   :  { %534 = vst.msk [vmem:[#allocation2 + $0xd0] sm:$0xff] %vm100_vm0, %v4387_v18  ;;  %v1167_v21 = vadd.f32 %v4309_v15, %v1157_v28  ;;  %v1153_v29 = vadd.f32 %v1145_v17, %v1135_v6  ;;  %v1148_v52 = vmul.f32 %v4274_v57, %v4306_v46  ;;  %v4406_v51 = vstv %s4366_s21  ;;  %v4483_v17 = vld [vmem:[#allocation2 + $0x28] sm:$0xff]  ;;  %s5339_s21 = sld [smem:[#allocation7 + $0x203]] }
  0xc0   :  { %535 = vst.msk [vmem:[#allocation2 + $0xd8] sm:$0xff] %vm100_vm0, %v4387_v18  ;;  %v671_v48 = vmax.f32 %v670_v39, 0.0  ;;  %v1189_v3 = vmin.f32 %v1181_v19, 5.0  ;;  %v1188_v45 = vmin.f32 %v1180_v0, 5.0  ;;  %v1138_v53 = vadd.f32 %v1130_v58, %v1120_v35 }
  0xc1   :  { %1212 = vrot.lane.b32.xlu1 %v1194_v11, %s3395_s6  ;;  %1210 = vrot.lane.b32.xlu0 %v1193_v23, %s3395_s6  ;;  %v508_v27 = vpop.permute.xlu2 %507  ;;  %532 = vst.msk [vmem:[#allocation2 + $0xc0] sm:$0xff] %vm100_vm0, %v4387_v18  ;;  %v1175_v8 = vadd.f32 3.0, %v1167_v21  ;;  %v1163_v57 = vadd.f32 %v4309_v15, %v1153_v29  ;;  %v4418_v24 = vstv %s4374_s22  ;;  %v1320_v32 = vmul.f32 %v4406_v51, %v4399_v55  ;;  %s5360_s22 = sld [smem:[#allocation7 + $0x204]] }
  0xc2   :  { %1208 = vrot.lane.b32.xlu2 %v1192_v26, %s3395_s6  ;;  %524 = vst.msk [vmem:[#allocation2 + $0xb9] sm:$0x3f] %vm237_vm2, %v508_v27  ;;  %v672_v46 = vmin.f32 %v671_v48, 5.0  ;;  %v1156_v5 = vadd.f32 %v1148_v52, %v1138_v53  ;;  %v1330_v47 = vmul.f32 %v4418_v24, %v4397_v14  ;;  %v1333_v42 = vmul.f32 %v4418_v24, %v4408_v36  ;;  %v4491_v26 = vld [vmem:[#allocation2 + $0x20] sm:$0xff] }
  0xc3   :  { %v494_v25 = vpop.permute.xlu1 %493  ;;  %v365_v20 = vpop.permute.xlu0 %364  ;;  %533 = vst.msk [vmem:[#allocation2 + $0xc8] sm:$0xff] %vm100_vm0, %v4387_v18  ;;  %v1183_v31 = vmax.f32 %v1175_v8, 0.0  ;;  %v1171_v30 = vadd.f32 3.0, %v1163_v57  ;;  %v1197_v60 = vmul.f32 0.16666667, %v1189_v3  ;;  %v1323_v56 = vmul.f32 %v4406_v51, %v4422_v40  ;;  %v4451_v13 = vld [vmem:[#allocation2 + $0x70] sm:$0xff] }
  0xc4   :  { %7834 = vst [vmem:[#allocation19_spill] sm:$0xff] %v4434_v37  ;;  %v1196_v61 = vmul.f32 0.16666667, %v1188_v45  ;;  %v1166_v9 = vadd.f32 %v4309_v15, %v1156_v5  ;;  %v4455_v44 = vmul.f32 0.16666667, %v672_v46  ;;  %v1338_v1 = vadd.f32 %v1330_v47, %v1320_v32  ;;  %v4459_v10 = vld [vmem:[#allocation2 + $0x68] sm:$0xff] }
  0xc5   :  { %517 = vst.msk [vmem:[#allocation2 + $0x81] sm:$0xff] %vm229_vm1, %v494_v25  ;;  %v1191_v2 = vmin.f32 %v1183_v31, 5.0  ;;  %v1179_v49 = vmax.f32 %v1171_v30, 0.0  ;;  %v4463_v50 = vadd.f32 %v1333_v42, %v1323_v56  ;;  %v1322_v62 = vmul.f32 %v4406_v51, %v4432_v16  ;;  %v4471_v38 = vld [vmem:[#allocation2 + $0x60] sm:$0xff]  ;;  %v4519_v8 = vld [vmem:[#allocation2 + $0x38] sm:$0xff] }
  0xc6   :  { %381 = vst.msk [vmem:[#allocation2 + $0x79] sm:$0x3f] %vm237_vm2, %v365_v20  ;;  %v1174_v11 = vadd.f32 3.0, %v1166_v9  ;;  %v1332_v12 = vmul.f32 %v4418_v24, %v4434_v37  ;;  %v1321_v43 = vmul.f32 %v4406_v51, %v4443_v54  ;;  %v1331_v22 = vmul.f32 %v4418_v24, %v4445_v7 }
  0xc7   :  { %7835 = vst [vmem:[#allocation20_spill] sm:$0xff] %v4445_v7  ;;  %v1187_v4 = vmin.f32 %v1179_v49, 5.0  ;;  %v1199_v19 = vmul.f32 0.16666667, %v1191_v2  ;;  %v4487_v28 = vstv %s4420_s23  ;;  %v1326_v58 = vmul.f32 %v4406_v51, %v4457_v33  ;;  %s5448_s23 = sld [smem:[#allocation7 + $0x185]] }
  0xc8   :  { %536 = vst.msk [vmem:[#allocation2 + $0xe0] sm:$0xff] %vm100_vm0, %v4387_v18  ;;  %v1182_v23 = vmax.f32 %v1174_v11, 0.0  ;;  %v1335_v29 = vmul.f32 %v4418_v24, %v4459_v10  ;;  %v4504_v48 = vstv %s4430_s24  ;;  %v1334_v3 = vmul.f32 %v4418_v24, %v4471_v38  ;;  %s5498_s24 = sld [smem:[#allocation7 + $0x86]] }
  0xc9   :  { %7836 = vst [vmem:[#allocation21_spill] sm:$0xff] %v4451_v13  ;;  %1218 = vrot.lane.b32.xlu1 %v1197_v60, %s3395_s6  ;;  %1216 = vrot.lane.b32.xlu0 %v1196_v61, %s3395_s6  ;;  %v641_v59 = vpop.permute.xlu2 %640  ;;  %v1195_v41 = vmul.f32 0.16666667, %v1187_v4  ;;  %v4515_v45 = vstv %s4439_s25  ;;  %v4522_v53 = vadd.f32 %v1332_v12, %v1322_v62  ;;  %v1339_v57 = vadd.f32 %v1331_v22, %v1321_v43  ;;  %s5515_s25 = sld [smem:[#allocation7 + $0x87]] }
  0xca   :  { %537 = vst.msk [vmem:[#allocation2 + $0xe8] sm:$0xff] %vm100_vm0, %v4387_v18  ;;  %v1190_v35 = vmin.f32 %v1182_v23, 5.0  ;;  %v1325_v46 = vmul.f32 %v4406_v51, %v4483_v17  ;;  %v1539_v25 = vmul.f32 %v4515_v45, %v4445_v7  ;;  %v1324_v31 = vmul.f32 %v4406_v51, %v4491_v26 }
  0xcb   :  { %7837 = vst [vmem:[#allocation22_spill] sm:$0xff] %v4457_v33  ;;  %v500_v6 = vpop.permute.xlu1 %499  ;;  %v498_v39 = vpop.permute.xlu0 %497  ;;  %1214 = vrot.lane.b32.xlu2 %v1195_v41, %s3395_s6  ;;  %v1528_v5 = vmul.f32 %v4504_v48, %v4399_v55  ;;  %v1538_v32 = vmul.f32 %v4515_v45, %v4397_v14  ;;  %v1529_v42 = vmul.f32 %v4504_v48, %v4443_v54 }
  0xcc   :  { %7838 = vst [vmem:[#allocation23_spill] sm:$0xff] %v4459_v10  ;;  %v4495_v0 = vld [vmem:[#allocation2 + $0x80] sm:$0xff]  ;;  %v4497_v21 = vld [vmem:[#allocation2 + $0x88] sm:$0xff]  ;;  %v1198_v47 = vmul.f32 0.16666667, %v1190_v35  ;;  %v4540_v30 = vadd.f32 %v1335_v29, %v1325_v46  ;;  %v1541_v60 = vmul.f32 %v4515_v45, %v4408_v36  ;;  %v4552_v2 = vadd.f32 %v1334_v3, %v1324_v31 }
  0xcd   :  { %538 = vst.msk [vmem:[#allocation2 + $0xf0] sm:$0xff] %vm100_vm0, %v4387_v18  ;;  %v1348_v52 = vmul.f32 %v4487_v28, %v4495_v0  ;;  %v1349_v27 = vmul.f32 %v4487_v28, %v4497_v21  ;;  %v4556_v49 = vmul.f32 %v4406_v51, %v4519_v8  ;;  %v1547_v11 = vadd.f32 %v1539_v25, %v1529_v42 }
  0xce   :  { %7839 = vst [vmem:[#allocation24_spill] sm:$0xff] %v4471_v38  ;;  %v1531_v4 = vmul.f32 %v4504_v48, %v4422_v40  ;;  %v1546_v62 = vadd.f32 %v1538_v32, %v1528_v5  ;;  %v1532_v51 = vmul.f32 %v4504_v48, %v4491_v26  ;;  %v1530_v12 = vmul.f32 %v4504_v48, %v4432_v16 }
  0xcf   :  { %539 = vst.msk [vmem:[#allocation2 + $0xf8] sm:$0xff] %vm100_vm0, %v4387_v18  ;;  %v1336_v18 = vmul.f32 %v4418_v24, %v4451_v13  ;;  %v4548_v61 = vadd.f32 %v1348_v52, %v1338_v1  ;;  %v4550_v9 = vadd.f32 %v1349_v27, %v1339_v57  ;;  %v1542_v1 = vmul.f32 %v4515_v45, %v4471_v38  ;;  %v4601_v27 = vld [vmem:[#allocation2 + $0x78] sm:$0xff] }
  0xd0   :  { %662 = vst.msk [vmem:[#allocation2 + $0xd1] sm:$0xff] %vm229_vm1, %v641_v59  ;;  %v1540_v59 = vmul.f32 %v4515_v45, %v4434_v37  ;;  %v4574_v22 = vadd.f32 %v1541_v60, %v1531_v4  ;;  %v1544_v41 = vmul.f32 %v4515_v45, %v4451_v13  ;;  %v4591_v35 = vstv %s4517_s28  ;;  %s5628_s28 = sld [smem:[#allocation7 + $0x107]] }
  0xd1   :  { %7840 = vst [vmem:[#allocation25_spill] sm:$0xff] %v4491_v26  ;;  %v4530_v20 = vadd.f32 %v1336_v18, %v1326_v58  ;;  %1222 = vrot.lane.b32.xlu0 %v1199_v19, %s3395_s6  ;;  %v647_v56 = vpop.permute.xlu2 %646  ;;  %v1534_v19 = vmul.f32 %v4504_v48, %v4457_v33  ;;  %v1535_v18 = vmul.f32 %v4504_v48, %v4519_v8  ;;  %v4596_v29 = vstv %s4469_s26  ;;  %s5554_s26 = sld [smem:[#allocation8 + $0x1]] }
  0xd2   :  { %675 = vst.msk [vmem:[#allocation2 + $0x100] sm:$0xff] %vm100_vm0, %v4455_v44  ;;  %v1543_v58 = vmul.f32 %v4515_v45, %v4459_v10  ;;  %v4599_v52 = vstv %s4481_s27  ;;  %v813_v3 = vadd.f32 3.0, %v3969_v63  ;;  %v4607_v46 = vadd.f32 %v1542_v1, %v1532_v51  ;;  %s5578_s27 = sld [smem:[#allocation7 + $0x106]] }
  0xd3   :  { %7841 = vst [vmem:[#allocation26_spill] sm:$0xff] %v4495_v0  ;;  %v506_v23 = vpop.permute.xlu1 %505  ;;  %v504_v43 = vpop.permute.xlu0 %503  ;;  %1220 = vrot.lane.b32.xlu2 %v1198_v47, %s3395_s6  ;;  %v1746_v25 = vmul.f32 %v4599_v52, %v4445_v7  ;;  %v1557_v5 = vmul.f32 %v4591_v35, %v4497_v21  ;;  %v1556_v63 = vmul.f32 %v4591_v35, %v4495_v0 }
  0xd4   :  { %7842 = vst [vmem:[#allocation27_spill] sm:$0xff] %v4497_v21  ;;  %v1533_v32 = vmul.f32 %v4504_v48, %v4483_v17  ;;  %v814_v47 = vmax.f32 %v813_v3, 0.0  ;;  %v4625_v60 = vadd.f32 %v1540_v59, %v1530_v12  ;;  %v1736_v4 = vmul.f32 %v4596_v29, %v4443_v54 }
  0xd5   :  { %520 = vst.msk [vmem:[#allocation2 + $0x99] sm:$0xff] %vm229_vm1, %v500_v6  ;;  %v1337_v1 = vmul.f32 %v4418_v24, %v4601_v27  ;;  %v1545_v48 = vmul.f32 %v4515_v45, %v4601_v27  ;;  %v1747_v24 = vmul.f32 %v4599_v52, %v4434_v37 }
  0xd6   :  { %7843 = vst [vmem:[#allocation28_spill] sm:$0xff] %v4519_v8  ;;  %v4637_v51 = vadd.f32 %v1543_v58, %v1533_v32  ;;  %v815_v59 = vmin.f32 %v814_v47, 5.0  ;;  %v4658_v58 = vadd.f32 %v1556_v63, %v1546_v62  ;;  %v1735_v32 = vmul.f32 %v4596_v29, %v4399_v55 }
  0xd7   :  { %519 = vst.msk [vmem:[#allocation2 + $0x91] sm:$0xff] %vm229_vm1, %v498_v39  ;;  %v4675_v62 = vadd.f32 %v1337_v1, %v4556_v49  ;;  %v1749_v63 = vmul.f32 %v4599_v52, %v4471_v38  ;;  %v1748_v49 = vmul.f32 %v4599_v52, %v4408_v36  ;;  %v4720_v38 = vstv %s4631_s30  ;;  %s5836_s30 = sld [smem:[#allocation7 + $0x186]] }
  0xd8   :  { %676 = vst.msk [vmem:[#allocation2 + $0x108] sm:$0xff] %vm100_vm0, %v4455_v44 }
  0xd9   :  { %677 = vst.msk [vmem:[#allocation2 + $0x110] sm:$0xff] %vm100_vm0, %v4455_v44  ;;  %v780_v12 = vpop.permute.xlu2 %779 }
  0xda   :  { %678 = vst.msk [vmem:[#allocation2 + $0x118] sm:$0xff] %vm100_vm0, %v4455_v44 }
  0xdb   :  { %679 = vst.msk [vmem:[#allocation2 + $0x120] sm:$0xff] %vm100_vm0, %v4455_v44  ;;  %v637_v3 = vpop.permute.xlu0 %636 }
  0xdc   :  { %665 = vst.msk [vmem:[#allocation2 + $0xe9] sm:$0xff] %vm229_vm1, %v647_v56  ;;  %v4623_v42 = vld [vmem:[#allocation2 + $0xa0] sm:$0xff]  ;;  %v4627_v56 = vadd.f32 %v1544_v41, %v1534_v19  ;;  %v4656_v41 = vadd.f32 %v1557_v5, %v1547_v11 }
  0xdd   :  { %680 = vst.msk [vmem:[#allocation2 + $0x128] sm:$0xff] %vm100_vm0, %v4455_v44  ;;  %v1352_v19 = vmul.f32 %v4487_v28, %v4623_v42 }
  0xde   :  { %523 = vst.msk [vmem:[#allocation2 + $0xb1] sm:$0xff] %vm229_vm1, %v506_v23  ;;  %v4586_v6 = vld [vmem:[#allocation2 + $0x98] sm:$0xff]  ;;  %v4588_v39 = vld [vmem:[#allocation2 + $0x90] sm:$0xff] }
  0xdf   :  { %7844 = vst [vmem:[#allocation29_spill] sm:$0xff] %v4586_v6  ;;  %v1351_v57 = vmul.f32 %v4487_v28, %v4586_v6  ;;  %v1350_v31 = vmul.f32 %v4487_v28, %v4588_v39  ;;  %v1559_v1 = vmul.f32 %v4591_v35, %v4586_v6 }
  0xe0   :  { %7845 = vst [vmem:[#allocation30_spill] sm:$0xff] %v4601_v27 }
  0xe1   :  { %522 = vst.msk [vmem:[#allocation2 + $0xa9] sm:$0xff] %vm229_vm1, %v504_v43  ;;  %v4644_v23 = vadd.f32 %v1351_v57, %v4463_v50  ;;  %v1754_v43 = vadd.f32 %v1746_v25, %v1736_v4  ;;  %v4652_v45 = vadd.f32 %v1350_v31, %v4522_v53  ;;  %v639_v50 = vpop.permute.xlu1 %638  ;;  %v4660_v57 = vmul.f32 0.16666667, %v815_v59 }
  0xe2   :  { %681 = vst.msk [vmem:[#allocation2 + $0x130] sm:$0xff] %vm100_vm0, %v4455_v44  ;;  %v4663_v25 = vstv %s4582_s29  ;;  %v1745_v53 = vmul.f32 %v4599_v52, %v4397_v14  ;;  %v4677_v31 = vadd.f32 %v1545_v48, %v1535_v18  ;;  %v4695_v18 = vadd.f32 %v1352_v19, %v4552_v2  ;;  %s5656_s29 = sld [smem:[#allocation8 + $0x2]] }
  0xe3   :  { %682 = vst.msk [vmem:[#allocation2 + $0x138] sm:$0xff] %vm100_vm0, %v4455_v44  ;;  %v1737_v44 = vmul.f32 %v4596_v29, %v4432_v16  ;;  %v1764_v5 = vmul.f32 %v4663_v25, %v4497_v21  ;;  %v1560_v48 = vmul.f32 %v4591_v35, %v4623_v42  ;;  %v1740_v2 = vmul.f32 %v4596_v29, %v4483_v17 }
  0xe4   :  { %7846 = vst [vmem:[#allocation31_spill] sm:$0xff] %v4623_v42  ;;  %v1738_v19 = vmul.f32 %v4596_v29, %v4422_v40 }
  0xe5   :  { %803 = vst.msk [vmem:[#allocation2 + $0x101] sm:$0xff] %vm229_vm1, %v780_v12  ;;  %v4686_v4 = vadd.f32 %v1747_v24, %v1737_v44  ;;  %v1750_v12 = vmul.f32 %v4599_v52, %v4459_v10  ;;  %v1739_v44 = vmul.f32 %v4596_v29, %v4491_v26  ;;  %v1558_v24 = vmul.f32 %v4591_v35, %v4588_v39 }
  0xe6   :  { %661 = vst.msk [vmem:[#allocation2 + $0xc9] sm:$0xff] %vm229_vm1, %v639_v50  ;;  %v1753_v50 = vadd.f32 %v1745_v53, %v1735_v32  ;;  %v786_v32 = vpop.permute.xlu2 %785  ;;  %v4734_v10 = vadd.f32 %v1748_v49, %v1738_v19  ;;  %v1763_v19 = vmul.f32 %v4663_v25, %v4495_v0 }
  0xe7   :  { %660 = vst.msk [vmem:[#allocation2 + $0xc1] sm:$0xff] %vm229_vm1, %v637_v3  ;;  %v4715_v3 = vadd.f32 %v1764_v5, %v1754_v43  ;;  %v4717_v26 = vadd.f32 %v1749_v63, %v1739_v44  ;;  %v4732_v15 = vadd.f32 %v1750_v12, %v1740_v2  ;;  %v1742_v43 = vmul.f32 %v4596_v29, %v4519_v8  ;;  %v643_v12 = vpop.permute.xlu0 %642 }
  0xe8   :  { %v4672_v11 = vld [vmem:[#allocation2 + $0xb0] sm:$0xff]  ;;  %819 = vst.msk [vmem:[#allocation2 + $0x148] sm:$0xff] %vm100_vm0, %v4660_v57  ;;  %v4705_v59 = vld [vmem:[#allocation2 + $0xa8] sm:$0xff]  ;;  %v4740_v5 = vstv %s4649_s7  ;;  %v4745_v44 = vadd.f32 %v1559_v1, %v4574_v22  ;;  %v4755_v2 = vadd.f32 %v1558_v24, %v4625_v60  ;;  %v1942_v22 = vmul.f32 %v4720_v38, %v4399_v55  ;;  %v4773_v60 = vld [vmem:[#allocation2 + $0xb8] sm:$0xff]  ;;  %s5860_s7 = sld [smem:[#allocation8 + $0x3]] }
  0xe9   :  { %7847 = vst [vmem:[#allocation32_spill] sm:$0xff] %v4672_v11  ;;  %v1354_v47 = vmul.f32 %v4487_v28, %v4672_v11  ;;  %v1353_v63 = vmul.f32 %v4487_v28, %v4705_v59  ;;  %v1752_v24 = vmul.f32 %v4599_v52, %v4601_v27  ;;  %v1741_v8 = vmul.f32 %v4596_v29, %v4457_v33 }
  0xea   :  { %7848 = vst [vmem:[#allocation33_spill] sm:$0xff] %v4695_v18  ;;  %v4723_v18 = vstv %s4641_s2  ;;  %v1765_v29 = vmul.f32 %v4663_v25, %v4588_v39  ;;  %v1944_v27 = vmul.f32 %v4720_v38, %v4432_v16  ;;  %s5843_s2 = sld [smem:[#allocation7 + $0x187]] }
  0xeb   :  { %820 = vst.msk [vmem:[#allocation2 + $0x150] sm:$0xff] %vm100_vm0, %v4660_v57  ;;  %v4730_v53 = vadd.f32 %v1354_v47, %v4530_v20  ;;  %v4748_v20 = vadd.f32 %v1560_v48, %v4607_v46  ;;  %v645_v47 = vpop.permute.xlu1 %644  ;;  %v1952_v46 = vmul.f32 %v4723_v18, %v4397_v14  ;;  %v4767_v48 = vstv %s4670_s1  ;;  %s5908_s1 = sld [smem:[#allocation7 + $0x205]] }
  0xec   :  { %818 = vst.msk [vmem:[#allocation2 + $0x140] sm:$0xff] %vm100_vm0, %v4660_v57  ;;  %v1751_v14 = vmul.f32 %v4599_v52, %v4451_v13  ;;  %v4795_v52 = vadd.f32 %v1353_v63, %v4540_v30  ;;  %v1954_v33 = vmul.f32 %v4723_v18, %v4434_v37  ;;  %v1562_v13 = vmul.f32 %v4591_v35, %v4672_v11 }
  0xed   :  { %7849 = vst [vmem:[#allocation34_spill] sm:$0xff] %v4715_v3  ;;  %v4752_v49 = vld [vmem:[#allocation2 + $0xd0] sm:$0xff]  ;;  %v1563_v30 = vmul.f32 %v4591_v35, %v4773_v60  ;;  %v4811_v63 = vadd.f32 %v1763_v19, %v1753_v50  ;;  %v4817_v16 = vadd.f32 %v1752_v24, %v1742_v43  ;;  %v1943_v19 = vmul.f32 %v4720_v38, %v4443_v54 }
  0xee   :  { %7850 = vst [vmem:[#allocation35_spill] sm:$0xff] %v4720_v38  ;;  %v4764_v1 = vld [vmem:[#allocation2 + $0xc0] sm:$0xff]  ;;  %v4822_v3 = vadd.f32 %v1751_v14, %v1741_v8  ;;  %v1767_v14 = vmul.f32 %v4663_v25, %v4623_v42  ;;  %v4842_v8 = vadd.f32 %v1954_v33, %v1944_v27  ;;  %v4860_v27 = vstv %s4771_s10  ;;  %s5967_s10 = sld [smem:[#allocation7 + $0x207]] }
  0xef   :  { %7851 = vst [vmem:[#allocation36_spill] sm:$0xff] %v4723_v18  ;;  %v1366_v55 = vmul.f32 %v4740_v5, %v4764_v1 }
  0xf0   :  { %821 = vst.msk [vmem:[#allocation2 + $0x158] sm:$0xff] %vm100_vm0, %v4660_v57  ;;  %v4881_v24 = vadd.f32 %v1767_v14, %v4717_v26 }
  0xf1   :  { %7852 = vst [vmem:[#allocation37_spill] sm:$0xff] %v4730_v53  ;;  %v4820_v53 = vstv %s4725_s8  ;;  %v1374_v11 = vadd.f32 %v1366_v55, %v4548_v61  ;;  %s5949_s8 = sld [smem:[#allocation7 + $0x206]] }
  0xf2   :  { %7853 = vst [vmem:[#allocation38_spill] sm:$0xff] %v4732_v15  ;;  %v792_v15 = vpop.permute.xlu2 %791  ;;  %v1970_v55 = vmul.f32 %v4820_v53, %v4495_v0 }
  0xf3   :  { %806 = vst.msk [vmem:[#allocation2 + $0x119] sm:$0xff] %vm229_vm1, %v786_v32  ;;  %v4769_v32 = vld [vmem:[#allocation2 + $0xc8] sm:$0xff]  ;;  %v651_v61 = vpop.permute.xlu1 %650 }
  0xf4   :  { %7854 = vst [vmem:[#allocation39_spill] sm:$0xff] %v4745_v44  ;;  %v1367_v44 = vmul.f32 %v4740_v5, %v4769_v32 }
  0xf5   :  { %7855 = vst [vmem:[#allocation40_spill] sm:$0xff] %v4748_v20  ;;  %v1368_v20 = vmul.f32 %v4740_v5, %v4752_v49 }
  0xf6   :  { %822 = vst.msk [vmem:[#allocation2 + $0x160] sm:$0xff] %vm100_vm0, %v4660_v57  ;;  %v4829_v50 = vadd.f32 %v1367_v44, %v4550_v9  ;;  %v649_v9 = vpop.permute.xlu0 %648  ;;  %v956_v44 = vadd.f32 3.0, %v4132_v34 }
  0xf7   :  { %664 = vst.msk [vmem:[#allocation2 + $0xe1] sm:$0xff] %vm229_vm1, %v645_v47  ;;  %v4782_v47 = vld [vmem:[#allocation2 + $0x100] sm:$0xff] }
  0xf8   :  { %7856 = vst [vmem:[#allocation41_spill] sm:$0xff] %v4769_v32  ;;  %v1384_v37 = vmul.f32 %v4767_v48, %v4782_v47  ;;  %v957_v34 = vmax.f32 %v956_v44, 0.0 }
  0xf9   :  { %7857 = vst [vmem:[#allocation42_spill] sm:$0xff] %v4773_v60 }
  0xfa   :  { %663 = vst.msk [vmem:[#allocation2 + $0xd9] sm:$0xff] %vm229_vm1, %v643_v12  ;;  %v1355_v12 = vmul.f32 %v4487_v28, %v4773_v60  ;;  %v1960_v28 = vadd.f32 %v1952_v46, %v1942_v22  ;;  %v1971_v22 = vmul.f32 %v4820_v53, %v4497_v21  ;;  %v1574_v46 = vmul.f32 %v4860_v27, %v4764_v1  ;;  %v925_v14 = vpop.permute.xlu2 %924 }
  0xfb   :  { %7858 = vst [vmem:[#allocation43_spill] sm:$0xff] %v4782_v47 }
  0xfc   :  { %823 = vst.msk [vmem:[#allocation2 + $0x168] sm:$0xff] %vm100_vm0, %v4660_v57  ;;  %v4836_v43 = vadd.f32 %v1355_v12, %v4675_v62  ;;  %v1953_v62 = vmul.f32 %v4723_v18, %v4445_v7 }
  0xfd   :  { %7859 = vst [vmem:[#allocation44_spill] sm:$0xff] %v4795_v52  ;;  %v4826_v52 = vadd.f32 %v1368_v20, %v4652_v45  ;;  %v4845_v45 = vadd.f32 %v1562_v13, %v4627_v56  ;;  %v1561_v13 = vmul.f32 %v4591_v35, %v4705_v59  ;;  %v1766_v56 = vmul.f32 %v4663_v25, %v4586_v6 }
  0xfe   :  { %824 = vst.msk [vmem:[#allocation2 + $0x170] sm:$0xff] %vm100_vm0, %v4660_v57  ;;  %v4876_v35 = vadd.f32 %v1384_v37, %v1374_v11  ;;  %v4885_v12 = vld [vmem:[#allocation2 + $0xe8] sm:$0xff]  ;;  %v1575_v37 = vmul.f32 %v4860_v27, %v4769_v32  ;;  %v1576_v11 = vmul.f32 %v4860_v27, %v4752_v49  ;;  %v782_v44 = vpop.permute.xlu0 %781 }
  0xff   :  { %825 = vst.msk [vmem:[#allocation2 + $0x178] sm:$0xff] %vm100_vm0, %v4660_v57  ;;  %v4832_v57 = vadd.f32 %v1765_v29, %v4686_v4  ;;  %v4848_v4 = vadd.f32 %v1563_v30, %v4677_v31  ;;  %v1945_v31 = vmul.f32 %v4720_v38, %v4422_v40  ;;  %v4883_v29 = vadd.f32 %v1970_v55, %v1960_v28 }
 0x100   :  { %809 = vst.msk [vmem:[#allocation2 + $0x131] sm:$0xff] %vm229_vm1, %v792_v15  ;;  %v1955_v15 = vmul.f32 %v4723_v18, %v4408_v36  ;;  %v1961_v40 = vadd.f32 %v1953_v62, %v1943_v19  ;;  %v4897_v26 = vadd.f32 %v1561_v13, %v4637_v51  ;;  %v4902_v28 = vadd.f32 %v1766_v56, %v4734_v10 }
 0x101   :  { %667 = vst.msk [vmem:[#allocation2 + $0xf9] sm:$0x3f] %vm237_vm2, %v651_v61  ;;  %v4857_v33 = vld [vmem:[#allocation2 + $0xd8] sm:$0xff]  ;;  %v4887_v30 = vld [vmem:[#allocation2 + $0xe0] sm:$0xff]  ;;  %v4890_v61 = vstv %s4805_s3  ;;  %v958_v55 = vmin.f32 %v957_v34, 5.0  ;;  %v1371_v51 = vmul.f32 %v4740_v5, %v4885_v12  ;;  %v1582_v10 = vadd.f32 %v1574_v46, %v4658_v58  ;;  %s5988_s3 = sld [smem:[#allocation8 + $0x4]] }
 0x102   :  { %7860 = vst [vmem:[#allocation45_spill] sm:$0xff] %v4857_v33  ;;  %v1369_v20 = vmul.f32 %v4740_v5, %v4857_v33  ;;  %v4907_v62 = vadd.f32 %v1971_v22, %v1961_v40  ;;  %v1370_v13 = vmul.f32 %v4740_v5, %v4887_v30  ;;  %v1592_v56 = vmul.f32 %v4890_v61, %v4782_v47 }
 0x103   :  { %666 = vst.msk [vmem:[#allocation2 + $0xf1] sm:$0xff] %vm229_vm1, %v649_v9  ;;  %v1963_v9 = vadd.f32 %v1955_v15, %v1945_v31  ;;  %v1947_v31 = vmul.f32 %v4720_v38, %v4483_v17  ;;  %v4919_v40 = vmul.f32 0.16666667, %v958_v55  ;;  %v1768_v17 = vmul.f32 %v4663_v25, %v4705_v59 }
 0x104   :  { %7861 = vst [vmem:[#allocation46_spill] sm:$0xff] %v4876_v35  ;;  %v4905_v15 = vadd.f32 %v1369_v20, %v4644_v23  ;;  %v784_v23 = vpop.permute.xlu1 %783  ;;  %v4922_v20 = vstv %s4850_s11  ;;  %v1972_v19 = vmul.f32 %v4820_v53, %v4588_v39  ;;  %v4934_v22 = vadd.f32 %v1575_v37, %v4656_v41  ;;  %v7863_v37 = vld [vmem:[#allocation23_spill] sm:$0xff]  ;;  %s6023_s11 = sld [smem:[#allocation7 + $0x280]] }
 0x105   :  { %947 = vst.msk [vmem:[#allocation2 + $0x149] sm:$0xff] %vm229_vm1, %v925_v14  ;;  %v4937_v46 = vadd.f32 %v1576_v11, %v4755_v2  ;;  %v1782_v34 = vmul.f32 %v4922_v20, %v4769_v32  ;;  %v1973_v14 = vmul.f32 %v4820_v53, %v4586_v6  ;;  %v1783_v55 = vmul.f32 %v4922_v20, %v4752_v49  ;;  %v7864_v11 = vld [vmem:[#allocation13_spill] sm:$0xff]  ;;  %v7865_v6 = vld [vmem:[#allocation44_spill] sm:$0xff] }
 0x106   :  { %805 = vst.msk [vmem:[#allocation2 + $0x111] sm:$0xff] %vm229_vm1, %v784_v23  ;;  %v1770_v41 = vmul.f32 %v4663_v25, %v4773_v60  ;;  %v1957_v2 = vmul.f32 %v4723_v18, %v7863_v37  ;;  %v1099_v23 = vadd.f32 3.0, %v7864_v11  ;;  %v1577_v36 = vmul.f32 %v4860_v27, %v4857_v33  ;;  %v7867_v37 = vld [vmem:[#allocation33_spill] sm:$0xff]  ;;  %v7869_v11 = vld [vmem:[#allocation38_spill] sm:$0xff] }
 0x107   :  { %7862 = vst [vmem:[#allocation47_spill] sm:$0xff] %v4937_v46  ;;  %v1578_v35 = vmul.f32 %v4860_v27, %v4887_v30  ;;  %v4967_v60 = vadd.f32 %v1370_v13, %v7867_v37  ;;  %v4969_v21 = vadd.f32 %v1592_v56, %v1582_v10  ;;  %v4972_v7 = vadd.f32 %v1768_v17, %v7869_v11  ;;  %v931_v10 = vpop.permute.xlu2 %930  ;;  %v7873_v56 = vld [vmem:[#allocation37_spill] sm:$0xff]  ;;  %v788_v11 = vpop.permute.xlu0 %787 }
 0x108   :  { %804 = vst.msk [vmem:[#allocation2 + $0x109] sm:$0xff] %vm229_vm1, %v782_v44  ;;  %v4956_v44 = vadd.f32 %v1371_v51, %v7865_v6  ;;  %v4975_v6 = vadd.f32 %v1972_v19, %v4842_v8  ;;  %v1100_v51 = vmax.f32 %v1099_v23, 0.0  ;;  %v4983_v46 = vstv %s4899_s4  ;;  %s6054_s4 = sld [smem:[#allocation7 + $0x281]] }
 0x109   :  { %963 = vst.msk [vmem:[#allocation2 + $0x190] sm:$0xff] %vm100_vm0, %v4919_v40  ;;  %v4987_v13 = vadd.f32 %v1973_v14, %v1963_v9  ;;  %v4995_v17 = vadd.f32 %v1783_v55, %v4832_v57  ;;  %v1781_v19 = vmul.f32 %v4922_v20, %v4764_v1  ;;  %v7876_v14 = vld [vmem:[#allocation39_spill] sm:$0xff]  ;;  %v7879_v57 = vld [vmem:[#allocation21_spill] sm:$0xff] }
 0x10a   :  { %v4931_v58 = vld [vmem:[#allocation2 + $0xf0] sm:$0xff]  ;;  %7866 = vst [vmem:[#allocation23_spill] sm:$0xff] %v4956_v44  ;;  %v7870_v44 = vld [vmem:[#allocation34_spill] sm:$0xff]  ;;  %v1101_v9 = vmin.f32 %v1100_v51, 5.0  ;;  %v5004_v23 = vadd.f32 %v1577_v36, %v7876_v14  ;;  %v5019_v36 = vadd.f32 %v1957_v2, %v1947_v31 }
 0x10b   :  { %v1372_v39 = vmul.f32 %v4740_v5, %v4931_v58  ;;  %964 = vst.msk [vmem:[#allocation2 + $0x198] sm:$0xff] %vm100_vm0, %v4919_v40  ;;  %v4980_v0 = vadd.f32 %v1782_v34, %v7870_v44  ;;  %v5000_v34 = vadd.f32 %v1770_v41, %v4817_v16  ;;  %v7877_v44 = vld [vmem:[#allocation40_spill] sm:$0xff]  ;;  %v7885_v31 = vld [vmem:[#allocation22_spill] sm:$0xff] }
 0x10c   :  { %7868 = vst [vmem:[#allocation13_spill] sm:$0xff] %v4969_v21  ;;  %v5007_v37 = vadd.f32 %v1578_v35, %v7877_v44  ;;  %v790_v55 = vpop.permute.xlu1 %789  ;;  %v7880_v41 = vld [vmem:[#allocation32_spill] sm:$0xff]  ;;  %v1948_v2 = vmul.f32 %v4720_v38, %v7885_v31 }
 0x10d   :  { %961 = vst.msk [vmem:[#allocation2 + $0x180] sm:$0xff] %vm100_vm0, %v4919_v40  ;;  %v4992_v8 = vadd.f32 %v1372_v39, %v7873_v56  ;;  %v1958_v39 = vmul.f32 %v4723_v18, %v7879_v57  ;;  %v5015_v16 = vld [vmem:[#allocation2 + $0x118] sm:$0xff]  ;;  %v1769_v51 = vmul.f32 %v4663_v25, %v7880_v41  ;;  %v5024_v56 = vstv %s4928_s9  ;;  %s6109_s9 = sld [smem:[#allocation7 + $0x300]] }
 0x10e   :  { %7871 = vst [vmem:[#allocation44_spill] sm:$0xff] %v4980_v0  ;;  %v1387_v14 = vmul.f32 %v4767_v48, %v5015_v16  ;;  %v5033_v21 = vld [vmem:[#allocation2 + $0xf8] sm:$0xff]  ;;  %v1579_v25 = vmul.f32 %v4860_v27, %v4885_v12  ;;  %v1799_v0 = vmul.f32 %v4983_v46, %v4782_v47 }
 0x10f   :  { %7872 = vst [vmem:[#allocation33_spill] sm:$0xff] %v4987_v13  ;;  %v5029_v44 = vld [vmem:[#allocation2 + $0x110] sm:$0xff]  ;;  %v5031_v57 = vld [vmem:[#allocation2 + $0x108] sm:$0xff] }
 0x110   :  { %962 = vst.msk [vmem:[#allocation2 + $0x188] sm:$0xff] %vm100_vm0, %v4919_v40  ;;  %v1385_v31 = vmul.f32 %v4767_v48, %v5031_v57 }
 0x111   :  { %7874 = vst [vmem:[#allocation38_spill] sm:$0xff] %v4995_v17  ;;  %v1789_v17 = vadd.f32 %v1781_v19, %v4811_v63  ;;  %v1373_v63 = vmul.f32 %v4740_v5, %v5033_v21  ;;  %v1580_v19 = vmul.f32 %v4860_v27, %v4931_v58  ;;  %v5080_v5 = vstv %s4985_s13  ;;  %s6171_s13 = sld [smem:[#allocation7 + $0x301]] }
 0x112   :  { %7875 = vst [vmem:[#allocation34_spill] sm:$0xff] %v5000_v34 }
 0x113   :  { %950 = vst.msk [vmem:[#allocation2 + $0x161] sm:$0xff] %vm229_vm1, %v931_v10  ;;  %v7881_v10 = vld [vmem:[#allocation24_spill] sm:$0xff] }
 0x114   :  { %7878 = vst [vmem:[#allocation37_spill] sm:$0xff] %v5007_v37  ;;  %v1956_v35 = vmul.f32 %v4723_v18, %v7881_v10  ;;  %v7886_v10 = vld [vmem:[#allocation25_spill] sm:$0xff]  ;;  %v1386_v18 = vmul.f32 %v4767_v48, %v5029_v44  ;;  %v5058_v37 = vstv %s4962_s12  ;;  %s6129_s12 = sld [smem:[#allocation7 + $0x282]] }
 0x115   :  { %965 = vst.msk [vmem:[#allocation2 + $0x1a0] sm:$0xff] %vm100_vm0, %v4919_v40  ;;  %v1946_v34 = vmul.f32 %v4720_v38, %v7886_v10  ;;  %v5053_v10 = vadd.f32 %v1958_v39, %v1948_v2  ;;  %v5067_v38 = vadd.f32 %v1769_v51, %v4822_v3  ;;  %v5072_v39 = vadd.f32 %v1387_v14, %v4905_v15 }
 0x116   :  { %7882 = vst [vmem:[#allocation39_spill] sm:$0xff] %v5024_v56  ;;  %v1581_v2 = vmul.f32 %v4860_v27, %v5033_v21  ;;  %v5087_v3 = vadd.f32 %v1386_v18, %v4826_v52  ;;  %v1988_v15 = vmul.f32 %v5080_v5, %v4764_v1  ;;  %v5100_v51 = vadd.f32 %v1385_v31, %v4829_v50 }
 0x117   :  { %808 = vst.msk [vmem:[#allocation2 + $0x129] sm:$0xff] %vm229_vm1, %v790_v55  ;;  %v5042_v55 = vmul.f32 0.16666667, %v1101_v9  ;;  %v1964_v13 = vadd.f32 %v1956_v35, %v1946_v34  ;;  %v7891_v34 = vld [vmem:[#allocation14_spill] sm:$0xff]  ;;  %v1785_v18 = vmul.f32 %v4922_v20, %v4887_v30  ;;  %v1990_v52 = vmul.f32 %v5080_v5, %v4752_v49  ;;  %v794_v35 = vpop.permute.xlu0 %793 }
 0x118   :  { %7883 = vst [vmem:[#allocation40_spill] sm:$0xff] %v5031_v57  ;;  %v2159_v27 = vmul.f32 %v5058_v37, %v7891_v34  ;;  %v5116_v50 = vadd.f32 %v1580_v19, %v4845_v45  ;;  %v1786_v31 = vmul.f32 %v4922_v20, %v4885_v12  ;;  %v1784_v34 = vmul.f32 %v4922_v20, %v4857_v33 }
 0x119   :  { %7884 = vst [vmem:[#allocation21_spill] sm:$0xff] %v5033_v21  ;;  %v5124_v49 = vadd.f32 %v1581_v2, %v4848_v4  ;;  %v1989_v45 = vmul.f32 %v5080_v5, %v4769_v32  ;;  %v1593_v19 = vmul.f32 %v4890_v61, %v5031_v57  ;;  %v1974_v4 = vmul.f32 %v4820_v53, %v4623_v42  ;;  %v7904_v32 = vld [vmem:[#allocation26_spill] sm:$0xff] }
 0x11a   :  { %807 = vst.msk [vmem:[#allocation2 + $0x121] sm:$0xff] %vm229_vm1, %v788_v11  ;;  %v7887_v11 = vld [vmem:[#allocation15_spill] sm:$0xff]  ;;  %v5163_v42 = vadd.f32 %v1786_v31, %v4972_v7  ;;  %v1976_v7 = vmul.f32 %v4820_v53, %v7880_v41  ;;  %v5199_v41 = vstv %s5097_s16  ;;  %s6684_s16 = sld [smem:[#allocation7 + $0x307]] }
 0x11b   :  { %966 = vst.msk [vmem:[#allocation2 + $0x1a8] sm:$0xff] %vm100_vm0, %v4919_v40  ;;  %v2149_v9 = vmul.f32 %v5024_v56, %v7887_v11  ;;  %v5077_v11 = vadd.f32 %v1579_v25, %v4897_v26  ;;  %v937_v26 = vpop.permute.xlu2 %936  ;;  %v5113_v25 = vadd.f32 %v1373_v63, %v4836_v43  ;;  %v5192_v31 = vadd.f32 %v1593_v19, %v4934_v22  ;;  %v7902_v19 = vld [vmem:[#allocation47_spill] sm:$0xff] }
 0x11c   :  { %7888 = vst [vmem:[#allocation32_spill] sm:$0xff] %v5058_v37 }
 0x11d   :  { %967 = vst.msk [vmem:[#allocation2 + $0x1b0] sm:$0xff] %vm100_vm0, %v4919_v40  ;;  %v2167_v2 = vadd.f32 %v2159_v27, %v2149_v9  ;;  %v2150_v9 = vmul.f32 %v5024_v56, %v4443_v54  ;;  %v1975_v54 = vmul.f32 %v4820_v53, %v4705_v59 }
 0x11e   :  { %968 = vst.msk [vmem:[#allocation2 + $0x1b8] sm:$0xff] %vm100_vm0, %v4919_v40  ;;  %v5089_v40 = vadd.f32 %v1799_v0, %v1789_v17  ;;  %v5105_v0 = vstv %s5009_s14  ;;  %v923_v17 = vpop.permute.xlu1 %922  ;;  %v5110_v14 = vld [vmem:[#allocation2 + $0x130] sm:$0xff]  ;;  %s6253_s14 = sld [smem:[#allocation8]] }
 0x11f   :  { %7889 = vst [vmem:[#allocation22_spill] sm:$0xff] %v5080_v5  ;;  %v2006_v43 = vmul.f32 %v5105_v0, %v4782_v47  ;;  %v1390_v63 = vmul.f32 %v4767_v48, %v5110_v14  ;;  %v927_v22 = vpop.permute.xlu0 %926 }
 0x120   :  { %1104 = vst.msk [vmem:[#allocation2 + $0x1c0] sm:$0xff] %vm100_vm0, %v5042_v55 }
 0x121   :  { %7890 = vst [vmem:[#allocation15_spill] sm:$0xff] %v5089_v40  ;;  %v5158_v27 = vld [vmem:[#allocation2 + $0x120] sm:$0xff]  ;;  %v1594_v40 = vmul.f32 %v4890_v61, %v5029_v44  ;;  %v5187_v59 = vadd.f32 %v1390_v63, %v4992_v8 }
 0x122   :  { %1105 = vst.msk [vmem:[#allocation2 + $0x1c8] sm:$0xff] %vm100_vm0, %v5042_v55 }
 0x123   :  { %7892 = vst [vmem:[#allocation14_spill] sm:$0xff] %v5105_v0 }
 0x124   :  { %953 = vst.msk [vmem:[#allocation2 + $0x179] sm:$0x3f] %vm237_vm2, %v937_v26  ;;  %v1996_v26 = vadd.f32 %v1988_v15, %v4883_v29  ;;  %v5142_v29 = vld [vmem:[#allocation2 + $0x128] sm:$0xff]  ;;  %v1595_v15 = vmul.f32 %v4890_v61, %v5015_v16 }
 0x125   :  { %7893 = vst [vmem:[#allocation48_spill] sm:$0xff] %v5110_v14 }
 0x126   :  { %946 = vst.msk [vmem:[#allocation2 + $0x141] sm:$0xff] %vm229_vm1, %v923_v17  ;;  %v5147_v17 = vadd.f32 %v1785_v18, %v4881_v24  ;;  %v5166_v24 = vadd.f32 %v1784_v34, %v4902_v28  ;;  %v5177_v18 = vadd.f32 %v1989_v45, %v4907_v62  ;;  %v1389_v28 = vmul.f32 %v4767_v48, %v5142_v29  ;;  %v1070_v62 = vpop.permute.xlu2 %1069  ;;  %v929_v45 = vpop.permute.xlu1 %928 }
 0x127   :  { %810 = vst.msk [vmem:[#allocation2 + $0x139] sm:$0x3f] %vm237_vm2, %v794_v35  ;;  %v5150_v35 = vadd.f32 %v1990_v52, %v4975_v6  ;;  %v5174_v6 = vadd.f32 %v2006_v43, %v1996_v26  ;;  %v5182_v52 = vstv %s5082_s15  ;;  %v5194_v34 = vadd.f32 %v1974_v4, %v1964_v13  ;;  %s6301_s15 = sld [smem:[#allocation7 + $0x302]] }
 0x128   :  { %1106 = vst.msk [vmem:[#allocation2 + $0x1d0] sm:$0xff] %vm100_vm0, %v5042_v55  ;;  %v1388_v26 = vmul.f32 %v4767_v48, %v5158_v27  ;;  %v5204_v8 = vadd.f32 %v1595_v15, %v5004_v23  ;;  %v1991_v43 = vmul.f32 %v5080_v5, %v4857_v33  ;;  %v5214_v4 = vadd.f32 %v1594_v40, %v7902_v19  ;;  %v7905_v15 = vld [vmem:[#allocation20_spill] sm:$0xff]  ;;  %v7907_v40 = vld [vmem:[#allocation27_spill] sm:$0xff] }
 0x129   :  { %1107 = vst.msk [vmem:[#allocation2 + $0x1d8] sm:$0xff] %vm100_vm0, %v5042_v55  ;;  %v2177_v23 = vmul.f32 %v5182_v52, %v7904_v32  ;;  %v2160_v33 = vmul.f32 %v5058_v37, %v7905_v15  ;;  %v2178_v32 = vmul.f32 %v5182_v52, %v7907_v40  ;;  %v1596_v19 = vmul.f32 %v4890_v61, %v5158_v27  ;;  %v7910_v40 = vld [vmem:[#allocation33_spill] sm:$0xff] }
 0x12a   :  { %7894 = vst [vmem:[#allocation49_spill] sm:$0xff] %v5158_v27  ;;  %v1800_v15 = vmul.f32 %v4983_v46, %v5031_v57 }
 0x12b   :  { %1108 = vst.msk [vmem:[#allocation2 + $0x1e0] sm:$0xff] %vm100_vm0, %v5042_v55 }
 0x12c   :  { %7895 = vst [vmem:[#allocation50_spill] sm:$0xff] %v5174_v6  ;;  %v5217_v6 = vadd.f32 %v1975_v54, %v5019_v36  ;;  %v5231_v36 = vadd.f32 %v1976_v7, %v5053_v10  ;;  %v7908_v54 = vld [vmem:[#allocation23_spill] sm:$0xff]  ;;  %v1801_v10 = vmul.f32 %v4983_v46, %v5029_v44  ;;  %v5248_v7 = vadd.f32 %v1388_v26, %v4967_v60 }
 0x12d   :  { %7896 = vst [vmem:[#allocation51_spill] sm:$0xff] %v5182_v52  ;;  %v5209_v13 = vld [vmem:[#allocation2 + $0x140] sm:$0xff]  ;;  %v5211_v63 = vld [vmem:[#allocation2 + $0x148] sm:$0xff]  ;;  %v5268_v26 = vstv %s5156_s18  ;;  %s6353_s18 = sld [smem:[#allocation7 + $0x283]] }
 0x12e   :  { %1109 = vst.msk [vmem:[#allocation2 + $0x1e8] sm:$0xff] %vm100_vm0, %v5042_v55  ;;  %v1403_v47 = vmul.f32 %v5199_v41, %v5211_v63 }
 0x12f   :  { %7897 = vst [vmem:[#allocation52_spill] sm:$0xff] %v5187_v59  ;;  %v7914_v59 = vld [vmem:[#allocation46_spill] sm:$0xff] }
 0x130   :  { %7898 = vst [vmem:[#allocation53_spill] sm:$0xff] %v5194_v34  ;;  %v7912_v34 = vld [vmem:[#allocation28_spill] sm:$0xff] }
 0x131   :  { %1110 = vst.msk [vmem:[#allocation2 + $0x1f0] sm:$0xff] %vm100_vm0, %v5042_v55 }
 0x132   :  { %7899 = vst [vmem:[#allocation54_spill] sm:$0xff] %v5204_v8  ;;  %v7913_v8 = vld [vmem:[#allocation35_spill] sm:$0xff] }
 0x133   :  { %1091 = vst.msk [vmem:[#allocation2 + $0x191] sm:$0xff] %vm229_vm1, %v1070_v62  ;;  %v1402_v62 = vmul.f32 %v5199_v41, %v5209_v13 }
 0x134   :  { %7900 = vst [vmem:[#allocation55_spill] sm:$0xff] %v5209_v13 }
 0x135   :  { %7901 = vst [vmem:[#allocation56_spill] sm:$0xff] %v5211_v63  ;;  %v5265_v60 = vadd.f32 %v1402_v62, %v7914_v59  ;;  %v7925_v62 = vld [vmem:[#allocation34_spill] sm:$0xff] }
 0x136   :  { %7903 = vst [vmem:[#allocation47_spill] sm:$0xff] %v5214_v4  ;;  %v2168_v4 = vadd.f32 %v2160_v33, %v2150_v9  ;;  %v7920_v33 = vld [vmem:[#allocation38_spill] sm:$0xff] }
 0x137   :  { %949 = vst.msk [vmem:[#allocation2 + $0x159] sm:$0xff] %vm229_vm1, %v929_v45  ;;  %v5237_v45 = vadd.f32 %v1389_v28, %v7908_v54  ;;  %v1788_v28 = vmul.f32 %v4922_v20, %v5033_v21  ;;  %v5255_v54 = vadd.f32 %v1991_v43, %v7910_v40  ;;  %v5274_v21 = vadd.f32 %v1403_v47, %v5100_v51  ;;  %v7918_v43 = vld [vmem:[#allocation37_spill] sm:$0xff]  ;;  %v7928_v51 = vld [vmem:[#allocation16_spill] sm:$0xff] }
 0x138   :  { %7906 = vst [vmem:[#allocation26_spill] sm:$0xff] %v5231_v36  ;;  %v5260_v36 = vadd.f32 %v2177_v23, %v2167_v2  ;;  %v5277_v40 = vadd.f32 %v1596_v19, %v7918_v43  ;;  %v5283_v9 = vadd.f32 %v1801_v10, %v7920_v33  ;;  %v5293_v47 = vadd.f32 %v2178_v32, %v2168_v4  ;;  %v1076_v32 = vpop.permute.xlu2 %1075 }
 0x139   :  { %948 = vst.msk [vmem:[#allocation2 + $0x151] sm:$0xff] %vm229_vm1, %v927_v22  ;;  %v1598_v22 = vmul.f32 %v4890_v61, %v5110_v14  ;;  %v5271_v14 = vstv %s5172_s19  ;;  %v2162_v19 = vmul.f32 %v5058_v37, %v7928_v51  ;;  %v1597_v10 = vmul.f32 %v4890_v61, %v5142_v29 }
 0x13a   :  { %7909 = vst [vmem:[#allocation20_spill] sm:$0xff] %v5237_v45  ;;  %v5258_v45 = vstv %s5140_s17  ;;  %v1802_v43 = vmul.f32 %v4983_v46, %v5015_v16 }
 0x13b   :  { %1111 = vst.msk [vmem:[#allocation2 + $0x1f8] sm:$0xff] %vm100_vm0, %v5042_v55  ;;  %v1949_v55 = vmul.f32 %v7913_v8, %v7912_v34  ;;  %v7922_v34 = vld [vmem:[#allocation30_spill] sm:$0xff]  ;;  %v7923_v8 = vld [vmem:[#allocation36_spill] sm:$0xff]  ;;  %v5288_v23 = vadd.f32 %v1598_v22, %v5116_v50  ;;  %v1787_v50 = vmul.f32 %v4922_v20, %v4931_v58 }
 0x13c   :  { %7911 = vst [vmem:[#allocation27_spill] sm:$0xff] %v5258_v45  ;;  %v7919_v45 = vld [vmem:[#allocation44_spill] sm:$0xff]  ;;  %v1959_v59 = vmul.f32 %v7923_v8, %v7922_v34  ;;  %v5313_v34 = vstv %s5228_s20  ;;  %s7356_s20 = sld [smem:[#allocation8 + $0x5]] }
 0x13d   :  { %7915 = vst [vmem:[#allocation23_spill] sm:$0xff] %v5268_v26  ;;  %v5280_v2 = vadd.f32 %v1800_v15, %v7919_v45  ;;  %v935_v45 = vpop.permute.xlu1 %934  ;;  %v933_v15 = vpop.permute.xlu0 %932  ;;  %v7929_v22 = vld [vmem:[#allocation24_spill] sm:$0xff] }
 0x13e   :  { %7916 = vst [vmem:[#allocation33_spill] sm:$0xff] %v5271_v14  ;;  %v5291_v14 = vadd.f32 %v1788_v28, %v7925_v62  ;;  %v2163_v4 = vmul.f32 %v5058_v37, %v7929_v22  ;;  %v5315_v8 = vld [vmem:[#allocation2 + $0x138] sm:$0xff]  ;;  %v7932_v62 = vld [vmem:[#allocation17_spill] sm:$0xff] }
 0x13f   :  { %7917 = vst [vmem:[#allocation28_spill] sm:$0xff] %v5274_v21  ;;  %v2152_v51 = vmul.f32 %v5024_v56, %v7932_v62 }
 0x140   :  { %7921 = vst [vmem:[#allocation35_spill] sm:$0xff] %v5283_v9  ;;  %v5308_v28 = vld [vmem:[#allocation2 + $0x158] sm:$0xff]  ;;  %v5310_v33 = vld [vmem:[#allocation2 + $0x150] sm:$0xff]  ;;  %v7934_v9 = vld [vmem:[#allocation18_spill] sm:$0xff] }
 0x141   :  { %7924 = vst [vmem:[#allocation46_spill] sm:$0xff] %v5288_v23  ;;  %v7933_v23 = vld [vmem:[#allocation25_spill] sm:$0xff]  ;;  %v5323_v22 = vmul.f32 %v5024_v56, %v7934_v9  ;;  %v1404_v21 = vmul.f32 %v5199_v41, %v5310_v33  ;;  %v1391_v9 = vmul.f32 %v4767_v48, %v5315_v8  ;;  %v5341_v62 = vadd.f32 %v2162_v19, %v2152_v51  ;;  %v7937_v19 = vld [vmem:[#allocation42_spill] sm:$0xff] }
 0x142   :  { %7926 = vst [vmem:[#allocation37_spill] sm:$0xff] %v5291_v14  ;;  %v2153_v20 = vmul.f32 %v5024_v56, %v7933_v23  ;;  %v1611_v14 = vmul.f32 %v5313_v34, %v5211_v63  ;;  %v1610_v23 = vmul.f32 %v5313_v34, %v5209_v13  ;;  %v5343_v56 = vld [vmem:[#allocation2 + $0x160] sm:$0xff] }
 0x143   :  { %7927 = vst [vmem:[#allocation44_spill] sm:$0xff] %v5293_v47  ;;  %v1967_v47 = vadd.f32 %v1959_v59, %v1949_v55  ;;  %v5349_v55 = vadd.f32 %v1802_v43, %v5166_v24  ;;  %v5352_v59 = vadd.f32 %v1787_v50, %v5067_v38  ;;  %v1406_v48 = vmul.f32 %v5199_v41, %v5343_v56 }
 0x144   :  { %952 = vst.msk [vmem:[#allocation2 + $0x171] sm:$0xff] %vm229_vm1, %v935_v45  ;;  %v1405_v45 = vmul.f32 %v5199_v41, %v5308_v28  ;;  %v5372_v43 = vadd.f32 %v1404_v21, %v5087_v3  ;;  %v5375_v50 = vadd.f32 %v1611_v14, %v5192_v31  ;;  %v1804_v14 = vmul.f32 %v4983_v46, %v5142_v29 }
 0x145   :  { %7930 = vst [vmem:[#allocation38_spill] sm:$0xff] %v5308_v28  ;;  %v1068_v21 = vpop.permute.xlu1 %1067  ;;  %v1066_v3 = vpop.permute.xlu0 %1065  ;;  %v2009_v31 = vmul.f32 %v5105_v0, %v5015_v16 }
 0x146   :  { %7931 = vst [vmem:[#allocation30_spill] sm:$0xff] %v5315_v8  ;;  %v5369_v38 = vadd.f32 %v1405_v45, %v5072_v39  ;;  %v2008_v39 = vmul.f32 %v5105_v0, %v5029_v44  ;;  %v5391_v45 = vstv %s5299_s0  ;;  %v5403_v44 = vadd.f32 %v1406_v48, %v5248_v7  ;;  %s6377_s0 = sld [smem:[#allocation7 + $0x284]] }
 0x147   :  { %7935 = vst [vmem:[#allocation36_spill] sm:$0xff] %v5323_v22  ;;  %v5346_v22 = vadd.f32 %v1597_v10, %v5077_v11  ;;  %v1977_v11 = vmul.f32 %v4820_v53, %v7937_v19  ;;  %v7938_v10 = vld [vmem:[#allocation19_spill] sm:$0xff]  ;;  %v5383_v53 = vadd.f32 %v1391_v9, %v5113_v25  ;;  %v2007_v25 = vmul.f32 %v5105_v0, %v5031_v57 }
 0x148   :  { %951 = vst.msk [vmem:[#allocation2 + $0x169] sm:$0xff] %vm229_vm1, %v933_v15  ;;  %v1599_v15 = vmul.f32 %v4890_v61, %v5315_v8  ;;  %v1993_v61 = vmul.f32 %v5080_v5, %v4885_v12  ;;  %v5366_v24 = vmul.f32 %v5058_v37, %v7938_v10  ;;  %v1803_v12 = vmul.f32 %v4983_v46, %v5158_v27 }
 0x149   :  { %1094 = vst.msk [vmem:[#allocation2 + $0x1a9] sm:$0xff] %vm229_vm1, %v1076_v32  ;;  %v5354_v32 = vadd.f32 %v2163_v4, %v2153_v20  ;;  %v7939_v4 = vld [vmem:[#allocation13_spill] sm:$0xff]  ;;  %v5410_v19 = vadd.f32 %v1977_v11, %v1967_v47  ;;  %v1613_v7 = vmul.f32 %v5313_v34, %v5308_v28  ;;  %v1612_v47 = vmul.f32 %v5313_v34, %v5310_v33 }
 0x14a   :  { %7936 = vst [vmem:[#allocation34_spill] sm:$0xff] %v5343_v56  ;;  %v5380_v51 = vadd.f32 %v1610_v23, %v7939_v4  ;;  %v5386_v20 = vadd.f32 %v1599_v15, %v5124_v49  ;;  %v1209_v49 = vpop.permute.xlu2 %1208  ;;  %v5406_v9 = vadd.f32 %v1993_v61, %v5217_v6  ;;  %v1992_v15 = vmul.f32 %v5080_v5, %v4887_v30 }
 0x14b   :  { %1090 = vst.msk [vmem:[#allocation2 + $0x189] sm:$0xff] %vm229_vm1, %v1068_v21  ;;  %v1818_v6 = vmul.f32 %v5391_v45, %v5211_v63  ;;  %v5422_v48 = vadd.f32 %v1803_v12, %v5147_v17  ;;  %v1614_v30 = vmul.f32 %v5313_v34, %v5343_v56  ;;  %v1994_v61 = vmul.f32 %v5080_v5, %v4931_v58 }
 0x14c   :  { %7941 = vst [vmem:[#allocation24_spill] sm:$0xff] %v5410_v19  ;;  %v5432_v11 = vstv %s5339_s21  ;;  %v5435_v4 = vadd.f32 %v1804_v14, %v5163_v42  ;;  %v5438_v21 = vadd.f32 %v2008_v39, %v5150_v35  ;;  %v5441_v17 = vadd.f32 %v2009_v31, %v5255_v54  ;;  %v7946_v42 = vld [vmem:[#allocation29_spill] sm:$0xff]  ;;  %v7947_v39 = vld [vmem:[#allocation52_spill] sm:$0xff]  ;;  %v7949_v54 = vld [vmem:[#allocation54_spill] sm:$0xff] }
 0x14d   :  { %1089 = vst.msk [vmem:[#allocation2 + $0x181] sm:$0xff] %vm229_vm1, %v1066_v3  ;;  %v5444_v12 = vadd.f32 %v2007_v25, %v5177_v18  ;;  %v2195_v58 = vmul.f32 %v5432_v11, %v4764_v1  ;;  %v2180_v35 = vmul.f32 %v5182_v52, %v7946_v42  ;;  %v5461_v31 = vadd.f32 %v1613_v7, %v7949_v54  ;;  %v7952_v25 = vld [vmem:[#allocation53_spill] sm:$0xff]  ;;  %v7955_v1 = vld [vmem:[#allocation47_spill] sm:$0xff]  ;;  %v1074_v7 = vpop.permute.xlu1 %1073  ;;  %v1072_v54 = vpop.permute.xlu0 %1071 }
 0x14e   :  { %1232 = vst.msk [vmem:[#allocation2 + $0x1c1] sm:$0xff] %vm229_vm1, %v1209_v49  ;;  %v5453_v49 = vstv %s5360_s22  ;;  %v5464_v18 = vadd.f32 %v1818_v6, %v5280_v2  ;;  %v5467_v37 = vadd.f32 %v1992_v15, %v7952_v25  ;;  %v5470_v19 = vadd.f32 %v1614_v30, %v5277_v40  ;;  %v7958_v2 = vld [vmem:[#allocation20_spill] sm:$0xff]  ;;  %v7960_v30 = vld [vmem:[#allocation43_spill] sm:$0xff]  ;;  %v7961_v25 = vld [vmem:[#allocation41_spill] sm:$0xff] }
 0x14f   :  { %v5400_v23 = vld [vmem:[#allocation2 + $0x170] sm:$0xff]  ;;  %v5415_v10 = vld [vmem:[#allocation2 + $0x168] sm:$0xff]  ;;  %7943 = vst [vmem:[#allocation25_spill] sm:$0xff] %v5432_v11  ;;  %v5473_v5 = vadd.f32 %v1612_v47, %v7955_v1  ;;  %v1817_v42 = vmul.f32 %v5391_v45, %v5209_v13  ;;  %v7959_v15 = vld [vmem:[#allocation48_spill] sm:$0xff]  ;;  %v2213_v47 = vmul.f32 %v5453_v49, %v7960_v30  ;;  %v2196_v1 = vmul.f32 %v5432_v11, %v7961_v25 }
 0x150   :  { %7940 = vst [vmem:[#allocation16_spill] sm:$0xff] %v5400_v23  ;;  %v1408_v16 = vmul.f32 %v5199_v41, %v5400_v23  ;;  %v1407_v3 = vmul.f32 %v5199_v41, %v5415_v10  ;;  %v1805_v40 = vmul.f32 %v4983_v46, %v7959_v15  ;;  %v2203_v30 = vadd.f32 %v2195_v58, %v5260_v36 }
 0x151   :  { %7942 = vst [vmem:[#allocation17_spill] sm:$0xff] %v5415_v10  ;;  %v5506_v25 = vadd.f32 %v2180_v35, %v5341_v62  ;;  %v1819_v36 = vmul.f32 %v5391_v45, %v5310_v33  ;;  %v1616_v35 = vmul.f32 %v5313_v34, %v5400_v23 }
 0x152   :  { %7944 = vst [vmem:[#allocation18_spill] sm:$0xff] %v5435_v4  ;;  %v5458_v14 = vadd.f32 %v1408_v16, %v7947_v39  ;;  %v7956_v16 = vld [vmem:[#allocation26_spill] sm:$0xff]  ;;  %v5480_v57 = vld [vmem:[#allocation2 + $0x190] sm:$0xff]  ;;  %v5483_v6 = vadd.f32 %v1407_v3, %v7958_v2  ;;  %v5500_v3 = vld [vmem:[#allocation2 + $0x178] sm:$0xff]  ;;  %v1806_v2 = vmul.f32 %v4983_v46, %v5315_v8  ;;  %v1215_v58 = vpop.permute.xlu2 %1214 }
 0x153   :  { %7945 = vst [vmem:[#allocation42_spill] sm:$0xff] %v5453_v49  ;;  %v5478_v39 = vadd.f32 %v1994_v61, %v7956_v16  ;;  %v7962_v16 = vld [vmem:[#allocation27_spill] sm:$0xff]  ;;  %v1409_v46 = vmul.f32 %v5199_v41, %v5500_v3  ;;  %v7969_v4 = vld [vmem:[#allocation37_spill] sm:$0xff] }
 0x154   :  { %7948 = vst [vmem:[#allocation19_spill] sm:$0xff] %v5458_v14  ;;  %v5492_v61 = vld [vmem:[#allocation2 + $0x180] sm:$0xff]  ;;  %v7966_v8 = vld [vmem:[#allocation31_spill] sm:$0xff] }
 0x155   :  { %7950 = vst [vmem:[#allocation13_spill] sm:$0xff] %v5461_v31  ;;  %v1420_v11 = vmul.f32 %v7962_v16, %v5492_v61  ;;  %v7967_v41 = vld [vmem:[#allocation15_spill] sm:$0xff]  ;;  %v5535_v31 = vadd.f32 %v1805_v40, %v5352_v59  ;;  %v5557_v59 = vadd.f32 %v1409_v46, %v5383_v53  ;;  %v7976_v53 = vld [vmem:[#allocation33_spill] sm:$0xff]  ;;  %v1615_v46 = vmul.f32 %v5313_v34, %v5415_v10 }
 0x156   :  { %7951 = vst [vmem:[#allocation29_spill] sm:$0xff] %v5464_v18  ;;  %v5532_v27 = vadd.f32 %v1817_v42, %v7967_v41  ;;  %v5544_v18 = vadd.f32 %v1806_v2, %v7969_v4  ;;  %v7981_v41 = vld [vmem:[#allocation39_spill] sm:$0xff] }
 0x157   :  { %7953 = vst [vmem:[#allocation52_spill] sm:$0xff] %v5467_v37  ;;  %v1422_v37 = vmul.f32 %v7962_v16, %v5480_v57  ;;  %v1428_v49 = vadd.f32 %v1420_v11, %v5265_v60  ;;  %v5549_v60 = vadd.f32 %v2213_v47, %v2203_v30  ;;  %v1080_v47 = vpop.permute.xlu1 %1079 }
 0x158   :  { %7954 = vst [vmem:[#allocation54_spill] sm:$0xff] %v5470_v19 }
 0x159   :  { %7957 = vst [vmem:[#allocation53_spill] sm:$0xff] %v5478_v39  ;;  %v5496_v39 = vld [vmem:[#allocation2 + $0x188] sm:$0xff]  ;;  %v5541_v23 = vadd.f32 %v1422_v37, %v5372_v43 }
 0x15a   :  { %1093 = vst.msk [vmem:[#allocation2 + $0x1a1] sm:$0xff] %vm229_vm1, %v1074_v7  ;;  %v5509_v7 = vld [vmem:[#allocation2 + $0x1c0] sm:$0xff]  ;;  %v1421_v19 = vmul.f32 %v7962_v16, %v5496_v39  ;;  %v7974_v37 = vld [vmem:[#allocation46_spill] sm:$0xff] }
 0x15b   :  { %7963 = vst [vmem:[#allocation47_spill] sm:$0xff] %v5496_v39  ;;  %v1438_v62 = vmul.f32 %v5268_v26, %v5509_v7  ;;  %v7968_v26 = vld [vmem:[#allocation44_spill] sm:$0xff]  ;;  %v5563_v43 = vadd.f32 %v1616_v35, %v7974_v37  ;;  %v5592_v35 = vstv %s5498_s24 }
 0x15c   :  { %7964 = vst [vmem:[#allocation26_spill] sm:$0xff] %v5500_v3  ;;  %v5538_v14 = vadd.f32 %v2196_v1, %v7968_v26  ;;  %v7973_v26 = vld [vmem:[#allocation35_spill] sm:$0xff]  ;;  %v1078_v1 = vpop.permute.xlu0 %1077  ;;  %v1629_v37 = vmul.f32 %v5592_v35, %v5496_v39 }
 0x15d   :  { %7965 = vst [vmem:[#allocation20_spill] sm:$0xff] %v5506_v25  ;;  %v2181_v25 = vmul.f32 %v5182_v52, %v7966_v8  ;;  %v5547_v8 = vstv %s5448_s23  ;;  %v1446_v11 = vadd.f32 %v1438_v62, %v1428_v49  ;;  %v5560_v40 = vadd.f32 %v1819_v36, %v7973_v26  ;;  %v7978_v36 = vld [vmem:[#allocation36_spill] sm:$0xff]  ;;  %s6394_s23 = sld [smem:[#allocation7 + $0x285]] }
 0x15e   :  { %1092 = vst.msk [vmem:[#allocation2 + $0x199] sm:$0xff] %vm229_vm1, %v1072_v54  ;;  %v1617_v54 = vmul.f32 %v5313_v34, %v5500_v3  ;;  %v1821_v49 = vmul.f32 %v5391_v45, %v5343_v56  ;;  %v5584_v62 = vadd.f32 %v5366_v24, %v7978_v36  ;;  %v1820_v34 = vmul.f32 %v5391_v45, %v5308_v28  ;;  %v1221_v36 = vpop.permute.xlu2 %1220 }
 0x15f   :  { %1235 = vst.msk [vmem:[#allocation2 + $0x1d9] sm:$0xff] %vm229_vm1, %v1215_v58  ;;  %v7972_v58 = vld [vmem:[#allocation28_spill] sm:$0xff]  ;;  %v1456_v2 = vadd.f32 %v7976_v53, %v1446_v11 }
 0x160   :  { %7970 = vst [vmem:[#allocation48_spill] sm:$0xff] %v5547_v8  ;;  %v5552_v42 = vadd.f32 %v1421_v19, %v7972_v58  ;;  %v5566_v4 = vadd.f32 %v1617_v54, %v5386_v20  ;;  %v5571_v19 = vadd.f32 %v2181_v25, %v5354_v32  ;;  %v2024_v20 = vmul.f32 %v5547_v8, %v5209_v13  ;;  %v5596_v54 = vld [vmem:[#allocation2 + $0x30] sm:$0xff] }
 0x161   :  { %7971 = vst [vmem:[#allocation43_spill] sm:$0xff] %v5549_v60  ;;  %v5574_v30 = vld [vmem:[#allocation2 + $0x1a8] sm:$0xff]  ;;  %v5600_v11 = vmul.f32 %v5596_v54, %v7981_v41  ;;  %v1464_v24 = vand.u32 2147483647, %v1456_v2  ;;  %v2025_v2 = vmul.f32 %v5547_v8, %v5211_v63  ;;  %v5626_v41 = vadd.f32 %v1615_v46, %v5346_v22  ;;  %v7992_v13 = vld [vmem:[#allocation19_spill] sm:$0xff] }
 0x162   :  { %7975 = vst [vmem:[#allocation41_spill] sm:$0xff] %v5571_v19  ;;  %v1425_v25 = vmul.f32 %v7962_v16, %v5574_v30  ;;  %v7983_v19 = vld [vmem:[#allocation50_spill] sm:$0xff]  ;;  %v5646_v46 = vadd.f32 %v1629_v37, %v5375_v50  ;;  %v5709_v60 = vstv %s5628_s28  ;;  %s6427_s28 = sld [smem:[#allocation7 + $0x286]] }
 0x163   :  { %7977 = vst [vmem:[#allocation27_spill] sm:$0xff] %v5574_v30  ;;  %1480 = vrot.lane.b32.xlu1 %v1464_v24, %s3395_s6  ;;  %v5631_v52 = vadd.f32 %v2024_v20, %v7983_v19  ;;  %v1630_v24 = vmul.f32 %v5592_v35, %v5480_v57  ;;  %v5649_v19 = vstv %s5554_s26  ;;  %s6971_s26 = sld [smem:[#allocation7 + $0x381]] }
 0x164   :  { %7979 = vst [vmem:[#allocation31_spill] sm:$0xff] %v5584_v62  ;;  %v1211_v50 = vpop.permute.xlu0 %1210 }
 0x165   :  { %1096 = vst.msk [vmem:[#allocation2 + $0x1b9] sm:$0x3f] %vm237_vm2, %v1080_v47  ;;  %v5587_v32 = vld [vmem:[#allocation2 + $0x198] sm:$0xff]  ;;  %v5605_v26 = vld [vmem:[#allocation2 + $0x1a0] sm:$0xff]  ;;  %v5610_v47 = vstv %s5515_s25 }
 0x166   :  { %7980 = vst [vmem:[#allocation15_spill] sm:$0xff] %v5596_v54  ;;  %v1423_v58 = vmul.f32 %v7962_v16, %v5587_v32  ;;  %v1424_v62 = vmul.f32 %v7962_v16, %v5605_v26  ;;  %v1628_v54 = vmul.f32 %v5592_v35, %v5492_v61 }
 0x167   :  { %7982 = vst [vmem:[#allocation44_spill] sm:$0xff] %v5600_v11  ;;  %v1646_v11 = vmul.f32 %v5610_v47, %v5509_v7 }
 0x168   :  { %1095 = vst.msk [vmem:[#allocation2 + $0x1b1] sm:$0xff] %vm229_vm1, %v1078_v1  ;;  %v5617_v1 = vadd.f32 %v1821_v49, %v5422_v48  ;;  %v5634_v48 = vadd.f32 %v1425_v25, %v5483_v6  ;;  %v1636_v49 = vadd.f32 %v1628_v54, %v5380_v51  ;;  %v5643_v22 = vadd.f32 %v1423_v58, %v5369_v38  ;;  %v1213_v25 = vpop.permute.xlu1 %1212 }
 0x169   :  { %1238 = vst.msk [vmem:[#allocation2 + $0x1f1] sm:$0xff] %vm229_vm1, %v1221_v36  ;;  %v5640_v36 = vadd.f32 %v1820_v34, %v5349_v55  ;;  %v2026_v6 = vmul.f32 %v5547_v8, %v5310_v33  ;;  %v5654_v20 = vadd.f32 %v1424_v62, %v5403_v44  ;;  %v2027_v55 = vmul.f32 %v5547_v8, %v5308_v28 }
 0x16a   :  { %v1654_v51 = vadd.f32 %v1646_v11, %v1636_v49  ;;  %v2011_v38 = vmul.f32 %v5105_v0, %v5142_v29  ;;  %v5663_v34 = vstv %s5578_s27  ;;  %v1822_v54 = vmul.f32 %v5391_v45, %v5415_v10  ;;  %1234 = vst.msk [vmem:[#allocation2 + $0x1d1] sm:$0xff] %vm229_vm1, %v1213_v25 }
 0x16b   :  { %v5668_v33 = vadd.f32 %v2025_v2, %v5444_v12  ;;  %v2012_v44 = vmul.f32 %v5105_v0, %v7959_v15  ;;  %v1638_v29 = vadd.f32 %v1630_v24, %v5473_v5  ;;  %v1836_v11 = vmul.f32 %v5663_v34, %v5496_v39  ;;  %1233 = vst.msk [vmem:[#allocation2 + $0x1c9] sm:$0xff] %vm229_vm1, %v1211_v50 }
 0x16c   :  { %v1837_v58 = vmul.f32 %v5663_v34, %v5480_v57  ;;  %v1824_v12 = vmul.f32 %v5391_v45, %v5500_v3  ;;  %v1631_v2 = vmul.f32 %v5592_v35, %v5587_v32  ;;  %v1632_v5 = vmul.f32 %v5592_v35, %v5605_v26  ;;  %v7990_v3 = vld [vmem:[#allocation29_spill] sm:$0xff] }
 0x16d   :  { %7984 = vst [vmem:[#allocation37_spill] sm:$0xff] %v5668_v33  ;;  %v5692_v49 = vadd.f32 %v2026_v6, %v5438_v21  ;;  %v5695_v24 = vadd.f32 %v5649_v19, %v1654_v51  ;;  %v5700_v50 = vadd.f32 %v2027_v55, %v5441_v17  ;;  %v5703_v28 = vadd.f32 %v2011_v38, %v5406_v9  ;;  %v7991_v6 = vld [vmem:[#allocation18_spill] sm:$0xff]  ;;  %v7994_v55 = vld [vmem:[#allocation49_spill] sm:$0xff]  ;;  %v7995_v38 = vld [vmem:[#allocation40_spill] sm:$0xff] }
 0x16e   :  { %v5706_v63 = vadd.f32 %v1836_v11, %v7990_v3  ;;  %v5712_v21 = vadd.f32 %v1837_v58, %v5560_v40  ;;  %v5715_v51 = vadd.f32 %v1822_v54, %v7991_v6  ;;  %v2010_v9 = vmul.f32 %v5105_v0, %v7994_v55  ;;  %v7997_v33 = vld [vmem:[#allocation54_spill] sm:$0xff]  ;;  %v7999_v6 = vld [vmem:[#allocation53_spill] sm:$0xff] }
 0x16f   :  { %v5673_v62 = vld [vmem:[#allocation2 + $0x1b0] sm:$0xff]  ;;  %v5685_v37 = vld [vmem:[#allocation2 + $0x1b8] sm:$0xff]  ;;  %7987 = vst [vmem:[#allocation46_spill] sm:$0xff] %v5692_v49  ;;  %v5729_v40 = vadd.f32 %v1632_v5, %v7997_v33  ;;  %v1835_v54 = vmul.f32 %v5663_v34, %v5492_v61  ;;  %v5737_v58 = vstv %s5656_s29  ;;  %v1217_v33 = vpop.permute.xlu0 %1216  ;;  %s6980_s29 = sld [smem:[#allocation7 + $0x382]] }
 0x170   :  { %7985 = vst [vmem:[#allocation28_spill] sm:$0xff] %v5673_v62  ;;  %v1426_v15 = vmul.f32 %v7962_v16, %v5673_v62  ;;  %v1427_v25 = vmul.f32 %v7962_v16, %v5685_v37  ;;  %v7993_v16 = vld [vmem:[#allocation13_spill] sm:$0xff]  ;;  %v1219_v55 = vpop.permute.xlu1 %1218 }
 0x171   :  { %7986 = vst [vmem:[#allocation35_spill] sm:$0xff] %v5685_v37  ;;  %v1639_v17 = vadd.f32 %v1631_v2, %v7993_v16  ;;  %v5742_v16 = vadd.f32 %v2012_v44, %v7999_v6  ;;  %v5746_v5 = vld [vmem:[#allocation2 + $0x1d8] sm:$0xff]  ;;  %v8008_v6 = vld [vmem:[#allocation23_spill] sm:$0xff] }
 0x172   :  { %7988 = vst [vmem:[#allocation33_spill] sm:$0xff] %v5700_v50  ;;  %v5718_v56 = vadd.f32 %v1426_v15, %v7992_v13  ;;  %v5726_v11 = vadd.f32 %v1427_v25, %v5557_v59  ;;  %v5734_v13 = vadd.f32 %v1824_v12, %v5544_v18  ;;  %v7998_v15 = vld [vmem:[#allocation16_spill] sm:$0xff]  ;;  %v8002_v59 = vld [vmem:[#allocation22_spill] sm:$0xff]  ;;  %v1649_v50 = vmul.f32 %v5610_v47, %v5746_v5 }
 0x173   :  { %7989 = vst [vmem:[#allocation36_spill] sm:$0xff] %v5703_v28  ;;  %v7996_v28 = vld [vmem:[#allocation42_spill] sm:$0xff]  ;;  %v1823_v2 = vmul.f32 %v5391_v45, %v7998_v15  ;;  %v8003_v18 = vld [vmem:[#allocation52_spill] sm:$0xff]  ;;  %v8006_v45 = vld [vmem:[#allocation45_spill] sm:$0xff] }
 0x174   :  { %v2214_v3 = vmul.f32 %v7996_v28, %v7995_v38  ;;  %8000 = vst [vmem:[#allocation50_spill] sm:$0xff] %v5742_v16  ;;  %v8001_v38 = vld [vmem:[#allocation21_spill] sm:$0xff]  ;;  %v1633_v28 = vmul.f32 %v5592_v35, %v5574_v30  ;;  %v5751_v12 = vadd.f32 %v2010_v9, %v8003_v18  ;;  %v5763_v16 = vld [vmem:[#allocation2 + $0x1c8] sm:$0xff]  ;;  %v1843_v9 = vadd.f32 %v1835_v54, %v5532_v27 }
 0x175   :  { %v1995_v25 = vmul.f32 %v8002_v59, %v8001_v38  ;;  %v8007_v15 = vld [vmem:[#allocation25_spill] sm:$0xff]  ;;  %1237 = vst.msk [vmem:[#allocation2 + $0x1e9] sm:$0xff] %vm229_vm1, %v1219_v55  ;;  %v1441_v38 = vmul.f32 %v8008_v6, %v5746_v5  ;;  %v5761_v59 = vld [vmem:[#allocation2 + $0x1d0] sm:$0xff]  ;;  %v1647_v18 = vmul.f32 %v5610_v47, %v5763_v16  ;;  %v1657_v27 = vadd.f32 %v1649_v50, %v1639_v17  ;;  %v8009_v50 = vld [vmem:[#allocation24_spill] sm:$0xff] }
 0x176   :  { %8004 = vst [vmem:[#allocation29_spill] sm:$0xff] %v5751_v12  ;;  %v5754_v0 = vadd.f32 %v2214_v3, %v5538_v14  ;;  %v2198_v44 = vmul.f32 %v8007_v15, %v8006_v45  ;;  %v1853_v14 = vmul.f32 %v5709_v60, %v5509_v7  ;;  %v1440_v55 = vmul.f32 %v8008_v6, %v5761_v59 }
 0x177   :  { %1236 = vst.msk [vmem:[#allocation2 + $0x1e1] sm:$0xff] %vm229_vm1, %v1217_v33  ;;  %v1439_v3 = vmul.f32 %v8008_v6, %v5763_v16  ;;  %v1648_v45 = vmul.f32 %v5610_v47, %v5761_v59  ;;  %v1449_v15 = vadd.f32 %v1441_v38, %v5643_v22  ;;  %v1634_v54 = vmul.f32 %v5592_v35, %v5673_v62 }
 0x178   :  { %8005 = vst [vmem:[#allocation18_spill] sm:$0xff] %v5754_v0  ;;  %v1635_v33 = vmul.f32 %v5592_v35, %v5685_v37  ;;  %v1448_v0 = vadd.f32 %v1440_v55, %v5541_v23  ;;  %v1655_v49 = vadd.f32 %v1647_v18, %v5646_v46  ;;  %v1641_v39 = vadd.f32 %v1633_v28, %v5626_v41  ;;  %v1223_v41 = vpop.permute.xlu0 %1222 }
 0x179   :  { %v1447_v12 = vadd.f32 %v1439_v3, %v5552_v42  ;;  %v1656_v8 = vadd.f32 %v1648_v45, %v1638_v29  ;;  %v1459_v10 = vadd.f32 %v7976_v53, %v1449_v15  ;;  %v5790_v22 = vadd.f32 %v1823_v2, %v5535_v31  ;;  %v8010_v42 = vld [vmem:[#allocation20_spill] sm:$0xff]  ;;  %1239 = vst.msk [vmem:[#allocation2 + $0x1f9] sm:$0x3f] %vm237_vm2, %v1223_v41 }
 0x17a   :  { %v5793_v17 = vadd.f32 %v1995_v25, %v8009_v50  ;;  %v1458_v38 = vadd.f32 %v7976_v53, %v1448_v0  ;;  %v5798_v23 = vadd.f32 %v5649_v19, %v1657_v27  ;;  %v5801_v46 = vadd.f32 %v2198_v44, %v8010_v42 }
 0x17b   :  { %v1457_v35 = vadd.f32 %v7976_v53, %v1447_v12  ;;  %v1467_v29 = vand.u32 2147483647, %v1459_v10  ;;  %v1642_v15 = vadd.f32 %v1634_v54, %v5563_v43  ;;  %v1643_v28 = vadd.f32 %v1635_v33, %v5566_v4 }
 0x17c   :  { %v1861_v31 = vadd.f32 %v1853_v14, %v1843_v9  ;;  %v1466_v2 = vand.u32 2147483647, %v1458_v38  ;;  %v5805_v55 = vld [vmem:[#allocation2 + $0x1f0] sm:$0xff]  ;;  %v5808_v0 = vadd.f32 %v5649_v19, %v1655_v49  ;;  %v5811_v12 = vadd.f32 %v5649_v19, %v1656_v8 }
 0x17d   :  { %v1465_v25 = vand.u32 2147483647, %v1457_v35  ;;  %8011 = vst [vmem:[#allocation19_spill] sm:$0xff] %v5805_v55  ;;  %1486 = vrot.lane.b32.xlu1 %v1467_v29, %s3395_s6  ;;  %v1444_v10 = vmul.f32 %v8008_v6, %v5805_v55  ;;  %v1672_v44 = vand.u32 2147483647, %v5695_v24  ;;  %v1652_v49 = vmul.f32 %v5610_v47, %v5805_v55 }
 0x17e   :  { %v5817_v43 = vld [vmem:[#allocation2 + $0x1e8] sm:$0xff]  ;;  %v5819_v4 = vld [vmem:[#allocation2 + $0x1e0] sm:$0xff]  ;;  %v5825_v9 = vadd.f32 %v5737_v58, %v1861_v31  ;;  %1484 = vrot.lane.b32.xlu0 %v1466_v2, %s3395_s6  ;;  %v1675_v3 = vand.u32 2147483647, %v5798_v23  ;;  %v1854_v33 = vmul.f32 %v5709_v60, %v5763_v16  ;;  %v1839_v42 = vmul.f32 %v5663_v34, %v5605_v26 }
 0x17f   :  { %8012 = vst [vmem:[#allocation13_spill] sm:$0xff] %v5817_v43  ;;  %1482 = vrot.lane.b32.xlu2 %v1465_v25, %s3395_s6  ;;  %v1443_v8 = vmul.f32 %v8008_v6, %v5817_v43  ;;  %v1442_v14 = vmul.f32 %v8008_v6, %v5819_v4  ;;  %v1650_v18 = vmul.f32 %v5610_v47, %v5819_v4  ;;  %v1674_v25 = vand.u32 2147483647, %v5811_v12  ;;  %v8027_v12 = vld [vmem:[#allocation29_spill] sm:$0xff] }
 0x180   :  { %v1452_v45 = vadd.f32 %v1444_v10, %v5718_v56  ;;  %v1660_v27 = vadd.f32 %v1652_v49, %v1642_v15  ;;  %v1651_v54 = vmul.f32 %v5610_v47, %v5817_v43  ;;  %v1862_v15 = vadd.f32 %v1854_v33, %v5706_v63 }
 0x181   :  { %v1451_v50 = vadd.f32 %v1443_v8, %v5634_v48  ;;  %v1450_v38 = vadd.f32 %v1442_v14, %v5654_v20  ;;  %v1658_v35 = vadd.f32 %v1650_v18, %v5729_v40  ;;  %v1840_v31 = vmul.f32 %v5663_v34, %v5574_v30  ;;  %v5866_v8 = vld [vmem:[#allocation2 + $0x1f8] sm:$0xff] }
 0x182   :  { %v1462_v56 = vadd.f32 %v7976_v53, %v1452_v45  ;;  %v1659_v29 = vadd.f32 %v1651_v54, %v1641_v39  ;;  %v1673_v48 = vand.u32 2147483647, %v5808_v0  ;;  %v5858_v20 = vadd.f32 %v5649_v19, %v1660_v27  ;;  %v8018_v39 = vld [vmem:[#allocation37_spill] sm:$0xff] }
 0x183   :  { %v1461_v41 = vadd.f32 %v7976_v53, %v1451_v50  ;;  %v1460_v2 = vadd.f32 %v7976_v53, %v1450_v38  ;;  %v1838_v63 = vmul.f32 %v5663_v34, %v5587_v32  ;;  %v5869_v0 = vadd.f32 %v5649_v19, %v1658_v35 }
 0x184   :  { %v1470_v40 = vand.u32 2147483647, %v1462_v56  ;;  %v1847_v14 = vadd.f32 %v1839_v42, %v5617_v1  ;;  %v1445_v18 = vmul.f32 %v8008_v6, %v5866_v8  ;;  %v1653_v45 = vmul.f32 %v5610_v47, %v5866_v8 }
 0x185   :  { %v1469_v10 = vand.u32 2147483647, %v1461_v41  ;;  %v1468_v49 = vand.u32 2147483647, %v1460_v2  ;;  %v5878_v27 = vadd.f32 %v5649_v19, %v1659_v29  ;;  %v5881_v54 = vadd.f32 %v5737_v58, %v1862_v15 }
 0x186   :  { %1492 = vrot.lane.b32.xlu1 %v1470_v40, %s3395_s6  ;;  %v1855_v33 = vmul.f32 %v5709_v60, %v5761_v59  ;;  %v1857_v6 = vmul.f32 %v5709_v60, %v5819_v4  ;;  %v1848_v47 = vadd.f32 %v1840_v31, %v5715_v51  ;;  %v1453_v50 = vadd.f32 %v1445_v18, %v5726_v11 }
 0x187   :  { %1490 = vrot.lane.b32.xlu0 %v1469_v10, %s3395_s6  ;;  %1488 = vrot.lane.b32.xlu2 %v1468_v49, %s3395_s6  ;;  %v1661_v38 = vadd.f32 %v1653_v45, %v1643_v28  ;;  %v5893_v35 = vstv %s5836_s30  ;;  %v5896_v42 = vstv %s5843_s2  ;;  %v1846_v15 = vadd.f32 %v1838_v63, %v5640_v36  ;;  %s6781_s2 = sld [smem:[#allocation8 + $0x2]] }
 0x188   :  { %v1863_v56 = vadd.f32 %v1855_v33, %v5712_v21  ;;  %v1865_v29 = vadd.f32 %v1857_v6, %v1847_v14  ;;  %v2042_v41 = vmul.f32 %v5893_v35, %v5492_v61  ;;  %v1463_v2 = vadd.f32 %v7976_v53, %v1453_v50  ;;  %v8013_v6 = vld [vmem:[#allocation47_spill] sm:$0xff] }
 0x189   :  { %v1676_v51 = vand.u32 2147483647, %v5869_v0  ;;  %v1842_v11 = vmul.f32 %v5663_v34, %v5685_v37  ;;  %v2060_v28 = vmul.f32 %v5896_v42, %v5509_v7  ;;  %v5911_v21 = vadd.f32 %v5649_v19, %v1661_v38 }
 0x18a   :  { %v5914_v36 = vadd.f32 %v5737_v58, %v1863_v56  ;;  %v2050_v31 = vadd.f32 %v2042_v41, %v5631_v52  ;;  %v5918_v40 = vstv %s5860_s7  ;;  %v1471_v53 = vand.u32 2147483647, %v1463_v2  ;;  %s6997_s7 = sld [smem:[#allocation7 + $0x383]] }
 0x18b   :  { %v5921_v63 = vadd.f32 %v5737_v58, %v1865_v29  ;;  %v1856_v10 = vmul.f32 %v5709_v60, %v5746_v5  ;;  %v1841_v49 = vmul.f32 %v5663_v34, %v5673_v62  ;;  %v2044_v52 = vmul.f32 %v5893_v35, %v5480_v57  ;;  %v8014_v29 = vld [vmem:[#allocation17_spill] sm:$0xff] }
 0x18c   :  { %v2068_v14 = vadd.f32 %v2060_v28, %v2050_v31  ;;  %v1850_v45 = vadd.f32 %v1842_v11, %v5734_v13  ;;  %v2045_v33 = vmul.f32 %v5893_v35, %v5587_v32  ;;  %v2043_v50 = vmul.f32 %v5893_v35, %v8013_v6  ;;  %v8016_v31 = vld [vmem:[#allocation46_spill] sm:$0xff] }
 0x18d   :  { %v1864_v18 = vadd.f32 %v1856_v10, %v1846_v15  ;;  %v1679_v34 = vand.u32 2147483647, %v5911_v21  ;;  %v1860_v13 = vmul.f32 %v5709_v60, %v5866_v8  ;;  %v8015_v15 = vld [vmem:[#allocation48_spill] sm:$0xff]  ;;  %v8017_v10 = vld [vmem:[#allocation33_spill] sm:$0xff]  ;;  %v2047_v56 = vmul.f32 %v5893_v35, %v5574_v30 }
 0x18e   :  { %1690 = vrot.lane.b32.xlu1 %v1673_v48, %s3395_s6  ;;  %v1858_v48 = vmul.f32 %v5709_v60, %v5817_v43  ;;  %v5947_v38 = vadd.f32 %v5918_v40, %v2068_v14  ;;  %v2029_v41 = vmul.f32 %v8015_v15, %v8014_v29  ;;  %v2053_v14 = vadd.f32 %v2045_v33, %v8017_v10  ;;  %v8020_v33 = vld [vmem:[#allocation36_spill] sm:$0xff]  ;;  %v6089_v29 = vld [vmem:[#allocation2 + $0xd0] sm:$0xff] }
 0x18f   :  { %1688 = vrot.lane.b32.xlu0 %v1672_v44, %s3395_s6  ;;  %1494 = vrot.lane.b32.xlu2 %v1471_v53, %s3395_s6  ;;  %v1849_v44 = vadd.f32 %v1841_v49, %v5790_v22  ;;  %v5957_v11 = vadd.f32 %v5737_v58, %v1864_v18  ;;  %v1868_v28 = vadd.f32 %v1860_v13, %v1850_v45  ;;  %v5965_v24 = vstv %s5908_s1  ;;  %s6460_s1 = sld [smem:[#allocation7 + $0x287]] }
 0x190   :  { %v1866_v2 = vadd.f32 %v1858_v48, %v1848_v47  ;;  %v2052_v53 = vadd.f32 %v2044_v52, %v8016_v31  ;;  %v2051_v0 = vadd.f32 %v2043_v50, %v8018_v39  ;;  %v2062_v47 = vmul.f32 %v5896_v42, %v5761_v59  ;;  %v8019_v52 = vld [vmem:[#allocation16_spill] sm:$0xff]  ;;  %v8021_v48 = vld [vmem:[#allocation34_spill] sm:$0xff]  ;;  %8044 = vst [vmem:[#allocation45_spill] sm:$0xff] %v6089_v29 }
 0x191   :  { %v2063_v49 = vmul.f32 %v5896_v42, %v5746_v5  ;;  %v2030_v18 = vmul.f32 %v8015_v15, %v8019_v52  ;;  %v2061_v45 = vmul.f32 %v5896_v42, %v5763_v16  ;;  %v2037_v50 = vadd.f32 %v2029_v41, %v8020_v33  ;;  %v8022_v33 = vld [vmem:[#allocation55_spill] sm:$0xff]  ;;  %v6221_v52 = vld [vmem:[#allocation2 + $0x20] sm:$0xff] }
 0x192   :  { %v5977_v39 = vadd.f32 %v5737_v58, %v1866_v2  ;;  %v2028_v13 = vmul.f32 %v8015_v15, %v8021_v48  ;;  %v5986_v31 = vadd.f32 %v5737_v58, %v1868_v28  ;;  %v2070_v10 = vadd.f32 %v2062_v47, %v2052_v53 }
 0x193   :  { %v2071_v22 = vadd.f32 %v2063_v49, %v2053_v14  ;;  %v2069_v2 = vadd.f32 %v2061_v45, %v2051_v0  ;;  %v2055_v19 = vadd.f32 %v2047_v56, %v2037_v50  ;;  %v2046_v41 = vmul.f32 %v5893_v35, %v5605_v26  ;;  %v8024_v56 = vld [vmem:[#allocation50_spill] sm:$0xff]  ;;  %v8028_v49 = vld [vmem:[#allocation43_spill] sm:$0xff] }
 0x194   :  { %v2231_v1 = vmul.f32 %v5965_v24, %v8022_v33  ;;  %v6004_v0 = vadd.f32 %v5918_v40, %v2070_v10  ;;  %v2038_v28 = vadd.f32 %v2030_v18, %v8024_v56  ;;  %v6008_v53 = vstv %s5949_s8  ;;  %v8035_v56 = vld [vmem:[#allocation26_spill] sm:$0xff]  ;;  %8067 = vst [vmem:[#allocation43_spill] sm:$0xff] %v6221_v52 }
 0x195   :  { %v6012_v23 = vadd.f32 %v5918_v40, %v2071_v22  ;;  %v2249_v18 = vmul.f32 %v6008_v53, %v5492_v61  ;;  %v6029_v10 = vstv %s5967_s10  ;;  %v8040_v21 = vand.u32 2147483647, %v5878_v27  ;;  %v8043_v27 = vld [vmem:[#allocation49_spill] sm:$0xff]  ;;  %s7008_s10 = sld [smem:[#allocation7 + $0x384]] }
 0x196   :  { %1696 = vrot.lane.b32.xlu1 %v1676_v51, %s3395_s6  ;;  %v1859_v51 = vmul.f32 %v5709_v60, %v5805_v55  ;;  %8023 = vst [vmem:[#allocation40_spill] sm:$0xff] %v6004_v0  ;;  %v2048_v60 = vmul.f32 %v5893_v35, %v5673_v62  ;;  %v2239_v45 = vadd.f32 %v2231_v1, %v8028_v49  ;;  %v6050_v1 = vld [vmem:[#allocation2 + $0x118] sm:$0xff]  ;;  %v6199_v62 = vld [vmem:[#allocation2 + $0x60] sm:$0xff] }
 0x197   :  { %1694 = vrot.lane.b32.xlu0 %v1675_v3, %s3395_s6  ;;  %1692 = vrot.lane.b32.xlu2 %v1674_v25, %s3395_s6  ;;  %8025 = vst [vmem:[#allocation54_spill] sm:$0xff] %v6012_v23  ;;  %v6015_v3 = vadd.f32 %v5918_v40, %v2069_v2  ;;  %v2036_v25 = vadd.f32 %v2028_v13, %v8027_v12  ;;  %v8029_v2 = vld [vmem:[#allocation56_spill] sm:$0xff]  ;;  %v8030_v12 = vld [vmem:[#allocation30_spill] sm:$0xff] }
 0x198   :  { %v1867_v47 = vadd.f32 %v1859_v51, %v1849_v44  ;;  %v2232_v44 = vmul.f32 %v5965_v24, %v8029_v2  ;;  %v2257_v33 = vadd.f32 %v2249_v18, %v2239_v45  ;;  %v2267_v61 = vmul.f32 %v6029_v10, %v5509_v7  ;;  %8032 = vst [vmem:[#allocation21_spill] sm:$0xff] %v6050_v1  ;;  %v8033_v45 = vld [vmem:[#allocation42_spill] sm:$0xff] }
 0x199   :  { %8026 = vst [vmem:[#allocation53_spill] sm:$0xff] %v6015_v3  ;;  %v6026_v50 = vadd.f32 %v2046_v41, %v2036_v25  ;;  %v2250_v41 = vmul.f32 %v6008_v53, %v8013_v6  ;;  %v8031_v25 = vld [vmem:[#allocation14_spill] sm:$0xff]  ;;  %v6045_v2 = vadd.f32 %v2048_v60, %v2038_v28  ;;  %v2216_v7 = vmul.f32 %v6050_v1, %v8033_v45  ;;  %v6094_v1 = vld [vmem:[#allocation2 + $0x70] sm:$0xff] }
 0x19a   :  { %v6034_v13 = vadd.f32 %v5737_v58, %v1867_v47  ;;  %v2013_v49 = vmul.f32 %v8031_v25, %v8030_v12  ;;  %v2275_v58 = vadd.f32 %v2267_v61, %v2257_v33  ;;  %v6048_v47 = vstv %s5988_s3  ;;  %v8034_v6 = vld [vmem:[#allocation18_spill] sm:$0xff]  ;;  %v6064_v61 = vld [vmem:[#allocation2 + $0xe0] sm:$0xff]  ;;  %8045 = vst [vmem:[#allocation23_spill] sm:$0xff] %v6094_v1  ;;  %s6481_s3 = sld [smem:[#allocation8 + $0x5]] }
 0x19b   :  { %v2240_v18 = vadd.f32 %v2232_v44, %v8034_v6  ;;  %v2031_v28 = vmul.f32 %v8015_v15, %v8035_v56  ;;  %v8036_v60 = vld [vmem:[#allocation38_spill] sm:$0xff]  ;;  %8037 = vst [vmem:[#allocation22_spill] sm:$0xff] %v6064_v61  ;;  %v8038_v12 = vld [vmem:[#allocation25_spill] sm:$0xff]  ;;  %v8039_v51 = vand.u32 2147483647, %v5858_v20  ;;  %v2065_v15 = vmul.f32 %v5896_v42, %v5817_v43  ;;  %v6080_v6 = vld [vmem:[#allocation2 + $0x90] sm:$0xff] }
 0x19c   :  { %v2234_v33 = vmul.f32 %v5965_v24, %v8036_v60  ;;  %v2199_v25 = vmul.f32 %v6064_v61, %v8038_v12  ;;  %v6078_v44 = vadd.f32 %v6048_v47, %v2275_v58  ;;  %v8042_v60 = vld [vmem:[#allocation51_spill] sm:$0xff]  ;;  %v2224_v58 = vadd.f32 %v2216_v7, %v5801_v46  ;;  %v8046_v61 = vld [vmem:[#allocation32_spill] sm:$0xff]  ;;  %v6125_v3 = vld [vmem:[#allocation2 + $0x68] sm:$0xff]  ;;  %8065 = vst [vmem:[#allocation50_spill] sm:$0xff] %v6199_v62 }
 0x19d   :  { %v2179_v22 = vmul.f32 %v6080_v6, %v8042_v60  ;;  %v6084_v20 = vadd.f32 %v2250_v41, %v2240_v18  ;;  %v2073_v14 = vadd.f32 %v2065_v15, %v2055_v19  ;;  %v2165_v43 = vmul.f32 %v6094_v1, %v8046_v61  ;;  %v6105_v56 = vld [vmem:[#allocation2 + $0x78] sm:$0xff]  ;;  %8052 = vst [vmem:[#allocation47_spill] sm:$0xff] %v6125_v3 }
 0x19e   :  { %1702 = vrot.lane.b32.xlu1 %v1679_v34, %s3395_s6  ;;  %8041 = vst [vmem:[#allocation52_spill] sm:$0xff] %v6078_v44  ;;  %v2197_v34 = vmul.f32 %v6089_v29, %v8038_v12  ;;  %v6099_v41 = vstv %s6023_s11  ;;  %v2166_v19 = vmul.f32 %v6105_v56, %v8046_v61  ;;  %v6115_v15 = vadd.f32 %v2234_v33, %v2224_v58  ;;  %v8053_v33 = vld [vmem:[#allocation44_spill] sm:$0xff]  ;;  %v6132_v44 = vld [vmem:[#allocation2 + $0x28] sm:$0xff]  ;;  %s6590_s11 = sld [smem:[#allocation8 + $0x1]] }
 0x19f   :  { %1700 = vrot.lane.b32.xlu0 %v8039_v51, %s3395_s6  ;;  %1698 = vrot.lane.b32.xlu2 %v8040_v21, %s3395_s6  ;;  %v2021_v51 = vadd.f32 %v2013_v49, %v5793_v17  ;;  %v2217_v21 = vmul.f32 %v8033_v45, %v8043_v27  ;;  %v8047_v17 = vld [vmem:[#allocation41_spill] sm:$0xff]  ;;  %v8048_v27 = vld [vmem:[#allocation31_spill] sm:$0xff]  ;;  %v6112_v46 = vadd.f32 %v5918_v40, %v2073_v14 }
 0x1a0   :  { %v2207_v49 = vadd.f32 %v2199_v25, %v8047_v17  ;;  %v2187_v30 = vadd.f32 %v2179_v22, %v8048_v27  ;;  %v8050_v25 = vld [vmem:[#allocation39_spill] sm:$0xff]  ;;  %v2164_v14 = vmul.f32 %v6125_v3, %v8046_v61  ;;  %v2173_v58 = vadd.f32 %v2165_v43, %v8053_v33  ;;  %8054 = vst [vmem:[#allocation17_spill] sm:$0xff] %v6132_v44  ;;  %v6144_v61 = vld [vmem:[#allocation2 + $0x8] sm:$0xff] }
 0x1a1   :  { %v6101_v18 = vadd.f32 %v2031_v28, %v2021_v51  ;;  %8049 = vst [vmem:[#allocation24_spill] sm:$0xff] %v6112_v46  ;;  %v6117_v28 = vld [vmem:[#allocation2 + $0x38] sm:$0xff]  ;;  %v6121_v27 = vld [vmem:[#allocation2 + $0xb0] sm:$0xff]  ;;  %v2357_v43 = vmul.f32 %v6144_v61, %v6099_v41 }
 0x1a2   :  { %v2156_v22 = vmul.f32 %v6117_v28, %v8050_v25  ;;  %v2225_v51 = vadd.f32 %v2217_v21, %v2207_v49  ;;  %v2205_v17 = vadd.f32 %v2197_v34, %v2187_v30  ;;  %8051 = vst [vmem:[#allocation20_spill] sm:$0xff] %v6121_v27  ;;  %v2183_v29 = vmul.f32 %v6121_v27, %v8042_v60  ;;  %v6167_v27 = vld [vmem:[#allocation2 + $0x110] sm:$0xff] }
 0x1a3   :  { %v2154_v30 = vmul.f32 %v6132_v44, %v8050_v25  ;;  %v6137_v34 = vstv %s6054_s4  ;;  %v8055_v21 = vand.u32 2147483647, %v5914_v36  ;;  %v2235_v49 = vmul.f32 %v5965_v24, %v8021_v48  ;;  %8056 = vst [vmem:[#allocation48_spill] sm:$0xff] %v6144_v61  ;;  %v6152_v25 = vld [vmem:[#allocation2 + $0x50] sm:$0xff]  ;;  %s7018_s4 = sld [smem:[#allocation7 + $0x385]] }
 0x1a4   :  { %v2174_v7 = vadd.f32 %v2166_v19, %v2156_v22  ;;  %v6148_v19 = vld [vmem:[#allocation2 + $0x48] sm:$0xff]  ;;  %v2368_v33 = vmul.f32 %v6152_v25, %v6137_v34  ;;  %v8058_v36 = vand.u32 2147483647, %v5881_v54  ;;  %v8059_v48 = vand.u32 2147483647, %v5825_v9  ;;  %8060 = vst [vmem:[#allocation33_spill] sm:$0xff] %v6167_v27 }
 0x1a5   :  { %8057 = vst [vmem:[#allocation46_spill] sm:$0xff] %v6148_v19  ;;  %v2367_v22 = vmul.f32 %v6148_v19, %v6137_v34  ;;  %v2066_v61 = vmul.f32 %v5896_v42, %v5805_v55  ;;  %v2064_v19 = vmul.f32 %v5896_v42, %v5819_v4  ;;  %v2215_v0 = vmul.f32 %v6167_v27, %v8033_v45 }
 0x1a6   :  { %1899 = vrot.lane.b32.xlu1 %v8055_v21, %s3395_s6  ;;  %v6173_v54 = vadd.f32 %v2183_v29, %v2173_v58  ;;  %v6175_v9 = vadd.f32 %v2164_v14, %v2154_v30  ;;  %v6181_v21 = vld [vmem:[#allocation2] sm:$0xff]  ;;  %v2049_v29 = vmul.f32 %v5893_v35, %v5685_v37  ;;  %v6193_v30 = vadd.f32 %v2235_v49, %v2225_v51 }
 0x1a7   :  { %1897 = vrot.lane.b32.xlu0 %v8058_v36, %s3395_s6  ;;  %1895 = vrot.lane.b32.xlu2 %v8059_v48, %s3395_s6  ;;  %v6177_v36 = vld [vmem:[#allocation2 + $0x10] sm:$0xff]  ;;  %8062 = vst [vmem:[#allocation36_spill] sm:$0xff] %v6181_v21  ;;  %v2356_v46 = vmul.f32 %v6181_v21, %v6099_v41  ;;  %v2074_v55 = vadd.f32 %v2066_v61, %v6045_v2  ;;  %v6189_v14 = vld [vmem:[#allocation2 + $0x40] sm:$0xff]  ;;  %v6204_v2 = vstv %s6109_s9  ;;  %v6219_v37 = vstv %s6129_s12  ;;  %s6635_s12 = sld [smem:[#allocation7 + $0x303]] }
 0x1a8   :  { %8061 = vst [vmem:[#allocation37_spill] sm:$0xff] %v6175_v9  ;;  %v2358_v48 = vmul.f32 %v6177_v36, %v6099_v41  ;;  %v2072_v27 = vadd.f32 %v2064_v19, %v6026_v50  ;;  %v2366_v58 = vmul.f32 %v6189_v14, %v6137_v34  ;;  %v6195_v9 = vld [vmem:[#allocation2 + $0xb8] sm:$0xff]  ;;  %v2370_v50 = vmul.f32 %v6199_v62, %v6137_v34 }
 0x1a9   :  { %8063 = vst [vmem:[#allocation34_spill] sm:$0xff] %v6189_v14  ;;  %v2184_v23 = vmul.f32 %v6195_v9, %v8042_v60  ;;  %v6207_v35 = vadd.f32 %v5918_v40, %v2074_v55  ;;  %v6209_v61 = vadd.f32 %v2215_v0, %v2205_v17  ;;  %v2375_v19 = vadd.f32 %v2367_v22, %v2357_v43 }
 0x1aa   :  { %8064 = vst [vmem:[#allocation55_spill] sm:$0xff] %v6195_v9  ;;  %v6211_v51 = vadd.f32 %v2368_v33, %v2358_v48  ;;  %v6214_v49 = vadd.f32 %v5918_v40, %v2072_v27  ;;  %v2252_v9 = vmul.f32 %v6008_v53, %v5587_v32  ;;  %v2360_v62 = vmul.f32 %v6221_v52, %v6099_v41  ;;  %v6235_v33 = vld [vmem:[#allocation2 + $0x88] sm:$0xff]  ;;  %v6276_v52 = vld [vmem:[#allocation2 + $0x18] sm:$0xff] }
 0x1ab   :  { %8066 = vst [vmem:[#allocation29_spill] sm:$0xff] %v6204_v2  ;;  %v2057_v55 = vadd.f32 %v2049_v29, %v6101_v18  ;;  %v6226_v0 = vadd.f32 %v2184_v23, %v2174_v7  ;;  %v2374_v17 = vadd.f32 %v2366_v58, %v2356_v46  ;;  %v2361_v27 = vmul.f32 %v6132_v44, %v6099_v41 }
 0x1ac   :  { %v8068_v43 = vand.u32 2147483647, %v5977_v39  ;;  %v2260_v22 = vadd.f32 %v2252_v9, %v6115_v15  ;;  %8069 = vst [vmem:[#allocation56_spill] sm:$0xff] %v6235_v33  ;;  %v2385_v18 = vmul.f32 %v6235_v33, %v6219_v37  ;;  %v6239_v48 = vadd.f32 %v2370_v50, %v2360_v62 }
 0x1ad   :  { %v8070_v23 = vand.u32 2147483647, %v5921_v63  ;;  %v8071_v46 = vand.u32 2147483647, %v5957_v11  ;;  %v2268_v39 = vmul.f32 %v6029_v10, %v5763_v16  ;;  %v2067_v7 = vmul.f32 %v5896_v42, %v5866_v8  ;;  %v6261_v11 = vld [vmem:[#allocation2 + $0x58] sm:$0xff]  ;;  %v6272_v63 = vld [vmem:[#allocation2 + $0x80] sm:$0xff] }
 0x1ae   :  { %1905 = vrot.lane.b32.xlu1 %v8068_v43, %s3395_s6  ;;  %v2270_v15 = vmul.f32 %v6029_v10, %v5746_v5  ;;  %v6256_v62 = vstv %s6171_s13  ;;  %v2371_v9 = vmul.f32 %v6125_v3, %v6137_v34  ;;  %8073 = vst [vmem:[#allocation14_spill] sm:$0xff] %v6261_v11  ;;  %v2369_v29 = vmul.f32 %v6261_v11, %v6137_v34  ;;  %s6643_s13 = sld [smem:[#allocation7 + $0x304]] }
 0x1af   :  { %1903 = vrot.lane.b32.xlu0 %v8070_v23, %s3395_s6  ;;  %1901 = vrot.lane.b32.xlu2 %v8071_v46, %s3395_s6  ;;  %8072 = vst [vmem:[#allocation30_spill] sm:$0xff] %v6256_v62  ;;  %v2563_v42 = vmul.f32 %v6181_v21, %v6204_v2  ;;  %v2276_v58 = vadd.f32 %v2268_v39, %v6084_v20  ;;  %v6268_v23 = vld [vmem:[#allocation2 + $0xf0] sm:$0xff]  ;;  %v6496_v33 = vstv %s6353_s18 }
 0x1b0   :  { %v2075_v50 = vadd.f32 %v2067_v7, %v2057_v55  ;;  %v2278_v43 = vadd.f32 %v2270_v15, %v2260_v22  ;;  %v2201_v46 = vmul.f32 %v6268_v23, %v8038_v12  ;;  %8074 = vst [vmem:[#allocation42_spill] sm:$0xff] %v6272_v63  ;;  %v2384_v32 = vmul.f32 %v6272_v63, %v6219_v37 }
 0x1b1   :  { %8075 = vst [vmem:[#allocation18_spill] sm:$0xff] %v6276_v52  ;;  %v2359_v3 = vmul.f32 %v6276_v52, %v6099_v41  ;;  %v2573_v20 = vmul.f32 %v6189_v14, %v6256_v62  ;;  %v2372_v55 = vmul.f32 %v6094_v1, %v6137_v34  ;;  %v6285_v22 = vadd.f32 %v6048_v47, %v2276_v58  ;;  %v8076_v58 = vld [vmem:[#allocation15_spill] sm:$0xff] }
 0x1b2   :  { %v6288_v39 = vadd.f32 %v5918_v40, %v2075_v50  ;;  %v6290_v7 = vadd.f32 %v2385_v18, %v2375_v19  ;;  %v2363_v15 = vmul.f32 %v6117_v28, %v6099_v41  ;;  %v6295_v21 = vadd.f32 %v6048_v47, %v2278_v43 }
 0x1b3   :  { %v6297_v44 = vadd.f32 %v2371_v9, %v2361_v27  ;;  %v6299_v14 = vadd.f32 %v2369_v29, %v2359_v3  ;;  %v2362_v1 = vmul.f32 %v8076_v58, %v6099_v41  ;;  %v2209_v40 = vadd.f32 %v2201_v46, %v6173_v54  ;;  %v8090_v9 = vld [vmem:[#allocation40_spill] sm:$0xff]  ;;  %v8095_v3 = vld [vmem:[#allocation35_spill] sm:$0xff] }
 0x1b4   :  { %v6306_v19 = vadd.f32 %v2384_v32, %v2374_v17  ;;  %v2373_v28 = vmul.f32 %v6105_v56, %v6137_v34  ;;  %v6310_v18 = vadd.f32 %v2573_v20, %v2563_v42  ;;  %v8077_v27 = vand.u32 2147483647, %v5947_v38  ;;  %v6331_v17 = vld [vmem:[#allocation2 + $0x150] sm:$0xff] }
 0x1b5   :  { %v2386_v41 = vmul.f32 %v6080_v6, %v6219_v37  ;;  %v6319_v29 = vadd.f32 %v2372_v55, %v2362_v1  ;;  %v8078_v54 = vand.u32 2147483647, %v5986_v31  ;;  %v8079_v56 = vand.u32 2147483647, %v6034_v13 }
 0x1b6   :  { %2102 = vrot.lane.b32.xlu1 %v8077_v27, %s3395_s6  ;;  %v2253_v38 = vmul.f32 %v6008_v53, %v5605_v26  ;;  %v2271_v34 = vmul.f32 %v6029_v10, %v5819_v4  ;;  %v2233_v1 = vmul.f32 %v6331_v17, %v5965_v24  ;;  %v1305_v32 = vstv %s6253_s14  ;;  %v6388_v27 = vld [vmem:[#allocation2 + $0x130] sm:$0xff]  ;;  %s6651_s14 = sld [smem:[#allocation7 + $0x305]] }
 0x1b7   :  { %1909 = vrot.lane.b32.xlu0 %v8078_v54, %s3395_s6  ;;  %1907 = vrot.lane.b32.xlu2 %v8079_v56, %s3395_s6  ;;  %v2251_v31 = vmul.f32 %v6008_v53, %v5480_v57  ;;  %v6338_v42 = vand.u32 2147483647, %v1305_v32  ;;  %v2575_v13 = vmul.f32 %v6152_v25, %v6256_v62  ;;  %v2269_v43 = vmul.f32 %v6029_v10, %v5761_v59  ;;  %v6358_v25 = vld [vmem:[#allocation2 + $0xa0] sm:$0xff]  ;;  %v8083_v54 = vld [vmem:[#allocation16_spill] sm:$0xff] }
 0x1b8   :  { %v2261_v26 = vadd.f32 %v2253_v38, %v6193_v30  ;;  %v2241_v50 = vadd.f32 %v2233_v1, %v6209_v61  ;;  %v6346_v46 = vadd.f32 %v2373_v28, %v2363_v15  ;;  %v6356_v57 = vadd.f32 %v2386_v41, %v6211_v51  ;;  %8080 = vst [vmem:[#allocation38_spill] sm:$0xff] %v6358_v25  ;;  %v6373_v51 = vld [vmem:[#allocation2 + $0xa8] sm:$0xff]  ;;  %v8084_v32 = vld [vmem:[#allocation28_spill] sm:$0xff] }
 0x1b9   :  { %1309 = vst.msk [vmem:[%s7687_s5 + $0x8] sm:$0xff] %vm1307_vm3, %v6338_v42  ;;  %v2388_v30 = vmul.f32 %v6358_v25, %v6219_v37  ;;  %v2565_v61 = vmul.f32 %v6177_v36, %v6204_v2  ;;  %v6366_v20 = vmul.f32 %v6276_v52, %v6204_v2  ;;  %v2182_v58 = vmul.f32 %v6373_v51, %v8042_v60  ;;  %v6379_v36 = vld [vmem:[#allocation2 + $0x98] sm:$0xff]  ;;  %v6491_v25 = vld [vmem:[#allocation2 + $0x168] sm:$0xff] }
 0x1ba   :  { %v2279_v55 = vadd.f32 %v2271_v34, %v2261_v26  ;;  %v2259_v15 = vadd.f32 %v2251_v31, %v2241_v50  ;;  %1310 = vst.msk [vmem:[%s7687_s5 + $0x10] sm:$0xff] %vm1307_vm3, %v6338_v42  ;;  %v2387_v28 = vmul.f32 %v6379_v36, %v6219_v37  ;;  %v2219_v41 = vmul.f32 %v6388_v27, %v8033_v45 }
 0x1bb   :  { %8081 = vst [vmem:[#allocation25_spill] sm:$0xff] %v6366_v20  ;;  %v2237_v60 = vmul.f32 %v5965_v24, %v8083_v54  ;;  %v6397_v56 = vstv %s6301_s15  ;;  %v6399_v38 = vadd.f32 %v2575_v13, %v2565_v61  ;;  %v2255_v31 = vmul.f32 %v6008_v53, %v8084_v32  ;;  %v8086_v13 = vld [vmem:[#allocation54_spill] sm:$0xff]  ;;  %v8089_v54 = vld [vmem:[#allocation37_spill] sm:$0xff]  ;;  %s6666_s15 = sld [smem:[#allocation7 + $0x306]] }
 0x1bc   :  { %8082 = vst [vmem:[#allocation51_spill] sm:$0xff] %v6379_v36  ;;  %v6402_v34 = vadd.f32 %v6048_v47, %v2279_v55  ;;  %v2277_v1 = vadd.f32 %v2269_v43, %v2259_v15  ;;  %v6413_v26 = vmul.f32 %v6261_v11, %v6256_v62  ;;  %v8087_v50 = vand.u32 2147483647, %v8086_v13  ;;  %v8088_v55 = vld [vmem:[#allocation19_spill] sm:$0xff] }
 0x1bd   :  { %1308 = vst.msk [vmem:[%s7687_s5] sm:$0xff] %vm1307_vm3, %v6338_v42  ;;  %v2227_v43 = vadd.f32 %v2219_v41, %v2209_v40  ;;  %v2273_v15 = vmul.f32 %v6029_v10, %v8088_v55  ;;  %v2190_v32 = vadd.f32 %v2182_v58, %v8089_v54  ;;  %v8091_v13 = vand.u32 2147483647, %v8090_v9  ;;  %v6440_v40 = vld [vmem:[#allocation2 + $0xf8] sm:$0xff] }
 0x1be   :  { %1311 = vst.msk [vmem:[%s7687_s5 + $0x18] sm:$0xff] %vm1307_vm3, %v6338_v42  ;;  %2108 = vrot.lane.b32.xlu1 %v8087_v50, %s3395_s6  ;;  %v8092_v50 = vld [vmem:[#allocation53_spill] sm:$0xff]  ;;  %v2202_v58 = vmul.f32 %v6440_v40, %v8038_v12  ;;  %v6445_v41 = vadd.f32 %v2388_v30, %v6239_v48  ;;  %v6448_v9 = vadd.f32 %v2387_v28, %v6299_v14  ;;  %v8094_v28 = vld [vmem:[#allocation26_spill] sm:$0xff]  ;;  %v6503_v62 = vstv %s6377_s0  ;;  %s6714_s0 = sld [smem:[#allocation8 + $0x6]] }
 0x1bf   :  { %8085 = vst [vmem:[#allocation49_spill] sm:$0xff] %v6413_v26  ;;  %2106 = vrot.lane.b32.xlu0 %v8091_v13, %s3395_s6  ;;  %v8093_v61 = vand.u32 2147483647, %v8092_v50  ;;  %v6456_v13 = vld [vmem:[#allocation2 + $0x138] sm:$0xff]  ;;  %v6464_v14 = vmul.f32 %v6272_v63, %v6397_v56  ;;  %v6467_v48 = vadd.f32 %v6048_v47, %v2277_v1  ;;  %v2256_v11 = vmul.f32 %v6008_v53, %v8095_v3  ;;  %v6498_v3 = vld [vmem:[#allocation2 + $0xc8] sm:$0xff] }
 0x1c0   :  { %1312 = vst.msk [vmem:[%s7687_s5 + $0x20] sm:$0xff] %vm1307_vm3, %v6338_v42  ;;  %v2220_v50 = vmul.f32 %v6456_v13, %v8033_v45  ;;  %v2210_v30 = vadd.f32 %v2202_v58, %v6226_v0  ;;  %v2274_v52 = vmul.f32 %v6029_v10, %v5866_v8  ;;  %v6487_v0 = vld [vmem:[#allocation2 + $0x128] sm:$0xff]  ;;  %v6506_v2 = vstv %s6394_s23 }
 0x1c1   :  { %2104 = vrot.lane.b32.xlu2 %v8093_v61, %s3395_s6  ;;  %1313 = vst.msk [vmem:[%s7687_s5 + $0x28] sm:$0xff] %vm1307_vm3, %v6338_v42  ;;  %v2245_v61 = vadd.f32 %v2237_v60, %v2227_v43  ;;  %v2238_v60 = vmul.f32 %v5965_v24, %v8094_v28  ;;  %v6477_v43 = vld [vmem:[#allocation2 + $0xe8] sm:$0xff]  ;;  %v2218_v58 = vmul.f32 %v6487_v0, %v8033_v45  ;;  %v6542_v26 = vstv %s6460_s1 }
 0x1c2   :  { %1314 = vst.msk [vmem:[%s7687_s5 + $0x30] sm:$0xff] %vm1307_vm3, %v6338_v42  ;;  %v2200_v54 = vmul.f32 %v6477_v43, %v8038_v12  ;;  %v2228_v28 = vadd.f32 %v2220_v50, %v2210_v30  ;;  %v2236_v12 = vmul.f32 %v6491_v25, %v5965_v24  ;;  %v6510_v30 = vld [vmem:[#allocation2 + $0x108] sm:$0xff]  ;;  %v6547_v20 = vstv %s6481_s3 }
 0x1c3   :  { %1315 = vst.msk [vmem:[%s7687_s5 + $0x38] sm:$0xff] %vm1307_vm3, %v6338_v42  ;;  %v2263_v1 = vadd.f32 %v2255_v31, %v2245_v61  ;;  %v2403_v61 = vmul.f32 %v6498_v3, %v6496_v33  ;;  %v2421_v24 = vmul.f32 %v6510_v30, %v6503_v62 }
 0x1c4   :  { %8096 = vst [vmem:[#allocation32_spill] sm:$0xff] %v6487_v0  ;;  %v2208_v63 = vadd.f32 %v2200_v54, %v2190_v32  ;;  %v2246_v45 = vadd.f32 %v2238_v60, %v2228_v28  ;;  %v8099_v54 = vld [vmem:[#allocation27_spill] sm:$0xff]  ;;  %v6520_v60 = vld [vmem:[#allocation2 + $0x148] sm:$0xff] }
 0x1c5   :  { %8097 = vst [vmem:[#allocation41_spill] sm:$0xff] %v6491_v25  ;;  %v2281_v31 = vadd.f32 %v2273_v15, %v2263_v1  ;;  %v2254_v50 = vmul.f32 %v6008_v53, %v8099_v54  ;;  %v8101_v15 = vand.u32 2147483647, %v6207_v35  ;;  %v8102_v1 = vld [vmem:[#allocation13_spill] sm:$0xff]  ;;  %v2411_v36 = vadd.f32 %v2403_v61, %v6290_v7 }
 0x1c6   :  { %8098 = vst [vmem:[#allocation31_spill] sm:$0xff] %v6498_v3  ;;  %v2226_v32 = vadd.f32 %v2218_v58, %v2208_v63  ;;  %v2272_v3 = vmul.f32 %v6029_v10, %v8102_v1  ;;  %v2439_v53 = vmul.f32 %v6520_v60, %v6506_v2  ;;  %v6525_v63 = vstv %s6427_s28  ;;  %v8104_v58 = vld [vmem:[#allocation24_spill] sm:$0xff] }
 0x1c7   :  { %8100 = vst [vmem:[#allocation39_spill] sm:$0xff] %v6510_v30  ;;  %2114 = vrot.lane.b32.xlu1 %v8101_v15, %s3395_s6  ;;  %v8105_v28 = vand.u32 2147483647, %v8104_v58  ;;  %v8106_v35 = vand.u32 2147483647, %v6214_v49  ;;  %v6535_v7 = vadd.f32 %v6048_v47, %v2281_v31  ;;  %v2264_v61 = vadd.f32 %v2256_v11, %v2246_v45  ;;  %v6537_v30 = vld [vmem:[#allocation2 + $0x188] sm:$0xff] }
 0x1c8   :  { %8103 = vst [vmem:[#allocation44_spill] sm:$0xff] %v6520_v60  ;;  %v2244_v54 = vadd.f32 %v2236_v12, %v2226_v32  ;;  %v2429_v15 = vadd.f32 %v2421_v24, %v2411_v36  ;;  %v2457_v60 = vmul.f32 %v6537_v30, %v6525_v63  ;;  %v8108_v58 = vld [vmem:[#allocation45_spill] sm:$0xff]  ;;  %v2475_v36 = vmul.f32 %v6542_v26, %v5763_v16 }
 0x1c9   :  { %2112 = vrot.lane.b32.xlu0 %v8105_v28, %s3395_s6  ;;  %2110 = vrot.lane.b32.xlu2 %v8106_v35, %s3395_s6  ;;  %8107 = vst [vmem:[#allocation15_spill] sm:$0xff] %v6537_v30  ;;  %v2404_v28 = vmul.f32 %v8108_v58, %v6496_v33  ;;  %v2282_v49 = vadd.f32 %v2274_v52, %v2264_v61  ;;  %v8109_v31 = vld [vmem:[#allocation33_spill] sm:$0xff] }
 0x1ca   :  { %v2262_v35 = vadd.f32 %v2254_v50, %v2244_v54  ;;  %v2422_v10 = vmul.f32 %v8109_v31, %v6503_v62  ;;  %v2447_v11 = vadd.f32 %v2439_v53, %v2429_v15  ;;  %v2440_v45 = vmul.f32 %v6331_v17, %v6506_v2  ;;  %v6559_v52 = vld [vmem:[#allocation2 + $0xc0] sm:$0xff]  ;;  %1317 = vst.msk [vmem:[%s7687_s5 + $0x40] sm:$0x3] %vm1316_vm4, %v6338_v42 }
 0x1cb   :  { %v2412_v12 = vadd.f32 %v2404_v28, %v6356_v57  ;;  %v6557_v32 = vadd.f32 %v6048_v47, %v2282_v49  ;;  %v2402_v50 = vmul.f32 %v6559_v52, %v6496_v33  ;;  %v6563_v61 = vld [vmem:[#allocation2 + $0x100] sm:$0xff]  ;;  %v6567_v57 = vld [vmem:[#allocation2 + $0x190] sm:$0xff] }
 0x1cc   :  { %v2280_v24 = vadd.f32 %v2272_v3, %v2262_v35  ;;  %v2420_v53 = vmul.f32 %v6563_v61, %v6503_v62  ;;  %v2465_v16 = vadd.f32 %v2457_v60, %v2447_v11  ;;  %8110 = vst [vmem:[#allocation16_spill] sm:$0xff] %v6567_v57  ;;  %v2458_v15 = vmul.f32 %v6567_v57, %v6525_v63  ;;  %v6577_v35 = vld [vmem:[#allocation2 + $0x140] sm:$0xff] }
 0x1cd   :  { %v2430_v54 = vadd.f32 %v2422_v10, %v2412_v12  ;;  %v2476_v3 = vmul.f32 %v6542_v26, %v5761_v59  ;;  %v2410_v49 = vadd.f32 %v2402_v50, %v6306_v19  ;;  %v2438_v30 = vmul.f32 %v6577_v35, %v6506_v2  ;;  %v6581_v60 = vld [vmem:[#allocation2 + $0x180] sm:$0xff] }
 0x1ce   :  { %v6574_v28 = vadd.f32 %v6048_v47, %v2280_v24  ;;  %v2456_v10 = vmul.f32 %v6581_v60, %v6525_v63  ;;  %v8111_v11 = vand.u32 2147483647, %v6285_v22  ;;  %v2483_v59 = vadd.f32 %v2475_v36, %v2465_v16  ;;  %v8112_v47 = vld [vmem:[#allocation22_spill] sm:$0xff]  ;;  %v8113_v24 = vld [vmem:[#allocation52_spill] sm:$0xff]  ;;  %v6605_v16 = vld [vmem:[#allocation2 + $0x120] sm:$0xff] }
 0x1cf   :  { %v2448_v12 = vadd.f32 %v2440_v45, %v2430_v54  ;;  %v2406_v19 = vmul.f32 %v8112_v47, %v6496_v33  ;;  %v8114_v50 = vand.u32 2147483647, %v8113_v24  ;;  %v8115_v57 = vand.u32 2147483647, %v6288_v39  ;;  %8116 = vst [vmem:[#allocation28_spill] sm:$0xff] %v6605_v16  ;;  %v6613_v24 = vld [vmem:[#allocation2 + $0x160] sm:$0xff] }
 0x1d0   :  { %2311 = vrot.lane.b32.xlu1 %v8111_v11, %s3395_s6  ;;  %v2428_v45 = vadd.f32 %v2420_v53, %v2410_v49  ;;  %v2424_v54 = vmul.f32 %v6605_v16, %v6503_v62  ;;  %v6610_v39 = vadd.f32 %v6547_v20, %v2483_v59  ;;  %8117 = vst [vmem:[#allocation54_spill] sm:$0xff] %v6613_v24  ;;  %v6618_v42 = vld [vmem:[#allocation2 + $0x1c0] sm:$0xff] }
 0x1d1   :  { %2309 = vrot.lane.b32.xlu0 %v8114_v50, %s3395_s6  ;;  %2116 = vrot.lane.b32.xlu2 %v8115_v57, %s3395_s6  ;;  %v2466_v57 = vadd.f32 %v2458_v15, %v2448_v12  ;;  %v2414_v11 = vadd.f32 %v2406_v19, %v6445_v41  ;;  %v2442_v53 = vmul.f32 %v6613_v24, %v6506_v2  ;;  %v6624_v12 = vld [vmem:[#allocation2 + $0x1a0] sm:$0xff] }
 0x1d2   :  { %v2446_v50 = vadd.f32 %v2438_v30, %v2428_v45  ;;  %v2474_v22 = vmul.f32 %v6618_v42, %v6542_v26  ;;  %v2389_v59 = vmul.f32 %v6373_v51, %v6219_v37  ;;  %8118 = vst [vmem:[#allocation19_spill] sm:$0xff] %v6624_v12  ;;  %v2460_v41 = vmul.f32 %v6624_v12, %v6525_v63 }
 0x1d3   :  { %v2484_v36 = vadd.f32 %v2476_v3, %v2466_v57  ;;  %v2432_v15 = vadd.f32 %v2424_v54, %v2414_v11  ;;  %v2407_v19 = vmul.f32 %v6477_v43, %v6496_v33  ;;  %v2478_v30 = vmul.f32 %v6542_v26, %v5819_v4 }
 0x1d4   :  { %v2464_v49 = vadd.f32 %v2456_v10, %v2446_v50  ;;  %v2397_v45 = vadd.f32 %v2389_v59, %v6297_v44  ;;  %v2425_v24 = vmul.f32 %v6487_v0, %v6503_v62  ;;  %v2443_v11 = vmul.f32 %v6491_v25, %v6506_v2  ;;  %v6645_v50 = vld [vmem:[#allocation2 + $0xd8] sm:$0xff]  ;;  %v8119_v59 = vld [vmem:[#allocation21_spill] sm:$0xff]  ;;  %v8125_v25 = vld [vmem:[#allocation55_spill] sm:$0xff] }
 0x1d5   :  { %v6639_v54 = vadd.f32 %v6547_v20, %v2484_v36  ;;  %v2450_v57 = vadd.f32 %v2442_v53, %v2432_v15  ;;  %v2405_v44 = vmul.f32 %v6645_v50, %v6496_v33  ;;  %v2423_v3 = vmul.f32 %v8119_v59, %v6503_v62  ;;  %v6656_v15 = vld [vmem:[#allocation2 + $0x1a8] sm:$0xff]  ;;  %v6686_v0 = vld [vmem:[#allocation2 + $0x198] sm:$0xff] }
 0x1d6   :  { %v2482_v10 = vadd.f32 %v2474_v22, %v2464_v49  ;;  %v2415_v4 = vadd.f32 %v2407_v19, %v2397_v45  ;;  %v8120_v36 = vand.u32 2147483647, %v6402_v34  ;;  %8121 = vst [vmem:[#allocation37_spill] sm:$0xff] %v6656_v15  ;;  %v2461_v22 = vmul.f32 %v6656_v15, %v6525_v63  ;;  %v6662_v19 = vld [vmem:[#allocation2 + $0x158] sm:$0xff] }
 0x1d7   :  { %v2468_v53 = vadd.f32 %v2460_v41, %v2450_v57  ;;  %v2479_v49 = vmul.f32 %v6542_v26, %v8102_v1  ;;  %8122 = vst [vmem:[#allocation40_spill] sm:$0xff] %v6662_v19  ;;  %v2441_v45 = vmul.f32 %v6662_v19, %v6506_v2  ;;  %v8123_v34 = vand.u32 2147483647, %v6295_v21 }
 0x1d8   :  { %2317 = vrot.lane.b32.xlu1 %v8120_v36, %s3395_s6  ;;  %v8124_v41 = vand.u32 2147483647, %v6467_v48  ;;  %v6675_v57 = vadd.f32 %v6547_v20, %v2482_v10  ;;  %v2433_v36 = vadd.f32 %v2425_v24, %v2415_v4  ;;  %v2413_v1 = vadd.f32 %v2405_v44, %v6448_v9  ;;  %8126 = vst [vmem:[#allocation53_spill] sm:$0xff] %v6686_v0  ;;  %v1481_v10 = vpop.permute.xlu1 %1480 }
 0x1d9   :  { %2315 = vrot.lane.b32.xlu0 %v8123_v34, %s3395_s6  ;;  %v1514_v12 = vstv %s6590_s11  ;;  %v2502_v16 = vand.u32 2147483647, %v6639_v54  ;;  %v2486_v47 = vadd.f32 %v2478_v30, %v2468_v53  ;;  %v2391_v21 = vmul.f32 %v8125_v25, %v6219_v37  ;;  %v1483_v34 = vpop.permute.xlu2 %1482  ;;  %1505 = vst.msk [vmem:[%s7687_s5 + $0x1] sm:$0xff] %vm1504_vm5, %v1481_v10  ;;  %v8132_v54 = vld [vmem:[#allocation16_spill] sm:$0xff] }
 0x1da   :  { %2313 = vrot.lane.b32.xlu2 %v8124_v41, %s3395_s6  ;;  %v6680_v15 = vand.u32 2147483647, %v1514_v12  ;;  %v2451_v48 = vadd.f32 %v2443_v11, %v2433_v36  ;;  %v2431_v41 = vadd.f32 %v2423_v3, %v2413_v1  ;;  %v2459_v24 = vmul.f32 %v6686_v0, %v6525_v63  ;;  %1506 = vst.msk [vmem:[%s7687_s5 + $0x9] sm:$0xff] %vm1504_vm5, %v1483_v34 }
 0x1db   :  { %v2409_v9 = vmul.f32 %v6440_v40, %v6496_v33  ;;  %v2500_v12 = vand.u32 2147483647, %v6675_v57  ;;  %v2477_v30 = vmul.f32 %v6542_v26, %v5746_v5  ;;  %v2399_v3 = vadd.f32 %v2391_v21, %v6346_v46  ;;  %v6710_v5 = vld [vmem:[#allocation2 + $0x178] sm:$0xff]  ;;  %v8136_v57 = vld [vmem:[#allocation51_spill] sm:$0xff] }
 0x1dc   :  { %v2427_v11 = vmul.f32 %v6456_v13, %v6503_v62  ;;  %v6703_v4 = vadd.f32 %v6547_v20, %v2486_v47  ;;  %v2469_v44 = vadd.f32 %v2461_v22, %v2451_v48  ;;  %v2449_v53 = vadd.f32 %v2441_v45, %v2431_v41  ;;  %3032 = vst.msk [vmem:[%s7687_s5 + $0x58] sm:$0xff] %vm1307_vm3, %v6680_v15  ;;  %v6720_v22 = vld [vmem:[#allocation2 + $0x1b8] sm:$0xff] }
 0x1dd   :  { %v2445_v46 = vmul.f32 %v6710_v5, %v6506_v2  ;;  %v2417_v47 = vadd.f32 %v2409_v9, %v2399_v3  ;;  %v2463_v45 = vmul.f32 %v6720_v22, %v6525_v63  ;;  %v2599_v36 = vadd.f32 %v6464_v14, %v6310_v18  ;;  %3033 = vst.msk [vmem:[%s7687_s5 + $0x60] sm:$0xff] %vm1307_vm3, %v6680_v15 }
 0x1de   :  { %v6727_v1 = vstv %s6635_s12  ;;  %v2487_v21 = vadd.f32 %v2479_v49, %v2469_v44  ;;  %v2467_v34 = vadd.f32 %v2459_v24, %v2449_v53  ;;  %v6737_v41 = vstv %s6643_s13  ;;  %3030 = vst.msk [vmem:[%s7687_s5 + $0x48] sm:$0xff] %vm1307_vm3, %v6680_v15  ;;  %s7028_s13 = sld [smem:[#allocation7 + $0x386]] }
 0x1df   :  { %v2609_v48 = vmul.f32 %v6559_v52, %v6727_v1  ;;  %v8127_v9 = vand.u32 2147483647, %v6557_v32  ;;  %v2435_v18 = vadd.f32 %v2427_v11, %v2417_v47  ;;  %v2627_v14 = vmul.f32 %v6563_v61, %v6737_v41  ;;  %3031 = vst.msk [vmem:[%s7687_s5 + $0x50] sm:$0xff] %vm1307_vm3, %v6680_v15  ;;  %s7209_s12 = sld [smem:[#allocation8 + $0x4]] }
 0x1e0   :  { %v6750_v49 = vstv %s6651_s14  ;;  %v6753_v24 = vstv %s6666_s15  ;;  %v8128_v3 = vand.u32 2147483647, %v6535_v7  ;;  %v8129_v32 = vand.u32 2147483647, %v6574_v28  ;;  %3034 = vst.msk [vmem:[%s7687_s5 + $0x68] sm:$0xff] %vm1307_vm3, %v6680_v15 }
 0x1e1   :  { %2323 = vrot.lane.b32.xlu1 %v8127_v9, %s3395_s6  ;;  %v6762_v10 = vadd.f32 %v6547_v20, %v2487_v21  ;;  %v2485_v44 = vadd.f32 %v2477_v30, %v2467_v34  ;;  %v2617_v11 = vadd.f32 %v2609_v48, %v2599_v36  ;;  %v2453_v7 = vadd.f32 %v2445_v46, %v2435_v18  ;;  %v1489_v47 = vpop.permute.xlu2 %1488  ;;  %v8130_v9 = vld [vmem:[#allocation20_spill] sm:$0xff]  ;;  %v8140_v21 = vld [vmem:[#allocation46_spill] sm:$0xff] }
 0x1e2   :  { %2321 = vrot.lane.b32.xlu0 %v8128_v3, %s3395_s6  ;;  %2319 = vrot.lane.b32.xlu2 %v8129_v32, %s3395_s6  ;;  %v2481_v28 = vmul.f32 %v6542_v26, %v5866_v8  ;;  %v2645_v30 = vmul.f32 %v6577_v35, %v6750_v49  ;;  %v6779_v53 = vstv %s6684_s16  ;;  %3035 = vst.msk [vmem:[%s7687_s5 + $0x70] sm:$0xff] %vm1307_vm3, %v6680_v15  ;;  %s6913_s16 = sld [smem:[#allocation7 + $0x380]] }
 0x1e3   :  { %v2635_v8 = vadd.f32 %v2627_v14, %v2617_v11  ;;  %v2663_v46 = vmul.f32 %v6581_v60, %v6753_v24  ;;  %1509 = vst.msk [vmem:[%s7687_s5 + $0x21] sm:$0xff] %vm1504_vm5, %v1489_v47  ;;  %v6797_v34 = vadd.f32 %v6547_v20, %v2485_v44  ;;  %v2471_v48 = vadd.f32 %v2463_v45, %v2453_v7  ;;  %v6821_v44 = vld [vmem:[#allocation2 + $0x170] sm:$0xff] }
 0x1e4   :  { %v2390_v18 = vmul.f32 %v8130_v9, %v6219_v37  ;;  %v2408_v3 = vmul.f32 %v6268_v23, %v6496_v33  ;;  %3036 = vst.msk [vmem:[%s7687_s5 + $0x78] sm:$0xff] %vm1307_vm3, %v6680_v15  ;;  %v2681_v32 = vmul.f32 %v6618_v42, %v6779_v53  ;;  %v6811_v11 = vstv %s6714_s0 }
 0x1e5   :  { %v2653_v14 = vadd.f32 %v2645_v30, %v2635_v8  ;;  %v2426_v45 = vmul.f32 %v6388_v27, %v6503_v62  ;;  %3037 = vst.msk [vmem:[%s7687_s5 + $0x80] sm:$0xff] %vm1307_vm3, %v6680_v15  ;;  %v2489_v37 = vadd.f32 %v2481_v28, %v2471_v48  ;;  %v2444_v7 = vmul.f32 %v6821_v44, %v6506_v2  ;;  %v6825_v30 = vld [vmem:[#allocation2 + $0x1b0] sm:$0xff] }
 0x1e6   :  { %v2398_v33 = vadd.f32 %v2390_v18, %v6319_v29  ;;  %v2462_v47 = vmul.f32 %v6825_v30, %v6525_v63  ;;  %3038 = vst.msk [vmem:[%s7687_s5 + $0x88] sm:$0x3] %vm1316_vm4, %v6680_v15  ;;  %v2480_v29 = vmul.f32 %v6542_v26, %v8088_v55  ;;  %v2593_v28 = vmul.f32 %v6080_v6, %v6397_v56  ;;  %v6860_v48 = vld [vmem:[#allocation2 + $0x1d0] sm:$0xff]  ;;  %v8135_v18 = vld [vmem:[#allocation49_spill] sm:$0xff] }
 0x1e7   :  { %v2671_v62 = vadd.f32 %v2663_v46, %v2653_v14  ;;  %v2611_v2 = vmul.f32 %v8108_v58, %v6727_v1  ;;  %v6844_v63 = vadd.f32 %v6547_v20, %v2489_v37  ;;  %v2629_v15 = vmul.f32 %v8109_v31, %v6737_v41  ;;  %8133 = vst [vmem:[#allocation26_spill] sm:$0xff] %v6860_v48 }
 0x1e8   :  { %v2416_v8 = vadd.f32 %v2408_v3, %v2398_v33  ;;  %v2647_v26 = vmul.f32 %v6331_v17, %v6750_v49  ;;  %v8131_v6 = vand.u32 2147483647, %v6610_v39  ;;  %v2503_v55 = vand.u32 2147483647, %v6797_v34  ;;  %v8134_v39 = vld [vmem:[#allocation25_spill] sm:$0xff] }
 0x1e9   :  { %2520 = vrot.lane.b32.xlu1 %v2502_v16, %s3395_s6  ;;  %v2689_v58 = vadd.f32 %v2681_v32, %v2671_v62  ;;  %v2601_v16 = vadd.f32 %v2593_v28, %v6399_v38  ;;  %v2665_v31 = vmul.f32 %v8132_v54, %v6753_v24  ;;  %v2683_v17 = vmul.f32 %v6860_v48, %v6779_v53  ;;  %v1495_v14 = vpop.permute.xlu2 %1494  ;;  %v8145_v54 = vld [vmem:[#allocation39_spill] sm:$0xff] }
 0x1ea   :  { %2518 = vrot.lane.b32.xlu0 %v8131_v6, %s3395_s6  ;;  %2516 = vrot.lane.b32.xlu2 %v2500_v12, %s3395_s6  ;;  %v2434_v46 = vadd.f32 %v2426_v45, %v2416_v8  ;;  %v2584_v3 = vadd.f32 %v8135_v18, %v8134_v39  ;;  %v2594_v12 = vmul.f32 %v8136_v57, %v6397_v56  ;;  %v1721_v45 = vstv %s6781_s2  ;;  %s7122_s2 = sld [smem:[#allocation8 + $0x3]] }
 0x1eb   :  { %v6869_v34 = vadd.f32 %v6811_v11, %v2689_v58  ;;  %v2619_v38 = vadd.f32 %v2611_v2, %v2601_v16  ;;  %v2612_v32 = vmul.f32 %v6645_v50, %v6727_v1  ;;  %1512 = vst.msk [vmem:[%s7687_s5 + $0x39] sm:$0xff] %vm1504_vm5, %v1495_v14  ;;  %v2630_v28 = vmul.f32 %v8119_v59, %v6737_v41  ;;  %v8137_v58 = vld [vmem:[#allocation29_spill] sm:$0xff]  ;;  %v8138_v16 = vld [vmem:[#allocation48_spill] sm:$0xff]  ;;  %v8139_v14 = vld [vmem:[#allocation30_spill] sm:$0xff] }
 0x1ec   :  { %v2452_v33 = vadd.f32 %v2444_v7, %v2434_v46  ;;  %v2602_v62 = vadd.f32 %v2594_v12, %v2584_v3  ;;  %v2648_v2 = vmul.f32 %v6662_v19, %v6750_v49  ;;  %v2666_v6 = vmul.f32 %v6686_v0, %v6753_v24  ;;  %v8141_v7 = vld [vmem:[#allocation56_spill] sm:$0xff] }
 0x1ed   :  { %v2637_v8 = vadd.f32 %v2629_v15, %v2619_v38  ;;  %v2564_v39 = vmul.f32 %v8138_v16, %v8137_v58  ;;  %v2574_v37 = vmul.f32 %v8140_v21, %v8139_v14  ;;  %v2592_v46 = vmul.f32 %v8141_v7, %v6397_v56  ;;  %v6892_v3 = vld [vmem:[#allocation2 + $0x1d8] sm:$0xff]  ;;  %v8143_v38 = vld [vmem:[#allocation31_spill] sm:$0xff] }
 0x1ee   :  { %v2470_v18 = vadd.f32 %v2462_v47, %v2452_v33  ;;  %v2620_v36 = vadd.f32 %v2612_v32, %v2602_v62  ;;  %v2707_v59 = vand.u32 2147483647, %v6869_v34  ;;  %8142 = vst [vmem:[#allocation35_spill] sm:$0xff] %v6892_v3  ;;  %v2684_v12 = vmul.f32 %v6892_v3, %v6779_v53 }
 0x1ef   :  { %v2655_v15 = vadd.f32 %v2647_v26, %v2637_v8  ;;  %v2610_v48 = vmul.f32 %v8143_v38, %v6727_v1  ;;  %v8144_v47 = vand.u32 2147483647, %v6762_v10  ;;  %v2582_v62 = vadd.f32 %v2574_v37, %v2564_v39  ;;  %v8147_v8 = vld [vmem:[#allocation44_spill] sm:$0xff]  ;;  %v8148_v10 = vld [vmem:[#allocation17_spill] sm:$0xff] }
 0x1f0   :  { %v2488_v32 = vadd.f32 %v2480_v29, %v2470_v18  ;;  %v2638_v33 = vadd.f32 %v2630_v28, %v2620_v36  ;;  %v2628_v0 = vmul.f32 %v8145_v54, %v6737_v41  ;;  %v8146_v26 = vand.u32 2147483647, %v6703_v4  ;;  %v1487_v36 = vpop.permute.xlu1 %1486  ;;  %v8149_v4 = vld [vmem:[#allocation47_spill] sm:$0xff] }
 0x1f1   :  { %2526 = vrot.lane.b32.xlu1 %v8144_v47, %s3395_s6  ;;  %v2673_v34 = vadd.f32 %v2665_v31, %v2655_v15  ;;  %v2646_v3 = vmul.f32 %v8147_v8, %v6750_v49  ;;  %v6909_v19 = vand.u32 2147483647, %v1721_v45  ;;  %v2568_v29 = vmul.f32 %v8148_v10, %v8137_v58  ;;  %1508 = vst.msk [vmem:[%s7687_s5 + $0x19] sm:$0xff] %vm1504_vm5, %v1487_v36  ;;  %v1485_v31 = vpop.permute.xlu0 %1484  ;;  %v8150_v15 = vld [vmem:[#allocation15_spill] sm:$0xff]  ;;  %v8152_v36 = vld [vmem:[#allocation41_spill] sm:$0xff] }
 0x1f2   :  { %2524 = vrot.lane.b32.xlu0 %v8146_v26, %s3395_s6  ;;  %2522 = vrot.lane.b32.xlu2 %v2503_v55, %s3395_s6  ;;  %v2498_v37 = vadd.f32 %v6547_v20, %v2488_v32  ;;  %v2656_v28 = vadd.f32 %v2648_v2, %v2638_v33  ;;  %v2600_v39 = vadd.f32 %v2592_v46, %v2582_v62  ;;  %v1693_v55 = vpop.permute.xlu2 %1692  ;;  %v6924_v26 = vld [vmem:[#allocation2 + $0x1c8] sm:$0xff] }
 0x1f3   :  { %v2578_v18 = vmul.f32 %v8149_v4, %v8139_v14  ;;  %v2691_v45 = vadd.f32 %v2683_v17, %v2673_v34  ;;  %v2664_v47 = vmul.f32 %v8150_v15, %v6753_v24  ;;  %v2682_v20 = vmul.f32 %v6924_v26, %v6779_v53  ;;  %3050 = vst.msk [vmem:[%s7687_s5 + $0x59] sm:$0xff] %vm1504_vm5, %v1693_v55 }
 0x1f4   :  { %v2596_v2 = vmul.f32 %v6373_v51, %v6397_v56  ;;  %v2674_v46 = vadd.f32 %v2666_v6, %v2656_v28  ;;  %v2618_v32 = vadd.f32 %v2610_v48, %v2600_v39  ;;  %v2614_v17 = vmul.f32 %v6477_v43, %v6727_v1  ;;  %1507 = vst.msk [vmem:[%s7687_s5 + $0x11] sm:$0xff] %vm1504_vm5, %v1485_v31  ;;  %v8151_v51 = vld [vmem:[#allocation32_spill] sm:$0xff]  ;;  %v6959_v39 = vld [vmem:[#allocation2 + $0x1e8] sm:$0xff] }
 0x1f5   :  { %v2586_v33 = vadd.f32 %v2578_v18, %v2568_v29  ;;  %v2506_v62 = vand.u32 2147483647, %v2498_v37  ;;  %v6941_v34 = vadd.f32 %v6811_v11, %v2691_v45  ;;  %v2632_v10 = vmul.f32 %v8151_v51, %v6737_v41  ;;  %3057 = vst.msk [vmem:[%s7687_s5 + $0x90] sm:$0xff] %vm1307_vm3, %v6909_v19  ;;  %v8153_v37 = vld [vmem:[#allocation37_spill] sm:$0xff]  ;;  %v8155_v18 = vld [vmem:[#allocation23_spill] sm:$0xff] }
 0x1f6   :  { %v2650_v6 = vmul.f32 %v8152_v36, %v6750_v49  ;;  %v2692_v48 = vadd.f32 %v2684_v12, %v2674_v46  ;;  %v2636_v29 = vadd.f32 %v2628_v0, %v2618_v32  ;;  %v2668_v28 = vmul.f32 %v8153_v37, %v6753_v24  ;;  %3058 = vst.msk [vmem:[%s7687_s5 + $0x98] sm:$0xff] %vm1307_vm3, %v6909_v19  ;;  %v6963_v12 = vld [vmem:[#allocation2 + $0x30] sm:$0xff] }
 0x1f7   :  { %v2604_v43 = vadd.f32 %v2596_v2, %v2586_v33  ;;  %8154 = vst [vmem:[#allocation27_spill] sm:$0xff] %v6959_v39  ;;  %v2686_v0 = vmul.f32 %v6959_v39, %v6779_v53  ;;  %v2569_v4 = vmul.f32 %v6963_v12, %v8137_v58  ;;  %v2579_v55 = vmul.f32 %v8155_v18, %v8139_v14 }
 0x1f8   :  { %v2597_v31 = vmul.f32 %v8130_v9, %v6397_v56  ;;  %v2702_v45 = vadd.f32 %v6811_v11, %v2692_v48  ;;  %v2654_v2 = vadd.f32 %v2646_v3, %v2636_v29  ;;  %3059 = vst.msk [vmem:[%s7687_s5 + $0xa0] sm:$0xff] %vm1307_vm3, %v6909_v19  ;;  %v8156_v32 = vand.u32 2147483647, %v6844_v63  ;;  %v1493_v63 = vpop.permute.xlu1 %1492  ;;  %v8157_v29 = vld [vmem:[#allocation43_spill] sm:$0xff] }
 0x1f9   :  { %2723 = vrot.lane.b32.xlu1 %v2707_v59, %s3395_s6  ;;  %v2622_v46 = vadd.f32 %v2614_v17, %v2604_v43  ;;  %v2709_v9 = vand.u32 2147483647, %v6941_v34  ;;  %3060 = vst.msk [vmem:[%s7687_s5 + $0xa8] sm:$0xff] %vm1307_vm3, %v6909_v19  ;;  %v2587_v59 = vadd.f32 %v2579_v55, %v2569_v4  ;;  %v2615_v3 = vmul.f32 %v6268_v23, %v6727_v1  ;;  %v8158_v43 = vld [vmem:[#allocation50_spill] sm:$0xff] }
 0x1fa   :  { %2530 = vrot.lane.b32.xlu0 %v8156_v32, %s3395_s6  ;;  %2528 = vrot.lane.b32.xlu2 %v2506_v62, %s3395_s6  ;;  %v6995_v33 = vstv %s6913_s16  ;;  %v2672_v17 = vadd.f32 %v2664_v47, %v2654_v2  ;;  %3061 = vst.msk [vmem:[%s7687_s5 + $0xb0] sm:$0xff] %vm1307_vm3, %v6909_v19  ;;  %v2633_v34 = vmul.f32 %v6388_v27, %v6737_v41  ;;  %v1699_v23 = vpop.permute.xlu2 %1698  ;;  %v1491_v47 = vpop.permute.xlu0 %1490  ;;  %v2710_v36 = vand.u32 2147483647, %v2702_v45  ;;  %v8160_v32 = vld [vmem:[#allocation22_spill] sm:$0xff]  ;;  %s7040_s16 = sld [smem:[#allocation7 + $0x387]] }
 0x1fb   :  { %v2640_v62 = vadd.f32 %v2632_v10, %v2622_v46  ;;  %v2651_v51 = vmul.f32 %v6821_v44, %v6750_v49  ;;  %1511 = vst.msk [vmem:[%s7687_s5 + $0x31] sm:$0xff] %vm1504_vm5, %v1493_v63  ;;  %v2605_v48 = vadd.f32 %v2597_v31, %v2587_v59  ;;  %v2567_v10 = vmul.f32 %v8157_v29, %v8137_v58  ;;  %v8159_v31 = vld [vmem:[#allocation38_spill] sm:$0xff]  ;;  %v7034_v46 = vld [vmem:[#allocation2 + $0x1f0] sm:$0xff] }
 0x1fc   :  { %v2577_v27 = vmul.f32 %v8158_v43, %v8139_v14  ;;  %3053 = vst.msk [vmem:[%s7687_s5 + $0x71] sm:$0xff] %vm1504_vm5, %v1699_v23  ;;  %v2690_v4 = vadd.f32 %v2682_v20, %v2672_v17  ;;  %v2669_v55 = vmul.f32 %v6825_v30, %v6753_v24  ;;  %v2595_v45 = vmul.f32 %v8159_v31, %v6397_v56  ;;  %v8161_v17 = vld [vmem:[#allocation28_spill] sm:$0xff]  ;;  %v8162_v23 = vld [vmem:[#allocation54_spill] sm:$0xff] }
 0x1fd   :  { %v2658_v18 = vadd.f32 %v2650_v6, %v2640_v62  ;;  %1510 = vst.msk [vmem:[%s7687_s5 + $0x29] sm:$0xff] %vm1504_vm5, %v1491_v47  ;;  %v2623_v2 = vadd.f32 %v2615_v3, %v2605_v48  ;;  %v2687_v20 = vmul.f32 %v7034_v46, %v6779_v53  ;;  %v2613_v59 = vmul.f32 %v8160_v32, %v6727_v1 }
 0x1fe   :  { %v2585_v6 = vadd.f32 %v2577_v27, %v2567_v10  ;;  %v2700_v63 = vadd.f32 %v6811_v11, %v2690_v4  ;;  %3062 = vst.msk [vmem:[%s7687_s5 + $0xb8] sm:$0xff] %vm1307_vm3, %v6909_v19  ;;  %v2631_v62 = vmul.f32 %v8161_v17, %v6737_v41  ;;  %v2649_v47 = vmul.f32 %v8162_v23, %v6750_v49  ;;  %v8163_v10 = vld [vmem:[#allocation36_spill] sm:$0xff] }
 0x1ff   :  { %v2676_v3 = vadd.f32 %v2668_v28, %v2658_v18  ;;  %3063 = vst.msk [vmem:[%s7687_s5 + $0xc0] sm:$0xff] %vm1307_vm3, %v6909_v19  ;;  %v2641_v48 = vadd.f32 %v2633_v34, %v2623_v2  ;;  %v2770_v43 = vmul.f32 %v8163_v10, %v6995_v33  ;;  %v7060_v27 = vstv %s6971_s26  ;;  %v8164_v18 = vld [vmem:[#allocation34_spill] sm:$0xff]  ;;  %s7100_s26 = sld [smem:[#allocation8 + $0x7]] }
 0x200   :  { %v2603_v29 = vadd.f32 %v2595_v45, %v2585_v6  ;;  %v2708_v28 = vand.u32 2147483647, %v2700_v63  ;;  %3064 = vst.msk [vmem:[%s7687_s5 + $0xc8] sm:$0xff] %vm1307_vm3, %v6909_v19  ;;  %v2780_v34 = vmul.f32 %v8164_v18, %v7060_v27  ;;  %v7071_v45 = vstv %s6980_s29  ;;  %v8165_v6 = vld [vmem:[#allocation42_spill] sm:$0xff]  ;;  %v1691_v63 = vpop.permute.xlu1 %1690 }
 0x201   :  { %2729 = vrot.lane.b32.xlu1 %v2710_v36, %s3395_s6  ;;  %v2694_v4 = vadd.f32 %v2686_v0, %v2676_v3  ;;  %3065 = vst.msk [vmem:[%s7687_s5 + $0xd0] sm:$0x3] %vm1316_vm4, %v6909_v19  ;;  %v2659_v36 = vadd.f32 %v2651_v51, %v2641_v48  ;;  %v2798_v32 = vmul.f32 %v8165_v6, %v7071_v45  ;;  %v7082_v0 = vstv %s6997_s7 }
 0x202   :  { %2727 = vrot.lane.b32.xlu0 %v2709_v9, %s3395_s6  ;;  %v2621_v2 = vadd.f32 %v2613_v59, %v2603_v29  ;;  %2725 = vrot.lane.b32.xlu2 %v2708_v28, %s3395_s6  ;;  %v2788_v9 = vadd.f32 %v2780_v34, %v2770_v43  ;;  %v2816_v10 = vmul.f32 %v6559_v52, %v7082_v0  ;;  %v7089_v18 = vstv %s7008_s10  ;;  %v1896_v19 = vpop.permute.xlu2 %1895  ;;  %v1689_v51 = vpop.permute.xlu0 %1688  ;;  %v8166_v29 = vld [vmem:[#allocation19_spill] sm:$0xff]  ;;  %v7106_v52 = vld [vmem:[#allocation2 + $0x1e0] sm:$0xff] }
 0x203   :  { %v2704_v3 = vadd.f32 %v6811_v11, %v2694_v4  ;;  %3049 = vst.msk [vmem:[%s7687_s5 + $0x51] sm:$0xff] %vm1504_vm5, %v1691_v63  ;;  %v2677_v59 = vadd.f32 %v2669_v55, %v2659_v36  ;;  %v2667_v28 = vmul.f32 %v8166_v29, %v6753_v24  ;;  %v7098_v43 = vstv %s7018_s4 }
 0x204   :  { %v2639_v48 = vadd.f32 %v2631_v62, %v2621_v2  ;;  %3075 = vst.msk [vmem:[%s7687_s5 + $0x91] sm:$0xff] %vm1504_vm5, %v1896_v19  ;;  %v2685_v4 = vmul.f32 %v7106_v52, %v6779_v53  ;;  %v2806_v34 = vadd.f32 %v2798_v32, %v2788_v9  ;;  %v2834_v55 = vmul.f32 %v6563_v61, %v7089_v18 }
 0x205   :  { %3048 = vst.msk [vmem:[%s7687_s5 + $0x49] sm:$0xff] %vm1504_vm5, %v1689_v51  ;;  %v2695_v62 = vadd.f32 %v2687_v20, %v2677_v59  ;;  %v7117_v2 = vstv %s7028_s13  ;;  %v7120_v6 = vstv %s7040_s16  ;;  %v2712_v63 = vand.u32 2147483647, %v2704_v3 }
 0x206   :  { %v2657_v36 = vadd.f32 %v2649_v47, %v2639_v48  ;;  %v2824_v19 = vadd.f32 %v2816_v10, %v2806_v34  ;;  %v2852_v32 = vmul.f32 %v6577_v35, %v7098_v43  ;;  %v2771_v61 = vmul.f32 %v8138_v16, %v6995_v33  ;;  %v7144_v34 = vld [vmem:[#allocation2 + $0x38] sm:$0xff] }
 0x207   :  { %v2705_v9 = vadd.f32 %v6811_v11, %v2695_v62  ;;  %v2781_v20 = vmul.f32 %v8140_v21, %v7060_v27  ;;  %v2799_v47 = vmul.f32 %v8141_v7, %v7071_v45  ;;  %v2870_v3 = vmul.f32 %v6581_v60, %v7117_v2 }
 0x208   :  { %v2675_v39 = vadd.f32 %v2667_v28, %v2657_v36  ;;  %v2842_v51 = vadd.f32 %v2834_v55, %v2824_v19  ;;  %v2888_v10 = vmul.f32 %v6618_v42, %v7120_v6  ;;  %v2817_v35 = vmul.f32 %v8143_v38, %v7082_v0  ;;  %v1697_v7 = vpop.permute.xlu1 %1696  ;;  %v7148_v38 = vld [vmem:[#allocation2 + $0x78] sm:$0xff] }
 0x209   :  { %v2713_v16 = vand.u32 2147483647, %v2705_v9  ;;  %v2789_v48 = vadd.f32 %v2781_v20, %v2771_v61  ;;  %v2835_v21 = vmul.f32 %v8145_v54, %v7089_v18  ;;  %v2853_v60 = vmul.f32 %v8147_v8, %v7098_v43  ;;  %3052 = vst.msk [vmem:[%s7687_s5 + $0x69] sm:$0xff] %vm1504_vm5, %v1697_v7  ;;  %v3314_v7 = vld [vmem:[#allocation2 + $0x118] sm:$0xff] }
 0x20a   :  { %2733 = vrot.lane.b32.xlu0 %v2712_v63, %s3395_s6  ;;  %v2693_v59 = vadd.f32 %v2685_v4, %v2675_v39  ;;  %v2860_v28 = vadd.f32 %v2852_v32, %v2842_v51  ;;  %v2570_v42 = vmul.f32 %v7144_v34, %v8137_v58  ;;  %v2580_v55 = vmul.f32 %v7148_v38, %v8139_v14  ;;  %v1902_v54 = vpop.permute.xlu2 %1901  ;;  %v1695_v8 = vpop.permute.xlu0 %1694 }
 0x20b   :  { %2735 = vrot.lane.b32.xlu1 %v2713_v16, %s3395_s6  ;;  %v7159_v4 = vstv %s7100_s26  ;;  %v2807_v58 = vadd.f32 %v2799_v47, %v2789_v48  ;;  %v2598_v62 = vmul.f32 %v8125_v25, %v6397_v56  ;;  %3078 = vst.msk [vmem:[%s7687_s5 + $0xa9] sm:$0xff] %vm1504_vm5, %v1902_v54  ;;  %v2871_v36 = vmul.f32 %v8150_v15, %v7117_v2 }
 0x20c   :  { %v2703_v39 = vadd.f32 %v6811_v11, %v2693_v59  ;;  %v2878_v14 = vadd.f32 %v2870_v3, %v2860_v28  ;;  %v2588_v63 = vadd.f32 %v2580_v55, %v2570_v42  ;;  %v2616_v19 = vmul.f32 %v6440_v40, %v6727_v1  ;;  %3051 = vst.msk [vmem:[%s7687_s5 + $0x61] sm:$0xff] %vm1504_vm5, %v1695_v8  ;;  %v8167_v1 = vld [vmem:[#allocation18_spill] sm:$0xff] }
 0x20d   :  { %v2825_v25 = vadd.f32 %v2817_v35, %v2807_v58  ;;  %v2889_v56 = vmul.f32 %v6924_v26, %v7120_v6  ;;  %v1928_v61 = vstv %s7122_s2  ;;  %v2634_v15 = vmul.f32 %v6456_v13, %v6737_v41  ;;  %v8168_v3 = vld [vmem:[#allocation14_spill] sm:$0xff]  ;;  %v7192_v41 = vld [vmem:[#allocation2 + $0x1f8] sm:$0xff] }
 0x20e   :  { %v2711_v32 = vand.u32 2147483647, %v2703_v39  ;;  %v2896_v9 = vadd.f32 %v2888_v10, %v2878_v14  ;;  %v2606_v20 = vadd.f32 %v2598_v62, %v2588_v63  ;;  %v2652_v47 = vmul.f32 %v6710_v5, %v6750_v49  ;;  %v3315_v39 = vld [vmem:[#allocation2 + $0x20] sm:$0xff]  ;;  %v8169_v62 = vld [vmem:[#allocation40_spill] sm:$0xff] }
 0x20f   :  { %v2843_v40 = vadd.f32 %v2835_v21, %v2825_v25  ;;  %v2773_v51 = vmul.f32 %v8167_v1, %v6995_v33  ;;  %v2783_v35 = vmul.f32 %v8168_v3, %v7060_v27  ;;  %v2801_v26 = vmul.f32 %v8136_v57, %v7071_v45 }
 0x210   :  { %2731 = vrot.lane.b32.xlu2 %v2711_v32, %s3395_s6  ;;  %v2906_v10 = vadd.f32 %v7159_v4, %v2896_v9  ;;  %v2624_v16 = vadd.f32 %v2616_v19, %v2606_v20  ;;  %v2670_v13 = vmul.f32 %v6720_v22, %v6753_v24  ;;  %v2688_v49 = vmul.f32 %v7192_v41, %v6779_v53  ;;  %v1703_v55 = vpop.permute.xlu1 %1702  ;;  %v3316_v24 = vld [vmem:[#allocation2 + $0x60] sm:$0xff] }
 0x211   :  { %v2861_v59 = vadd.f32 %v2853_v60, %v2843_v40  ;;  %v2791_v48 = vadd.f32 %v2783_v35, %v2773_v51  ;;  %v2819_v21 = vmul.f32 %v6645_v50, %v7082_v0  ;;  %v2837_v28 = vmul.f32 %v3314_v7, %v7089_v18  ;;  %3055 = vst.msk [vmem:[%s7687_s5 + $0x81] sm:$0xff] %vm1504_vm5, %v1703_v55  ;;  %v3317_v32 = vld [vmem:[#allocation2 + $0xe0] sm:$0xff]  ;;  %v8171_v40 = vld [vmem:[#allocation35_spill] sm:$0xff] }
 0x212   :  { %v2914_v57 = vand.u32 2147483647, %v2906_v10  ;;  %v2642_v42 = vadd.f32 %v2634_v15, %v2624_v16  ;;  %v2774_v54 = vmul.f32 %v3315_v39, %v6995_v33  ;;  %v2784_v8 = vmul.f32 %v3316_v24, %v7060_v27  ;;  %v1908_v53 = vpop.permute.xlu2 %1907  ;;  %v1701_v50 = vpop.permute.xlu0 %1700  ;;  %v8170_v15 = vld [vmem:[#allocation53_spill] sm:$0xff]  ;;  %v3319_v16 = vld [vmem:[#allocation2 + $0x50] sm:$0xff] }
 0x213   :  { %v2879_v58 = vadd.f32 %v2871_v36, %v2861_v59  ;;  %v2809_v60 = vadd.f32 %v2801_v26, %v2791_v48  ;;  %v2855_v14 = vmul.f32 %v8169_v62, %v7098_v43  ;;  %v2802_v63 = vmul.f32 %v8159_v31, %v7071_v45  ;;  %3081 = vst.msk [vmem:[%s7687_s5 + $0xc1] sm:$0xff] %vm1504_vm5, %v1908_v53  ;;  %v3321_v39 = vld [vmem:[#allocation2 + $0xd0] sm:$0xff] }
 0x214   :  { %2930 = vrot.lane.b32.xlu0 %v2914_v57, %s3395_s6  ;;  %v2660_v19 = vadd.f32 %v2652_v47, %v2642_v42  ;;  %v2792_v36 = vadd.f32 %v2784_v8, %v2774_v54  ;;  %v2820_v25 = vmul.f32 %v3317_v32, %v7082_v0  ;;  %v7217_v9 = vand.u32 2147483647, %v1928_v61  ;;  %3054 = vst.msk [vmem:[%s7687_s5 + $0x79] sm:$0xff] %vm1504_vm5, %v1701_v50  ;;  %v3318_v61 = vld [vmem:[#allocation2 + $0x10] sm:$0xff] }
 0x215   :  { %v2897_v20 = vadd.f32 %v2889_v56, %v2879_v58  ;;  %v2827_v31 = vadd.f32 %v2819_v21, %v2809_v60  ;;  %v2873_v47 = vmul.f32 %v8170_v15, %v7117_v2  ;;  %v2891_v1 = vmul.f32 %v8171_v40, %v7120_v6  ;;  %v3322_v24 = vld [vmem:[#allocation2 + $0x110] sm:$0xff] }
 0x216   :  { %v2678_v51 = vadd.f32 %v2670_v13, %v2660_v19  ;;  %v2810_v3 = vadd.f32 %v2802_v63, %v2792_v36  ;;  %v2838_v35 = vmul.f32 %v8161_v17, %v7089_v18  ;;  %v2772_v56 = vmul.f32 %v3318_v61, %v6995_v33  ;;  %3085 = vst.msk [vmem:[%s7687_s5 + $0xe0] sm:$0xff] %vm1307_vm3, %v7217_v9  ;;  %v3320_v13 = vld [vmem:[#allocation2 + $0x90] sm:$0xff] }
 0x217   :  { %v2907_v26 = vadd.f32 %v7159_v4, %v2897_v20  ;;  %v2845_v10 = vadd.f32 %v2837_v28, %v2827_v31  ;;  %v2782_v59 = vmul.f32 %v3319_v16, %v7060_v27  ;;  %v2800_v48 = vmul.f32 %v3320_v13, %v7071_v45  ;;  %3086 = vst.msk [vmem:[%s7687_s5 + $0xe8] sm:$0xff] %vm1307_vm3, %v7217_v9  ;;  %v3323_v36 = vld [vmem:[#allocation2 + $0x70] sm:$0xff]  ;;  %v8173_v16 = vld [vmem:[#allocation26_spill] sm:$0xff] }
 0x218   :  { %v2696_v17 = vadd.f32 %v2688_v49, %v2678_v51  ;;  %v2828_v21 = vadd.f32 %v2820_v25, %v2810_v3  ;;  %v2856_v7 = vmul.f32 %v8162_v23, %v7098_v43  ;;  %v2874_v28 = vmul.f32 %v8166_v29, %v7117_v2  ;;  %3084 = vst.msk [vmem:[%s7687_s5 + $0xd8] sm:$0xff] %vm1307_vm3, %v7217_v9  ;;  %v1900_v58 = vpop.permute.xlu1 %1899  ;;  %v3324_v25 = vld [vmem:[#allocation2 + $0xb0] sm:$0xff] }
 0x219   :  { %v2915_v57 = vand.u32 2147483647, %v2907_v26  ;;  %v2863_v42 = vadd.f32 %v2855_v14, %v2845_v10  ;;  %v2790_v55 = vadd.f32 %v2782_v59, %v2772_v56  ;;  %v2818_v54 = vmul.f32 %v3321_v39, %v7082_v0  ;;  %3087 = vst.msk [vmem:[%s7687_s5 + $0xf0] sm:$0xff] %vm1307_vm3, %v7217_v9  ;;  %v3327_v13 = vld [vmem:[#allocation2 + $0x130] sm:$0xff]  ;;  %v3328_v39 = vld [vmem:[#allocation2 + $0xb8] sm:$0xff] }
 0x21a   :  { %v2706_v23 = vadd.f32 %v6811_v11, %v2696_v17  ;;  %v2846_v29 = vadd.f32 %v2838_v35, %v2828_v21  ;;  %v2892_v49 = vmul.f32 %v7106_v52, %v7120_v6  ;;  %v2836_v8 = vmul.f32 %v3322_v24, %v7089_v18  ;;  %3088 = vst.msk [vmem:[%s7687_s5 + $0xf8] sm:$0xff] %vm1307_vm3, %v7217_v9  ;;  %v1898_v60 = vpop.permute.xlu0 %1897  ;;  %v3326_v35 = vld [vmem:[#allocation2 + $0xf0] sm:$0xff] }
 0x21b   :  { %2932 = vrot.lane.b32.xlu1 %v2915_v57, %s3395_s6  ;;  %v2881_v53 = vadd.f32 %v2873_v47, %v2863_v42  ;;  %v2808_v50 = vadd.f32 %v2800_v48, %v2790_v55  ;;  %3077 = vst.msk [vmem:[%s7687_s5 + $0xa1] sm:$0xff] %vm1504_vm5, %v1900_v58  ;;  %v2105_v52 = vpop.permute.xlu2 %2104  ;;  %v2776_v62 = vmul.f32 %v6963_v12, %v6995_v33  ;;  %v2135_v14 = vstv %s7209_s12  ;;  %v3325_v47 = vld [vmem:[#allocation2 + $0x150] sm:$0xff]  ;;  %v8172_v12 = vld [vmem:[#allocation16_spill] sm:$0xff] }
 0x21c   :  { %v2714_v63 = vand.u32 2147483647, %v2706_v23  ;;  %v2864_v19 = vadd.f32 %v2856_v7, %v2846_v29  ;;  %3103 = vst.msk [vmem:[%s7687_s5 + $0xe1] sm:$0xff] %vm1504_vm5, %v2105_v52  ;;  %v2786_v32 = vmul.f32 %v3323_v36, %v7060_v27  ;;  %v2804_v20 = vmul.f32 %v3324_v25, %v7071_v45  ;;  %v3329_v29 = vld [vmem:[#allocation2 + $0xf8] sm:$0xff]  ;;  %v3332_v36 = vld [vmem:[#allocation2 + $0x68] sm:$0xff] }
 0x21d   :  { %v2899_v31 = vadd.f32 %v2891_v1, %v2881_v53  ;;  %v2826_v15 = vadd.f32 %v2818_v54, %v2808_v50  ;;  %v2854_v40 = vmul.f32 %v3325_v47, %v7098_v43  ;;  %v2872_v51 = vmul.f32 %v8172_v12, %v7117_v2  ;;  %3089 = vst.msk [vmem:[%s7687_s5 + $0x100] sm:$0xff] %vm1307_vm3, %v7217_v9 }
 0x21e   :  { %2737 = vrot.lane.b32.xlu2 %v2714_v63, %s3395_s6  ;;  %v2882_v3 = vadd.f32 %v2874_v28, %v2864_v19  ;;  %3090 = vst.msk [vmem:[%s7687_s5 + $0x108] sm:$0xff] %vm1307_vm3, %v7217_v9  ;;  %v2794_v1 = vadd.f32 %v2786_v32, %v2776_v62  ;;  %v2822_v61 = vmul.f32 %v3326_v35, %v7082_v0  ;;  %v7296_v56 = vand.u32 2147483647, %v2135_v14  ;;  %v3331_v63 = vld [vmem:[#allocation2 + $0x28] sm:$0xff] }
 0x21f   :  { %v2909_v26 = vadd.f32 %v7159_v4, %v2899_v31  ;;  %v2844_v10 = vadd.f32 %v2836_v8, %v2826_v15  ;;  %v2890_v59 = vmul.f32 %v8173_v16, %v7120_v6  ;;  %3091 = vst.msk [vmem:[%s7687_s5 + $0x110] sm:$0xff] %vm1307_vm3, %v7217_v9  ;;  %v2840_v48 = vmul.f32 %v3327_v13, %v7089_v18  ;;  %v3333_v32 = vld [vmem:[#allocation2 + $0xa8] sm:$0xff] }
 0x220   :  { %v2900_v17 = vadd.f32 %v2892_v49, %v2882_v3  ;;  %3092 = vst.msk [vmem:[%s7687_s5 + $0x118] sm:$0x3] %vm1316_vm4, %v7217_v9  ;;  %v2812_v21 = vadd.f32 %v2804_v20, %v2794_v1  ;;  %v2777_v7 = vmul.f32 %v7144_v34, %v6995_v33  ;;  %v2787_v28 = vmul.f32 %v7148_v38, %v7060_v27  ;;  %v1906_v49 = vpop.permute.xlu1 %1905  ;;  %v3335_v3 = vld [vmem:[#allocation2 + $0x128] sm:$0xff] }
 0x221   :  { %v2917_v57 = vand.u32 2147483647, %v2909_v26  ;;  %v2862_v42 = vadd.f32 %v2854_v40, %v2844_v10  ;;  %3076 = vst.msk [vmem:[%s7687_s5 + $0x99] sm:$0xff] %vm1504_vm5, %v1898_v60  ;;  %v2858_v55 = vmul.f32 %v6821_v44, %v7098_v43  ;;  %v2805_v9 = vmul.f32 %v3328_v39, %v7071_v45  ;;  %v3330_v60 = vld [vmem:[#allocation2 + $0x138] sm:$0xff]  ;;  %v3334_v40 = vld [vmem:[#allocation2 + $0xe8] sm:$0xff] }
 0x222   :  { %v2910_v54 = vadd.f32 %v7159_v4, %v2900_v17  ;;  %v2830_v23 = vadd.f32 %v2822_v61, %v2812_v21  ;;  %v2795_v34 = vadd.f32 %v2787_v28, %v2777_v7  ;;  %v2823_v38 = vmul.f32 %v3329_v29, %v7082_v0  ;;  %3113 = vst.msk [vmem:[%s7687_s5 + $0x130] sm:$0xff] %vm1307_vm3, %v7296_v56  ;;  %v1904_v58 = vpop.permute.xlu0 %1903  ;;  %v3336_v10 = vld [vmem:[#allocation2 + $0x168] sm:$0xff] }
 0x223   :  { %2936 = vrot.lane.b32.xlu0 %v2917_v57, %s3395_s6  ;;  %v2880_v44 = vadd.f32 %v2872_v51, %v2862_v42  ;;  %v2876_v24 = vmul.f32 %v6825_v30, %v7117_v2  ;;  %v2111_v8 = vpop.permute.xlu2 %2110  ;;  %v2841_v62 = vmul.f32 %v3330_v60, %v7089_v18  ;;  %3080 = vst.msk [vmem:[%s7687_s5 + $0xb9] sm:$0xff] %vm1504_vm5, %v1906_v49  ;;  %v8174_v57 = vld [vmem:[#allocation27_spill] sm:$0xff] }
 0x224   :  { %v2918_v53 = vand.u32 2147483647, %v2910_v54  ;;  %v2848_v50 = vadd.f32 %v2840_v48, %v2830_v23  ;;  %v2813_v52 = vadd.f32 %v2805_v9, %v2795_v34  ;;  %v2775_v19 = vmul.f32 %v3331_v63, %v6995_v33  ;;  %3106 = vst.msk [vmem:[%s7687_s5 + $0xf9] sm:$0xff] %vm1504_vm5, %v2111_v8 }
 0x225   :  { %v2898_v14 = vadd.f32 %v2890_v59, %v2880_v44  ;;  %v2785_v30 = vmul.f32 %v3332_v36, %v7060_v27  ;;  %v2803_v25 = vmul.f32 %v3333_v32, %v7071_v45  ;;  %v2894_v31 = vmul.f32 %v7034_v46, %v7120_v6  ;;  %3079 = vst.msk [vmem:[%s7687_s5 + $0xb1] sm:$0xff] %vm1504_vm5, %v1904_v58 }
 0x226   :  { %2938 = vrot.lane.b32.xlu1 %v2918_v53, %s3395_s6  ;;  %v2866_v20 = vadd.f32 %v2858_v55, %v2848_v50  ;;  %v2831_v15 = vadd.f32 %v2823_v38, %v2813_v52  ;;  %v2859_v33 = vmul.f32 %v6710_v5, %v7098_v43  ;;  %v2821_v45 = vmul.f32 %v3334_v40, %v7082_v0 }
 0x227   :  { %v2908_v27 = vadd.f32 %v7159_v4, %v2898_v14  ;;  %v2793_v47 = vadd.f32 %v2785_v30, %v2775_v19  ;;  %v2877_v46 = vmul.f32 %v6720_v22, %v7117_v2  ;;  %3114 = vst.msk [vmem:[%s7687_s5 + $0x138] sm:$0xff] %vm1307_vm3, %v7296_v56  ;;  %v2839_v1 = vmul.f32 %v3335_v3, %v7089_v18 }
 0x228   :  { %v2884_v12 = vadd.f32 %v2876_v24, %v2866_v20  ;;  %v2849_v51 = vadd.f32 %v2841_v62, %v2831_v15  ;;  %3111 = vst.msk [vmem:[%s7687_s5 + $0x120] sm:$0xff] %vm1307_vm3, %v7296_v56  ;;  %v2895_v22 = vmul.f32 %v7192_v41, %v7120_v6  ;;  %v2103_v26 = vpop.permute.xlu1 %2102  ;;  %v2857_v16 = vmul.f32 %v3336_v10, %v7098_v43 }
 0x229   :  { %v2916_v5 = vand.u32 2147483647, %v2908_v27  ;;  %v2811_v0 = vadd.f32 %v2803_v25, %v2793_v47  ;;  %3112 = vst.msk [vmem:[%s7687_s5 + $0x128] sm:$0xff] %vm1307_vm3, %v7296_v56  ;;  %v2875_v43 = vmul.f32 %v8153_v37, %v7117_v2  ;;  %v2893_v42 = vmul.f32 %v8174_v57, %v7120_v6 }
 0x22a   :  { %v2902_v35 = vadd.f32 %v2894_v31, %v2884_v12  ;;  %v2867_v61 = vadd.f32 %v2859_v33, %v2849_v51  ;;  %3102 = vst.msk [vmem:[%s7687_s5 + $0xd9] sm:$0xff] %vm1504_vm5, %v2103_v26  ;;  %v1910_v59 = vpop.permute.xlu0 %1909  ;;  %v2342_v37 = vstv %s7356_s20  ;;  %v2550_v24 = vand.u32 2147483647, %v6811_v11 }
 0x22b   :  { %2934 = vrot.lane.b32.xlu2 %v2916_v5, %s3395_s6  ;;  %v2829_v18 = vadd.f32 %v2821_v45, %v2811_v0  ;;  %v2117_v41 = vpop.permute.xlu2 %2116  ;;  %3082 = vst.msk [vmem:[%s7687_s5 + $0xc9] sm:$0xff] %vm1504_vm5, %v1910_v59  ;;  %v2343_v9 = vand.u32 2147483647, %v2342_v37  ;;  %v2757_v19 = vand.u32 2147483647, %v7159_v4 }
 0x22c   :  { %v2912_v13 = vadd.f32 %v7159_v4, %v2902_v35  ;;  %v2885_v48 = vadd.f32 %v2877_v46, %v2867_v61  ;;  %3109 = vst.msk [vmem:[%s7687_s5 + $0x111] sm:$0xff] %vm1504_vm5, %v2117_v41 }
 0x22d   :  { %v2847_v17 = vadd.f32 %v2839_v1, %v2829_v18  ;;  %3115 = vst.msk [vmem:[%s7687_s5 + $0x140] sm:$0xff] %vm1307_vm3, %v7296_v56 }
 0x22e   :  { %v2920_v21 = vand.u32 2147483647, %v2912_v13  ;;  %v2903_v7 = vadd.f32 %v2895_v22, %v2885_v48  ;;  %3116 = vst.msk [vmem:[%s7687_s5 + $0x148] sm:$0xff] %vm1307_vm3, %v7296_v56 }
 0x22f   :  { %v2865_v28 = vadd.f32 %v2857_v16, %v2847_v17  ;;  %3117 = vst.msk [vmem:[%s7687_s5 + $0x150] sm:$0xff] %vm1307_vm3, %v7296_v56 }
 0x230   :  { %2942 = vrot.lane.b32.xlu0 %v2920_v21, %s3395_s6  ;;  %v2913_v2 = vadd.f32 %v7159_v4, %v2903_v7  ;;  %3118 = vst.msk [vmem:[%s7687_s5 + $0x158] sm:$0xff] %vm1307_vm3, %v7296_v56  ;;  %v2109_v39 = vpop.permute.xlu1 %2108 }
 0x231   :  { %v2883_v55 = vadd.f32 %v2875_v43, %v2865_v28  ;;  %3119 = vst.msk [vmem:[%s7687_s5 + $0x160] sm:$0x3] %vm1316_vm4, %v7296_v56 }
 0x232   :  { %v2921_v6 = vand.u32 2147483647, %v2913_v2  ;;  %3105 = vst.msk [vmem:[%s7687_s5 + $0xf1] sm:$0xff] %vm1504_vm5, %v2109_v39  ;;  %v2107_v34 = vpop.permute.xlu0 %2106 }
 0x233   :  { %v2901_v54 = vadd.f32 %v2893_v42, %v2883_v55  ;;  %3104 = vst.msk [vmem:[%s7687_s5 + $0xe9] sm:$0xff] %vm1504_vm5, %v2107_v34 }
 0x234   :  { %v2314_v23 = vpop.permute.xlu2 %2313  ;;  %2944 = vrot.lane.b32.xlu1 %v2921_v6, %s3395_s6  ;;  %3138 = vst.msk [vmem:[%s7687_s5 + $0x168] sm:$0xff] %vm1307_vm3, %v2343_v9 }
 0x235   :  { %3131 = vst.msk [vmem:[%s7687_s5 + $0x131] sm:$0xff] %vm1504_vm5, %v2314_v23  ;;  %v2911_v29 = vadd.f32 %v7159_v4, %v2901_v54 }
 0x236   :  { %3139 = vst.msk [vmem:[%s7687_s5 + $0x170] sm:$0xff] %vm1307_vm3, %v2343_v9 }
 0x237   :  { %v2919_v56 = vand.u32 2147483647, %v2911_v29  ;;  %3140 = vst.msk [vmem:[%s7687_s5 + $0x178] sm:$0xff] %vm1307_vm3, %v2343_v9 }
 0x238   :  { %3141 = vst.msk [vmem:[%s7687_s5 + $0x180] sm:$0xff] %vm1307_vm3, %v2343_v9 }
 0x239   :  { %2940 = vrot.lane.b32.xlu2 %v2919_v56, %s3395_s6  ;;  %v2115_v38 = vpop.permute.xlu1 %2114  ;;  %3142 = vst.msk [vmem:[%s7687_s5 + $0x188] sm:$0xff] %vm1307_vm3, %v2343_v9 }
 0x23a   :  { %3108 = vst.msk [vmem:[%s7687_s5 + $0x109] sm:$0xff] %vm1504_vm5, %v2115_v38 }
 0x23b   :  { %v2113_v44 = vpop.permute.xlu0 %2112  ;;  %3143 = vst.msk [vmem:[%s7687_s5 + $0x190] sm:$0xff] %vm1307_vm3, %v2343_v9 }
 0x23c   :  { %v2320_v49 = vpop.permute.xlu2 %2319  ;;  %3107 = vst.msk [vmem:[%s7687_s5 + $0x101] sm:$0xff] %vm1504_vm5, %v2113_v44 }
 0x23d   :  { %3134 = vst.msk [vmem:[%s7687_s5 + $0x149] sm:$0xff] %vm1504_vm5, %v2320_v49 }
 0x23e   :  { %3144 = vst.msk [vmem:[%s7687_s5 + $0x198] sm:$0xff] %vm1307_vm3, %v2343_v9 }
 0x23f   :  { %3145 = vst.msk [vmem:[%s7687_s5 + $0x1a0] sm:$0xff] %vm1307_vm3, %v2343_v9 }
 0x240   :  { %3146 = vst.msk [vmem:[%s7687_s5 + $0x1a8] sm:$0x3] %vm1316_vm4, %v2343_v9 }
 0x241   :  { %3166 = vst.msk [vmem:[%s7687_s5 + $0x1b8] sm:$0xff] %vm1307_vm3, %v2550_v24 }
 0x242   :  { %v2312_v8 = vpop.permute.xlu1 %2311  ;;  %3167 = vst.msk [vmem:[%s7687_s5 + $0x1c0] sm:$0xff] %vm1307_vm3, %v2550_v24 }
 0x243   :  { %3130 = vst.msk [vmem:[%s7687_s5 + $0x129] sm:$0xff] %vm1504_vm5, %v2312_v8  ;;  %v2310_v58 = vpop.permute.xlu0 %2309 }
 0x244   :  { %v2517_v11 = vpop.permute.xlu2 %2516  ;;  %3129 = vst.msk [vmem:[%s7687_s5 + $0x121] sm:$0xff] %vm1504_vm5, %v2310_v58 }
 0x245   :  { %3156 = vst.msk [vmem:[%s7687_s5 + $0x169] sm:$0xff] %vm1504_vm5, %v2517_v11 }
 0x246   :  { %3165 = vst.msk [vmem:[%s7687_s5 + $0x1b0] sm:$0xff] %vm1307_vm3, %v2550_v24 }
 0x247   :  { %3168 = vst.msk [vmem:[%s7687_s5 + $0x1c8] sm:$0xff] %vm1307_vm3, %v2550_v24 }
 0x248   :  { %3169 = vst.msk [vmem:[%s7687_s5 + $0x1d0] sm:$0xff] %vm1307_vm3, %v2550_v24 }
 0x249   :  { %3170 = vst.msk [vmem:[%s7687_s5 + $0x1d8] sm:$0xff] %vm1307_vm3, %v2550_v24 }
 0x24a   :  { %v2318_v53 = vpop.permute.xlu1 %2317  ;;  %3171 = vst.msk [vmem:[%s7687_s5 + $0x1e0] sm:$0xff] %vm1307_vm3, %v2550_v24 }
 0x24b   :  { %3133 = vst.msk [vmem:[%s7687_s5 + $0x141] sm:$0xff] %vm1504_vm5, %v2318_v53  ;;  %v2316_v52 = vpop.permute.xlu0 %2315 }
 0x24c   :  { %v2523_v50 = vpop.permute.xlu2 %2522  ;;  %3132 = vst.msk [vmem:[%s7687_s5 + $0x139] sm:$0xff] %vm1504_vm5, %v2316_v52 }
 0x24d   :  { %3159 = vst.msk [vmem:[%s7687_s5 + $0x181] sm:$0xff] %vm1504_vm5, %v2523_v50 }
 0x24e   :  { %3172 = vst.msk [vmem:[%s7687_s5 + $0x1e8] sm:$0xff] %vm1307_vm3, %v2550_v24 }
 0x24f   :  { %3173 = vst.msk [vmem:[%s7687_s5 + $0x1f0] sm:$0x3] %vm1316_vm4, %v2550_v24 }
 0x250   :  { %3194 = vst.msk [vmem:[%s7687_s5 + $0x208] sm:$0xff] %vm1307_vm3, %v2757_v19 }
 0x251   :  { %3195 = vst.msk [vmem:[%s7687_s5 + $0x210] sm:$0xff] %vm1307_vm3, %v2757_v19 }
 0x252   :  { %3192 = vst.msk [vmem:[%s7687_s5 + $0x1f8] sm:$0xff] %vm1307_vm3, %v2757_v19 }
 0x253   :  { %v2324_v60 = vpop.permute.xlu1 %2323  ;;  %3193 = vst.msk [vmem:[%s7687_s5 + $0x200] sm:$0xff] %vm1307_vm3, %v2757_v19 }
 0x254   :  { %3136 = vst.msk [vmem:[%s7687_s5 + $0x159] sm:$0xff] %vm1504_vm5, %v2324_v60  ;;  %v2529_v62 = vpop.permute.xlu2 %2528  ;;  %v2322_v14 = vpop.permute.xlu0 %2321 }
 0x255   :  { %3162 = vst.msk [vmem:[%s7687_s5 + $0x199] sm:$0xff] %vm1504_vm5, %v2529_v62 }
 0x256   :  { %3135 = vst.msk [vmem:[%s7687_s5 + $0x151] sm:$0xff] %vm1504_vm5, %v2322_v14 }
 0x257   :  { %3196 = vst.msk [vmem:[%s7687_s5 + $0x218] sm:$0xff] %vm1307_vm3, %v2757_v19 }
 0x258   :  { %3197 = vst.msk [vmem:[%s7687_s5 + $0x220] sm:$0xff] %vm1307_vm3, %v2757_v19 }
 0x259   :  { %3198 = vst.msk [vmem:[%s7687_s5 + $0x228] sm:$0xff] %vm1307_vm3, %v2757_v19 }
 0x25a   :  { %3199 = vst.msk [vmem:[%s7687_s5 + $0x230] sm:$0xff] %vm1307_vm3, %v2757_v19 }
 0x25b   :  { %v2521_v63 = vpop.permute.xlu1 %2520  ;;  %3200 = vst.msk [vmem:[%s7687_s5 + $0x238] sm:$0x3] %vm1316_vm4, %v2757_v19 }
 0x25c   :  { %3158 = vst.msk [vmem:[%s7687_s5 + $0x179] sm:$0xff] %vm1504_vm5, %v2521_v63  ;;  %v2519_v36 = vpop.permute.xlu0 %2518  ;;  %v2726_v30 = vpop.permute.xlu2 %2725 }
 0x25d   :  { %3157 = vst.msk [vmem:[%s7687_s5 + $0x171] sm:$0xff] %vm1504_vm5, %v2519_v36 }
 0x25e   :  { %3184 = vst.msk [vmem:[%s7687_s5 + $0x1b9] sm:$0xff] %vm1504_vm5, %v2726_v30 }
 0x263   :  { %v2527_v4 = vpop.permute.xlu1 %2526 }
 0x264   :  { %3161 = vst.msk [vmem:[%s7687_s5 + $0x191] sm:$0xff] %vm1504_vm5, %v2527_v4  ;;  %v2525_v32 = vpop.permute.xlu0 %2524 }
 0x265   :  { %3160 = vst.msk [vmem:[%s7687_s5 + $0x189] sm:$0xff] %vm1504_vm5, %v2525_v32 }
 0x26a   :  { %v2732_v25 = vpop.permute.xlu2 %2731 }
 0x26b   :  { %3187 = vst.msk [vmem:[%s7687_s5 + $0x1d1] sm:$0xff] %vm1504_vm5, %v2732_v25  ;;  %v2724_v20 = vpop.permute.xlu1 %2723 }
 0x26c   :  { %3183 = vst.msk [vmem:[%s7687_s5 + $0x1b1] sm:$0xff] %vm1504_vm5, %v2724_v20  ;;  %v2531_v31 = vpop.permute.xlu0 %2530 }
 0x26d   :  { %3163 = vst.msk [vmem:[%s7687_s5 + $0x1a1] sm:$0xff] %vm1504_vm5, %v2531_v31 }
 0x273   :  { %v2730_v15 = vpop.permute.xlu1 %2729 }
 0x274   :  { %3186 = vst.msk [vmem:[%s7687_s5 + $0x1c9] sm:$0xff] %vm1504_vm5, %v2730_v15  ;;  %v2728_v33 = vpop.permute.xlu0 %2727 }
 0x275   :  { %3185 = vst.msk [vmem:[%s7687_s5 + $0x1c1] sm:$0xff] %vm1504_vm5, %v2728_v33 }
 0x278   :  { %v2738_v27 = vpop.permute.xlu2 %2737 }
 0x279   :  { %3190 = vst.msk [vmem:[%s7687_s5 + $0x1e9] sm:$0xff] %vm1504_vm5, %v2738_v27 }
 0x27c   :  { %v2734_v47 = vpop.permute.xlu0 %2733 }
 0x27d   :  { %3188 = vst.msk [vmem:[%s7687_s5 + $0x1d9] sm:$0xff] %vm1504_vm5, %v2734_v47  ;;  %v2736_v40 = vpop.permute.xlu1 %2735 }
 0x27e   :  { %3189 = vst.msk [vmem:[%s7687_s5 + $0x1e1] sm:$0xff] %vm1504_vm5, %v2736_v40 }
 0x285   :  { %v2935_v45 = vpop.permute.xlu2 %2934 }
 0x286   :  { %3212 = vst.msk [vmem:[%s7687_s5 + $0x209] sm:$0xff] %vm1504_vm5, %v2935_v45  ;;  %v2931_v12 = vpop.permute.xlu0 %2930 }
 0x287   :  { %3210 = vst.msk [vmem:[%s7687_s5 + $0x1f9] sm:$0xff] %vm1504_vm5, %v2931_v12 }
 0x28d   :  { %v2933_v51 = vpop.permute.xlu1 %2932 }
 0x28e   :  { %3211 = vst.msk [vmem:[%s7687_s5 + $0x201] sm:$0xff] %vm1504_vm5, %v2933_v51 }
 0x293   :  { %v2941_v46 = vpop.permute.xlu2 %2940 }
 0x294   :  { %3215 = vst.msk [vmem:[%s7687_s5 + $0x221] sm:$0xff] %vm1504_vm5, %v2941_v46 }
 0x295   :  { %v2937_v5 = vpop.permute.xlu0 %2936 }
 0x296   :  { %3213 = vst.msk [vmem:[%s7687_s5 + $0x211] sm:$0xff] %vm1504_vm5, %v2937_v5 }
 0x298   :  { %v2939_v0 = vpop.permute.xlu1 %2938 }
 0x299   :  { %3214 = vst.msk [vmem:[%s7687_s5 + $0x219] sm:$0xff] %vm1504_vm5, %v2939_v0 }
 0x2a2   :  { %v2943_v3 = vpop.permute.xlu0 %2942 }
 0x2a3   :  { %3216 = vst.msk [vmem:[%s7687_s5 + $0x229] sm:$0xff] %vm1504_vm5, %v2943_v3 }
 0x2a6   :  { %v2945_v1 = vpop.permute.xlu1 %2944 }
 0x2a7   :  { %3217 = vst.msk [vmem:[%s7687_s5 + $0x231] sm:$0xff] %vm1504_vm5, %v2945_v1 }
 0x2a8   :  { %2966 = vsyncpa [#allocation4], 1 }
 0x2a9   :  { %2967 = vsyncpa [#allocation6], 1 }
 0x2aa   :  { %2968 = vsyncpa [#allocation9], 1 }

</bundles_post_ra>
